<compile_context>
chip_gen: v7x
topology: tpu7x:2x2x1
jax: 0.10.0
libtpu: 0.0.40
codegen_flags: <defaults>
</compile_context>

<pallas_src>
import functools
import math

import jax
import jax.numpy as jnp
from jax.experimental import pallas as pl
from jax.experimental.pallas import tpu as pltpu

_GELU_C = math.sqrt(2.0 / math.pi)


def _gelu(x):
    # tanh-approximate GELU (lowers to EUP tanh); matches torch.nn.GELU() to ~1e-3.
    return 0.5 * x * (1.0 + jnp.tanh(_GELU_C * (x + 0.044715 * (x * x * x))))


def _round_up(n, m):
    return ((n + m - 1) // m) * m


def _pick_batch_tile(B, lout, max_lanes=4096):
    """Batch tile so the lane extent stays bounded; prefer 128-multiple lane blocks."""
    if B * lout <= max_lanes:
        return B
    for bt in range(B - 1, 0, -1):
        if B % bt == 0 and bt * lout <= max_lanes and (bt * lout) % 128 == 0:
            return bt
    return B


# ----------------------------------------------------------------------------------
# MyResidualBlock (downsample=True), fused single kernel per block.
#   conv1: kernel 5, stride 2, pad 2, no bias  -> BN1(eval) -> GELU
#   conv2: kernel 5, stride 1, pad 2, no bias  -> BN2(eval) -> GELU
#   identity: AvgPool1d(2) -> 1x1 conv (no bias);  out = branch + identity
# Activations: (channels_padded, batch*length).  The stride-2 conv consumes the
# even/odd split of the input; all 5 taps of each conv are stacked on sublanes and
# issued as one MXU matmul.
# ----------------------------------------------------------------------------------
def _resblock_kernel(tpos_ref, xe_ref, xo_ref, w1_ref, s1_ref, t1_ref,
                     w2_ref, s2_ref, t2_ref, wid_ref, o_ref, xs_ref, hs_ref, *, lout):
    cin_p, nt = xe_ref.shape
    t = tpos_ref[...]                      # (1, NT) int32: position-in-sample per lane

    xe = xe_ref[...]                       # x at even positions   (cin_p, NT)
    xo = xo_ref[...]                       # x at odd positions    (cin_p, NT)

    # Stage xe/xo into a 1-column-halo scratch so +-1 taps are plain offset reads.
    # Halo columns are never zeroed: every tap that could read them is masked below
    # (jnp.where selects 0 there, so stale halo contents are irrelevant).
    xs_ref[0:cin_p, 1:1 + nt] = xe
    xs_ref[cin_p:2 * cin_p, 1:1 + nt] = xo

    # conv1 (k=5, stride 2, pad 2): output[t] taps x[2t-2..2t+2] =
    #   [xe[t-1], xo[t-1], xe[t], xo[t], xe[t+1]]  -> stacked -> one matmul.
    x1 = jnp.concatenate([
        jnp.where(t >= 1, xs_ref[0:cin_p, 0:nt], 0.0),
        jnp.where(t >= 1, xs_ref[cin_p:2 * cin_p, 0:nt], 0.0),
        xe,
        xo,
        jnp.where(t < lout - 1, xs_ref[0:cin_p, 2:2 + nt], 0.0),
    ], axis=0)                                                     # (5*cin_p, NT)
    h = jnp.dot(w1_ref[...], x1, preferred_element_type=jnp.float32)
    h = _gelu(h * s1_ref[...] + t1_ref[...])

    # conv2 (k=5, stride 1, pad 2): taps h[t-2..t+2] via a 2-column halo scratch.
    hs_ref[:, 2:2 + nt] = h
    x2 = jnp.concatenate([
        jnp.where(t >= 2, hs_ref[:, 0:nt], 0.0),
        jnp.where(t >= 1, hs_ref[:, 1:1 + nt], 0.0),
        h,
        jnp.where(t < lout - 1, hs_ref[:, 3:3 + nt], 0.0),
        jnp.where(t < lout - 2, hs_ref[:, 4:4 + nt], 0.0),
    ], axis=0)                                                     # (5*cout_p, NT)
    h2 = jnp.dot(w2_ref[...], x2, preferred_element_type=jnp.float32)
    h2 = _gelu(h2 * s2_ref[...] + t2_ref[...])

    # identity path: AvgPool1d(2) then 1x1 conv (no bias).
    ident = jnp.dot(wid_ref[...], 0.5 * (xe + xo), preferred_element_type=jnp.float32)
    o_ref[...] = (h2 + ident).astype(o_ref.dtype)


def residual_block(h, p, B, *, K=5):
    """h: (cin_p, B*L) activations (channels padded to a multiple of 8)."""
    cin_p, BL = h.shape
    assert BL % B == 0
    L = BL // B
    assert L % 2 == 0
    lout = L // 2
    cout, cin = p["wid"].shape
    assert cin <= cin_p
    cout_p = _round_up(cout, 8)
    N = B * lout

    # Even/odd split of each sample's length axis (1x layout pass, replaces the old
    # 5x HBM im2col); AvgPool identity is computed in-kernel from xe/xo.
    h3 = h.reshape(cin_p, B, L)
    xe = h3[:, :, 0::2].reshape(cin_p, N)
    xo = h3[:, :, 1::2].reshape(cin_p, N)
    tpos = jnp.tile(jnp.arange(lout, dtype=jnp.int32), B).reshape(1, N)

    # Pack weights for the single-matmul-per-conv layout (zero-pad channels to x8).
    w1p = jnp.pad(p["w1"], ((0, cout_p - cout), (0, cin_p - cin), (0, 0)))
    w1p = jnp.transpose(w1p, (0, 2, 1)).reshape(cout_p, K * cin_p)
    w2p = jnp.pad(p["w2"], ((0, cout_p - cout), (0, cout_p - cout), (0, 0)))
    w2p = jnp.transpose(w2p, (0, 2, 1)).reshape(cout_p, K * cout_p)
    widp = jnp.pad(p["wid"], ((0, cout_p - cout), (0, cin_p - cin)))
    pad_c = ((0, cout_p - cout), (0, 0))
    s1 = jnp.pad(p["s1"], pad_c)
    t1 = jnp.pad(p["t1"], pad_c)
    s2 = jnp.pad(p["s2"], pad_c)
    t2 = jnp.pad(p["t2"], pad_c)

    Bt = _pick_batch_tile(B, lout)
    NT = Bt * lout
    grid = (B // Bt,)

    return pl.pallas_call(
        functools.partial(_resblock_kernel, lout=lout),
        out_shape=jax.ShapeDtypeStruct((cout_p, N), jnp.float32),
        grid_spec=pltpu.PrefetchScalarGridSpec(
            num_scalar_prefetch=0,
            grid=grid,
            in_specs=[
                pl.BlockSpec((1, NT), lambda i: (0, i)),
                pl.BlockSpec((cin_p, NT), lambda i: (0, i)),
                pl.BlockSpec((cin_p, NT), lambda i: (0, i)),
                pl.BlockSpec((cout_p, K * cin_p), lambda i: (0, 0)),
                pl.BlockSpec((cout_p, 1), lambda i: (0, 0)),
                pl.BlockSpec((cout_p, 1), lambda i: (0, 0)),
                pl.BlockSpec((cout_p, K * cout_p), lambda i: (0, 0)),
                pl.BlockSpec((cout_p, 1), lambda i: (0, 0)),
                pl.BlockSpec((cout_p, 1), lambda i: (0, 0)),
                pl.BlockSpec((cout_p, cin_p), lambda i: (0, 0)),
            ],
            out_specs=pl.BlockSpec((cout_p, NT), lambda i: (0, i)),
            scratch_shapes=[
                pltpu.VMEM((2 * cin_p, NT + 2), jnp.float32),   # xe/xo halo stage
                pltpu.VMEM((cout_p, NT + 4), jnp.float32),      # conv1 output halo stage
            ],
        ),
        compiler_params=pltpu.CompilerParams(dimension_semantics=("parallel",)),
    )(tpos, xe, xo, w1p, s1, t1, w2p, s2, t2, widp)


# ----------------------------------------------------------------------------------
# AttentionPool1d + linear_1 + linear, fused (attention dropout p=0.2 is identity in
# eval).  tokens = [mean(x_L); x_L] + pos, query = mean token, 8-head attention,
# c_proj -> output_dim, then the two head Linears.  Everything stays in (C, tokens)
# column layout; per-head reductions use a 0/1 head-pooling matmul (no head loop).
# ----------------------------------------------------------------------------------
def _attnpool_head_kernel(e_ref, posm_ref, posx_ref, wq_ref, bq_ref, wk_ref, bk_ref,
                          wv_ref, bv_ref, pm_ref, pmt_ref, wc_ref, bc_ref,
                          w1_ref, b1_ref, w2_ref, b2_ref, o_ref, *, num_heads):
    x = e_ref[0]                                        # (C, S)
    C = x.shape[0]
    hd = C // num_heads
    scale = 1.0 / math.sqrt(hd)

    mean_tok = jnp.mean(x, axis=1, keepdims=True) + posm_ref[...]     # token 0  (C, 1)
    xt = x + posx_ref[...]                                            # tokens 1..S (C, S)

    q = jnp.dot(wq_ref[...], mean_tok, preferred_element_type=jnp.float32) + bq_ref[...]
    k0 = jnp.dot(wk_ref[...], mean_tok, preferred_element_type=jnp.float32) + bk_ref[...]
    kx = jnp.dot(wk_ref[...], xt, preferred_element_type=jnp.float32) + bk_ref[...]
    v0 = jnp.dot(wv_ref[...], mean_tok, preferred_element_type=jnp.float32) + bv_ref[...]
    vx = jnp.dot(wv_ref[...], xt, preferred_element_type=jnp.float32) + bv_ref[...]

    # per-head scores via the head-pooling matrix pm (H, C): s[h, tok] = q_h . k_h.
    s0 = jnp.dot(pm_ref[...], q * k0, preferred_element_type=jnp.float32) * scale   # (H, 1)
    sx = jnp.dot(pm_ref[...], q * kx, preferred_element_type=jnp.float32) * scale   # (H, S)
    m = jnp.maximum(jnp.max(sx, axis=1, keepdims=True), s0)
    p0 = jnp.exp(s0 - m)
    px = jnp.exp(sx - m)
    inv = pl.reciprocal(p0 + jnp.sum(px, axis=1, keepdims=True), approx=True)
    p0 = p0 * inv
    px = px * inv

    # att[c] = sum_tok probs[head(c), tok] * v[c, tok]   (pmt broadcasts head->channels)
    att = (jnp.dot(pmt_ref[...], p0, preferred_element_type=jnp.float32) * v0
           + jnp.sum(jnp.dot(pmt_ref[...], px, preferred_element_type=jnp.float32) * vx,
                     axis=1, keepdims=True))                                        # (C, 1)

    y = jnp.dot(wc_ref[...], att, preferred_element_type=jnp.float32) + bc_ref[...]  # c_proj
    y = jnp.dot(w1_ref[...], y, preferred_element_type=jnp.float32) + b1_ref[...]    # linear_1
    y = jnp.dot(w2_ref[...], y, preferred_element_type=jnp.float32) + b2_ref[...]    # linear
    o_ref[0] = y                                                                     # (Dout, 1)


def attention_pool_head(e, pool_p, head_p, *, num_heads):
    B, C, S = e.shape
    assert C % num_heads == 0
    hd = C // num_heads
    dout = pool_p["wc"].shape[0]

    posm = pool_p["pos"][0:1, :].T                      # (C, 1)
    posx = pool_p["pos"][1:, :].T                       # (C, S)
    pm = (jnp.arange(num_heads, dtype=jnp.int32)[:, None]
          == (jnp.arange(C, dtype=jnp.int32)[None, :] // hd)).astype(jnp.float32)   # (H, C)
    pmt = pm.T
    col = lambda v: v.reshape(-1, 1)

    out = pl.pallas_call(
        functools.partial(_attnpool_head_kernel, num_heads=num_heads),
        out_shape=jax.ShapeDtypeStruct((B, dout, 1), jnp.float32),
        grid_spec=pltpu.PrefetchScalarGridSpec(
            num_scalar_prefetch=0,
            grid=(B,),
            in_specs=[
                pl.BlockSpec((1, C, S), lambda b: (b, 0, 0)),
                pl.BlockSpec((C, 1), lambda b: (0, 0)),
                pl.BlockSpec((C, S), lambda b: (0, 0)),
                pl.BlockSpec((C, C), lambda b: (0, 0)),
                pl.BlockSpec((C, 1), lambda b: (0, 0)),
                pl.BlockSpec((C, C), lambda b: (0, 0)),
                pl.BlockSpec((C, 1), lambda b: (0, 0)),
                pl.BlockSpec((C, C), lambda b: (0, 0)),
                pl.BlockSpec((C, 1), lambda b: (0, 0)),
                pl.BlockSpec((num_heads, C), lambda b: (0, 0)),
                pl.BlockSpec((C, num_heads), lambda b: (0, 0)),
                pl.BlockSpec((dout, C), lambda b: (0, 0)),
                pl.BlockSpec((dout, 1), lambda b: (0, 0)),
                pl.BlockSpec((dout, dout), lambda b: (0, 0)),
                pl.BlockSpec((dout, 1), lambda b: (0, 0)),
                pl.BlockSpec((dout, dout), lambda b: (0, 0)),
                pl.BlockSpec((dout, 1), lambda b: (0, 0)),
            ],
            out_specs=pl.BlockSpec((1, dout, 1), lambda b: (b, 0, 0)),
        ),
        compiler_params=pltpu.CompilerParams(dimension_semantics=("parallel",)),
    )(e, posm, posx,
      pool_p["wq"], col(pool_p["bq"]),
      pool_p["wk"], col(pool_p["bk"]),
      pool_p["wv"], col(pool_p["bv"]),
      pm, pmt,
      pool_p["wc"], col(pool_p["bc"]),
      head_p["w1"], col(head_p["b1"]),
      head_p["w2"], col(head_p["b2"]))
    return out.reshape(B, dout)


# ----------------------------------------------------------------------------------
# Deterministic parameter construction (shapes follow ECG_encoder.__init__).
# ----------------------------------------------------------------------------------
def init_params(key, in_channels, ecg_length, embedding_dim, output_dim,
                downsample_factor, downscale_feature=1, K=5, bn_eps=1e-5):
    n_features = [in_channels,
                  in_channels * 2 // downscale_feature,
                  in_channels * 4 // downscale_feature,
                  in_channels * 8 // downscale_feature,
                  256 // downscale_feature,
                  embedding_dim]
    n_features[0] = in_channels
    assert ecg_length % 2 ** downsample_factor == 0
    assert n_features[downsample_factor] == embedding_dim
    spacial_dim = ecg_length // 2 ** downsample_factor

    blocks = []
    for i in range(downsample_factor):
        cin, cout = n_features[i], n_features[i + 1]
        key, k1, k2, k3 = jax.random.split(key, 4)
        w1 = jax.random.normal(k1, (cout, cin, K), jnp.float32) / math.sqrt(cin * K)
        w2 = jax.random.normal(k2, (cout, cout, K), jnp.float32) / math.sqrt(cout * K)
        wid = jax.random.normal(k3, (cout, cin), jnp.float32) / math.sqrt(cin)
        # BatchNorm1d eval-mode fold: scale = gamma/sqrt(var+eps), shift = beta - mean*scale.
        # Default init (gamma=1, beta=0, mean=0, var=1) is used here.
        scale = jnp.full((cout, 1), 1.0 / math.sqrt(1.0 + bn_eps), jnp.float32)
        shift = jnp.zeros((cout, 1), jnp.float32)
        blocks.append(dict(w1=w1, w2=w2, wid=wid, s1=scale, t1=shift, s2=scale, t2=shift))

    def lin(k, o, i):
        kw, kb = jax.random.split(k)
        return (jax.random.normal(kw, (o, i), jnp.float32) / math.sqrt(i),
                jax.random.normal(kb, (o,), jnp.float32) * 0.01)

    key, kp, kq, kk, kv, kc, kl1, kl2 = jax.random.split(key, 8)
    pos = jax.random.normal(kp, (spacial_dim + 1, embedding_dim), jnp.float32) / math.sqrt(embedding_dim)
    wq, bq = lin(kq, embedding_dim, embedding_dim)
    wk, bk = lin(kk, embedding_dim, embedding_dim)
    wv, bv = lin(kv, embedding_dim, embedding_dim)
    wc, bc = lin(kc, output_dim, embedding_dim)
    pool = dict(pos=pos, wq=wq, bq=bq, wk=wk, bk=bk, wv=wv, bv=bv, wc=wc, bc=bc)

    w_l1, b_l1 = lin(kl1, output_dim, output_dim)
    w_l2, b_l2 = lin(kl2, output_dim, output_dim)
    return dict(blocks=blocks, pool=pool, head=dict(w1=w_l1, b1=b_l1, w2=w_l2, b2=b_l2))


def ecg_encoder_forward(params, x, *, num_heads=8):
    B, cin, L = x.shape
    # NCL -> lane-dense (channels, batch*length); pad channels to a multiple of 8 once.
    h = jnp.transpose(x, (1, 0, 2)).reshape(cin, B * L)
    cin_p = _round_up(cin, 8)
    h = jnp.pad(h, ((0, cin_p - cin), (0, 0)))

    for bp in params["blocks"]:
        h = residual_block(h, bp, B)

    C = params["pool"]["wq"].shape[0]                # embedding_dim
    S = h.shape[1] // B
    e = jnp.transpose(h[:C].reshape(C, B, S), (1, 0, 2))   # (B, C, S)
    return attention_pool_head(e, params["pool"], params["head"], num_heads=num_heads)


if __name__ == "__main__":
    # Small config consistent with the module's constraints:
    #   ECG_length % 2**downsample_factor == 0 and n_features[downsample_factor] == embedding_dim.
    B = 2
    in_channels = 4
    ecg_length = 64
    downsample_factor = 3
    embedding_dim = in_channels * 8      # = n_features[3] = 32
    output_dim = 32
    num_heads = 8

    key = jax.random.PRNGKey(0)
    pkey, xkey = jax.random.split(key)
    params = init_params(pkey, in_channels, ecg_length, embedding_dim, output_dim,
                         downsample_factor)
    x = jax.random.normal(xkey, (B, in_channels, ecg_length), jnp.float32)

    fwd = jax.jit(functools.partial(ecg_encoder_forward, num_heads=num_heads))
    out = jax.block_until_ready(fwd(params, x))

    assert out.shape == (B, output_dim), out.shape
    assert bool(jnp.all(jnp.isfinite(out)))
    print("KERNEL_OK")
</pallas_src>

<mosaic_0001>
module attributes {stable_mosaic.version = 11 : i64} {
  func.func @_resblock_kernel(%arg0: i32, %arg1: memref<1x64xi32, #tpu.memory_space<vmem>>, %arg2: memref<8x64xf32, #tpu.memory_space<vmem>>, %arg3: memref<8x64xf32, #tpu.memory_space<vmem>>, %arg4: memref<8x40xf32, #tpu.memory_space<vmem>>, %arg5: memref<8x1xf32, #tpu.memory_space<vmem>>, %arg6: memref<8x1xf32, #tpu.memory_space<vmem>>, %arg7: memref<8x40xf32, #tpu.memory_space<vmem>>, %arg8: memref<8x1xf32, #tpu.memory_space<vmem>>, %arg9: memref<8x1xf32, #tpu.memory_space<vmem>>, %arg10: memref<8x8xf32, #tpu.memory_space<vmem>>, %arg11: memref<8x64xf32, #tpu.memory_space<vmem>>, %arg12: memref<16x66xf32, #tpu.memory_space<vmem>>, %arg13: memref<8x68xf32, #tpu.memory_space<vmem>>) attributes {dimension_semantics = [#tpu.dimension_semantics<parallel>], iteration_bounds = array<i64: 1>, scalar_prefetch = 0 : i64, scratch_operands = 2 : i64, tpu.core_type = #tpu.core_type<tc>, window_params = [{transform_indices = @transform_0, window_bounds = array<i64: 1, 64>}, {transform_indices = @transform_1, window_bounds = array<i64: 8, 64>}, {transform_indices = @transform_2, window_bounds = array<i64: 8, 64>}, {pipeline_mode = #tpu.pipeline_mode<synchronous>, transform_indices = @transform_3, window_bounds = array<i64: 8, 40>}, {pipeline_mode = #tpu.pipeline_mode<synchronous>, transform_indices = @transform_4, window_bounds = array<i64: 8, 1>}, {pipeline_mode = #tpu.pipeline_mode<synchronous>, transform_indices = @transform_5, window_bounds = array<i64: 8, 1>}, {pipeline_mode = #tpu.pipeline_mode<synchronous>, transform_indices = @transform_6, window_bounds = array<i64: 8, 40>}, {pipeline_mode = #tpu.pipeline_mode<synchronous>, transform_indices = @transform_7, window_bounds = array<i64: 8, 1>}, {pipeline_mode = #tpu.pipeline_mode<synchronous>, transform_indices = @transform_8, window_bounds = array<i64: 8, 1>}, {pipeline_mode = #tpu.pipeline_mode<synchronous>, transform_indices = @transform_9, window_bounds = array<i64: 8, 8>}, {transform_indices = @transform_10, window_bounds = array<i64: 8, 64>}]} {
    %c0 = arith.constant 0 : index
    %c0_0 = arith.constant 0 : index
    %0 = vector.load %arg1[%c0, %c0_0] : memref<1x64xi32, #tpu.memory_space<vmem>>, vector<1x64xi32>
    %c0_1 = arith.constant 0 : index
    %c0_2 = arith.constant 0 : index
    %1 = vector.load %arg2[%c0_1, %c0_2] : memref<8x64xf32, #tpu.memory_space<vmem>>, vector<8x64xf32>
    %c0_3 = arith.constant 0 : index
    %c0_4 = arith.constant 0 : index
    %2 = vector.load %arg3[%c0_3, %c0_4] : memref<8x64xf32, #tpu.memory_space<vmem>>, vector<8x64xf32>
    %c0_5 = arith.constant 0 : index
    %c1 = arith.constant 1 : index
    %3 = vector.load %arg12[%c0_5, %c1] : memref<16x66xf32, #tpu.memory_space<vmem>>, vector<8x64xf32>
    tpu.vector_store %arg12[%c0_5, %c1], %1 {strides = array<i32>} : memref<16x66xf32, #tpu.memory_space<vmem>>, vector<8x64xf32>,
    %c8 = arith.constant 8 : index
    %c1_6 = arith.constant 1 : index
    %4 = vector.load %arg12[%c8, %c1_6] : memref<16x66xf32, #tpu.memory_space<vmem>>, vector<8x64xf32>
    tpu.vector_store %arg12[%c8, %c1_6], %2 {strides = array<i32>} : memref<16x66xf32, #tpu.memory_space<vmem>>, vector<8x64xf32>,
    %c1_i32 = arith.constant 1 : i32
    %5 = vector.broadcast %c1_i32 : i32 to vector<1x64xi32>
    %6 = arith.cmpi sge, %0, %5 : vector<1x64xi32>
    %c0_7 = arith.constant 0 : index
    %c0_8 = arith.constant 0 : index
    %7 = vector.load %arg12[%c0_7, %c0_8] : memref<16x66xf32, #tpu.memory_space<vmem>>, vector<8x64xf32>
    %cst = arith.constant 0.000000e+00 : f32
    %8 = vector.shape_cast %6 : vector<1x64xi1> to vector<1x64xi1>
    %9 = vector.broadcast %8 : vector<1x64xi1> to vector<8x64xi1>
    %10 = vector.broadcast %cst : f32 to vector<8x64xf32>
    %11 = arith.select %9, %7, %10 : vector<8x64xi1>, vector<8x64xf32>
    %c1_i32_9 = arith.constant 1 : i32
    %12 = vector.broadcast %c1_i32_9 : i32 to vector<1x64xi32>
    %13 = arith.cmpi sge, %0, %12 : vector<1x64xi32>
    %c8_10 = arith.constant 8 : index
    %c0_11 = arith.constant 0 : index
    %14 = vector.load %arg12[%c8_10, %c0_11] : memref<16x66xf32, #tpu.memory_space<vmem>>, vector<8x64xf32>
    %cst_12 = arith.constant 0.000000e+00 : f32
    %15 = vector.shape_cast %13 : vector<1x64xi1> to vector<1x64xi1>
    %16 = vector.broadcast %15 : vector<1x64xi1> to vector<8x64xi1>
    %17 = vector.broadcast %cst_12 : f32 to vector<8x64xf32>
    %18 = arith.select %16, %14, %17 : vector<8x64xi1>, vector<8x64xf32>
    %c31_i32 = arith.constant 31 : i32
    %19 = vector.broadcast %c31_i32 : i32 to vector<1x64xi32>
    %20 = arith.cmpi slt, %0, %19 : vector<1x64xi32>
    %c0_13 = arith.constant 0 : index
    %c2 = arith.constant 2 : index
    %21 = vector.load %arg12[%c0_13, %c2] : memref<16x66xf32, #tpu.memory_space<vmem>>, vector<8x64xf32>
    %cst_14 = arith.constant 0.000000e+00 : f32
    %22 = vector.shape_cast %20 : vector<1x64xi1> to vector<1x64xi1>
    %23 = vector.broadcast %22 : vector<1x64xi1> to vector<8x64xi1>
    %24 = vector.broadcast %cst_14 : f32 to vector<8x64xf32>
    %25 = arith.select %23, %21, %24 : vector<8x64xi1>, vector<8x64xf32>
    %26 = tpu.concatenate %11, %18, %1, %2, %25 in 0 : vector<8x64xf32>, vector<8x64xf32>, vector<8x64xf32>, vector<8x64xf32>, vector<8x64xf32> -> vector<40x64xf32>
    %c0_15 = arith.constant 0 : index
    %c0_16 = arith.constant 0 : index
    %27 = vector.load %arg4[%c0_15, %c0_16] : memref<8x40xf32, #tpu.memory_space<vmem>>, vector<8x40xf32>
    %cst_17 = arith.constant dense<0.000000e+00> : vector<8x64xf32>
    %28 = tpu.matmul %27, %26, %cst_17 {dimension_numbers = #tpu.dot_dimension_numbers<[1], [0], [0], [1], [0, 0, 1, 1], [], []>} : vector<8x40xf32>, vector<40x64xf32>, vector<8x64xf32> -> vector<8x64xf32>
    %c0_18 = arith.constant 0 : index
    %c0_19 = arith.constant 0 : index
    %29 = vector.load %arg5[%c0_18, %c0_19] : memref<8x1xf32, #tpu.memory_space<vmem>>, vector<8x1xf32>
    %30 = vector.broadcast %29 : vector<8x1xf32> to vector<8x64xf32>
    %31 = arith.mulf %28, %30 : vector<8x64xf32>
    %c0_20 = arith.constant 0 : index
    %c0_21 = arith.constant 0 : index
    %32 = vector.load %arg6[%c0_20, %c0_21] : memref<8x1xf32, #tpu.memory_space<vmem>>, vector<8x1xf32>
    %33 = vector.broadcast %32 : vector<8x1xf32> to vector<8x64xf32>
    %34 = arith.addf %31, %33 : vector<8x64xf32>
    %cst_22 = arith.constant 5.000000e-01 : f32
    %35 = vector.broadcast %cst_22 : f32 to vector<8x64xf32>
    %36 = arith.mulf %35, %34 : vector<8x64xf32>
    %37 = arith.mulf %34, %34 : vector<8x64xf32>
    %38 = arith.mulf %37, %34 : vector<8x64xf32>
    %cst_23 = arith.constant 4.471500e-02 : f32
    %39 = vector.broadcast %cst_23 : f32 to vector<8x64xf32>
    %40 = arith.mulf %39, %38 : vector<8x64xf32>
    %41 = arith.addf %34, %40 : vector<8x64xf32>
    %cst_24 = arith.constant 0.797884583 : f32
    %42 = vector.broadcast %cst_24 : f32 to vector<8x64xf32>
    %43 = arith.mulf %42, %41 : vector<8x64xf32>
    %44 = math.tanh %43 : vector<8x64xf32>
    %cst_25 = arith.constant 1.000000e+00 : f32
    %45 = vector.broadcast %cst_25 : f32 to vector<8x64xf32>
    %46 = arith.addf %45, %44 : vector<8x64xf32>
    %47 = arith.mulf %36, %46 : vector<8x64xf32>
    %c0_26 = arith.constant 0 : index
    %c2_27 = arith.constant 2 : index
    %48 = vector.load %arg13[%c0_26, %c2_27] : memref<8x68xf32, #tpu.memory_space<vmem>>, vector<8x64xf32>
    tpu.vector_store %arg13[%c0_26, %c2_27], %47 {strides = array<i32>} : memref<8x68xf32, #tpu.memory_space<vmem>>, vector<8x64xf32>,
    %c2_i32 = arith.constant 2 : i32
    %49 = vector.broadcast %c2_i32 : i32 to vector<1x64xi32>
    %50 = arith.cmpi sge, %0, %49 : vector<1x64xi32>
    %c0_28 = arith.constant 0 : index
    %c0_29 = arith.constant 0 : index
    %51 = vector.load %arg13[%c0_28, %c0_29] : memref<8x68xf32, #tpu.memory_space<vmem>>, vector<8x64xf32>
    %cst_30 = arith.constant 0.000000e+00 : f32
    %52 = vector.shape_cast %50 : vector<1x64xi1> to vector<1x64xi1>
    %53 = vector.broadcast %52 : vector<1x64xi1> to vector<8x64xi1>
    %54 = vector.broadcast %cst_30 : f32 to vector<8x64xf32>
    %55 = arith.select %53, %51, %54 : vector<8x64xi1>, vector<8x64xf32>
    %c1_i32_31 = arith.constant 1 : i32
    %56 = vector.broadcast %c1_i32_31 : i32 to vector<1x64xi32>
    %57 = arith.cmpi sge, %0, %56 : vector<1x64xi32>
    %c0_32 = arith.constant 0 : index
    %c1_33 = arith.constant 1 : index
    %58 = vector.load %arg13[%c0_32, %c1_33] : memref<8x68xf32, #tpu.memory_space<vmem>>, vector<8x64xf32>
    %cst_34 = arith.constant 0.000000e+00 : f32
    %59 = vector.shape_cast %57 : vector<1x64xi1> to vector<1x64xi1>
    %60 = vector.broadcast %59 : vector<1x64xi1> to vector<8x64xi1>
    %61 = vector.broadcast %cst_34 : f32 to vector<8x64xf32>
    %62 = arith.select %60, %58, %61 : vector<8x64xi1>, vector<8x64xf32>
    %c31_i32_35 = arith.constant 31 : i32
    %63 = vector.broadcast %c31_i32_35 : i32 to vector<1x64xi32>
    %64 = arith.cmpi slt, %0, %63 : vector<1x64xi32>
    %c0_36 = arith.constant 0 : index
    %c3 = arith.constant 3 : index
    %65 = vector.load %arg13[%c0_36, %c3] : memref<8x68xf32, #tpu.memory_space<vmem>>, vector<8x64xf32>
    %cst_37 = arith.constant 0.000000e+00 : f32
    %66 = vector.shape_cast %64 : vector<1x64xi1> to vector<1x64xi1>
    %67 = vector.broadcast %66 : vector<1x64xi1> to vector<8x64xi1>
    %68 = vector.broadcast %cst_37 : f32 to vector<8x64xf32>
    %69 = arith.select %67, %65, %68 : vector<8x64xi1>, vector<8x64xf32>
    %c30_i32 = arith.constant 30 : i32
    %70 = vector.broadcast %c30_i32 : i32 to vector<1x64xi32>
    %71 = arith.cmpi slt, %0, %70 : vector<1x64xi32>
    %c0_38 = arith.constant 0 : index
    %c4 = arith.constant 4 : index
    %72 = vector.load %arg13[%c0_38, %c4] : memref<8x68xf32, #tpu.memory_space<vmem>>, vector<8x64xf32>
    %cst_39 = arith.constant 0.000000e+00 : f32
    %73 = vector.shape_cast %71 : vector<1x64xi1> to vector<1x64xi1>
    %74 = vector.broadcast %73 : vector<1x64xi1> to vector<8x64xi1>
    %75 = vector.broadcast %cst_39 : f32 to vector<8x64xf32>
    %76 = arith.select %74, %72, %75 : vector<8x64xi1>, vector<8x64xf32>
    %77 = tpu.concatenate %55, %62, %47, %69, %76 in 0 : vector<8x64xf32>, vector<8x64xf32>, vector<8x64xf32>, vector<8x64xf32>, vector<8x64xf32> -> vector<40x64xf32>
    %c0_40 = arith.constant 0 : index
    %c0_41 = arith.constant 0 : index
    %78 = vector.load %arg7[%c0_40, %c0_41] : memref<8x40xf32, #tpu.memory_space<vmem>>, vector<8x40xf32>
    %cst_42 = arith.constant dense<0.000000e+00> : vector<8x64xf32>
    %79 = tpu.matmul %78, %77, %cst_42 {dimension_numbers = #tpu.dot_dimension_numbers<[1], [0], [0], [1], [0, 0, 1, 1], [], []>} : vector<8x40xf32>, vector<40x64xf32>, vector<8x64xf32> -> vector<8x64xf32>
    %c0_43 = arith.constant 0 : index
    %c0_44 = arith.constant 0 : index
    %80 = vector.load %arg8[%c0_43, %c0_44] : memref<8x1xf32, #tpu.memory_space<vmem>>, vector<8x1xf32>
    %81 = vector.broadcast %80 : vector<8x1xf32> to vector<8x64xf32>
    %82 = arith.mulf %79, %81 : vector<8x64xf32>
    %c0_45 = arith.constant 0 : index
    %c0_46 = arith.constant 0 : index
    %83 = vector.load %arg9[%c0_45, %c0_46] : memref<8x1xf32, #tpu.memory_space<vmem>>, vector<8x1xf32>
    %84 = vector.broadcast %83 : vector<8x1xf32> to vector<8x64xf32>
    %85 = arith.addf %82, %84 : vector<8x64xf32>
    %cst_47 = arith.constant 5.000000e-01 : f32
    %86 = vector.broadcast %cst_47 : f32 to vector<8x64xf32>
    %87 = arith.mulf %86, %85 : vector<8x64xf32>
    %88 = arith.mulf %85, %85 : vector<8x64xf32>
    %89 = arith.mulf %88, %85 : vector<8x64xf32>
    %cst_48 = arith.constant 4.471500e-02 : f32
    %90 = vector.broadcast %cst_48 : f32 to vector<8x64xf32>
    %91 = arith.mulf %90, %89 : vector<8x64xf32>
    %92 = arith.addf %85, %91 : vector<8x64xf32>
    %cst_49 = arith.constant 0.797884583 : f32
    %93 = vector.broadcast %cst_49 : f32 to vector<8x64xf32>
    %94 = arith.mulf %93, %92 : vector<8x64xf32>
    %95 = math.tanh %94 : vector<8x64xf32>
    %cst_50 = arith.constant 1.000000e+00 : f32
    %96 = vector.broadcast %cst_50 : f32 to vector<8x64xf32>
    %97 = arith.addf %96, %95 : vector<8x64xf32>
    %98 = arith.mulf %87, %97 : vector<8x64xf32>
    %c0_51 = arith.constant 0 : index
    %c0_52 = arith.constant 0 : index
    %99 = vector.load %arg10[%c0_51, %c0_52] : memref<8x8xf32, #tpu.memory_space<vmem>>, vector<8x8xf32>
    %100 = arith.addf %1, %2 : vector<8x64xf32>
    %cst_53 = arith.constant 5.000000e-01 : f32
    %101 = vector.broadcast %cst_53 : f32 to vector<8x64xf32>
    %102 = arith.mulf %101, %100 : vector<8x64xf32>
    %cst_54 = arith.constant dense<0.000000e+00> : vector<8x64xf32>
    %103 = tpu.matmul %99, %102, %cst_54 {dimension_numbers = #tpu.dot_dimension_numbers<[1], [0], [0], [1], [0, 0, 1, 1], [], []>} : vector<8x8xf32>, vector<8x64xf32>, vector<8x64xf32> -> vector<8x64xf32>
    %104 = arith.addf %98, %103 : vector<8x64xf32>
    %c0_55 = arith.constant 0 : index
    %c0_56 = arith.constant 0 : index
    %105 = vector.load %arg11[%c0_55, %c0_56] : memref<8x64xf32, #tpu.memory_space<vmem>>, vector<8x64xf32>
    tpu.vector_store %arg11[%c0_55, %c0_56], %104 {strides = array<i32>} : memref<8x64xf32, #tpu.memory_space<vmem>>, vector<8x64xf32>,
    return
  }
  func.func @transform_0(%arg0: i32) -> (i32, i32) {
    %c0_i32 = arith.constant 0 : i32
    %c0_i32_0 = arith.constant 0 : i32
    return %c0_i32, %arg0 : i32, i32
  }
  func.func @transform_1(%arg0: i32) -> (i32, i32) {
    %c0_i32 = arith.constant 0 : i32
    %c0_i32_0 = arith.constant 0 : i32
    return %c0_i32, %arg0 : i32, i32
  }
  func.func @transform_2(%arg0: i32) -> (i32, i32) {
    %c0_i32 = arith.constant 0 : i32
    %c0_i32_0 = arith.constant 0 : i32
    return %c0_i32, %arg0 : i32, i32
  }
  func.func @transform_3(%arg0: i32) -> (i32, i32) {
    %c0_i32 = arith.constant 0 : i32
    %c0_i32_0 = arith.constant 0 : i32
    %c0_i32_1 = arith.constant 0 : i32
    return %c0_i32, %c0_i32_0 : i32, i32
  }
  func.func @transform_4(%arg0: i32) -> (i32, i32) {
    %c0_i32 = arith.constant 0 : i32
    %c0_i32_0 = arith.constant 0 : i32
    %c0_i32_1 = arith.constant 0 : i32
    return %c0_i32, %c0_i32_0 : i32, i32
  }
  func.func @transform_5(%arg0: i32) -> (i32, i32) {
    %c0_i32 = arith.constant 0 : i32
    %c0_i32_0 = arith.constant 0 : i32
    %c0_i32_1 = arith.constant 0 : i32
    return %c0_i32, %c0_i32_0 : i32, i32
  }
  func.func @transform_6(%arg0: i32) -> (i32, i32) {
    %c0_i32 = arith.constant 0 : i32
    %c0_i32_0 = arith.constant 0 : i32
    %c0_i32_1 = arith.constant 0 : i32
    return %c0_i32, %c0_i32_0 : i32, i32
  }
  func.func @transform_7(%arg0: i32) -> (i32, i32) {
    %c0_i32 = arith.constant 0 : i32
    %c0_i32_0 = arith.constant 0 : i32
    %c0_i32_1 = arith.constant 0 : i32
    return %c0_i32, %c0_i32_0 : i32, i32
  }
  func.func @transform_8(%arg0: i32) -> (i32, i32) {
    %c0_i32 = arith.constant 0 : i32
    %c0_i32_0 = arith.constant 0 : i32
    %c0_i32_1 = arith.constant 0 : i32
    return %c0_i32, %c0_i32_0 : i32, i32
  }
  func.func @transform_9(%arg0: i32) -> (i32, i32) {
    %c0_i32 = arith.constant 0 : i32
    %c0_i32_0 = arith.constant 0 : i32
    %c0_i32_1 = arith.constant 0 : i32
    return %c0_i32, %c0_i32_0 : i32, i32
  }
  func.func @transform_10(%arg0: i32) -> (i32, i32) {
    %c0_i32 = arith.constant 0 : i32
    %c0_i32_0 = arith.constant 0 : i32
    return %c0_i32, %arg0 : i32, i32
  }
}

module attributes {stable_mosaic.version = 11 : i64} {
  func.func @_resblock_kernel(%arg0: i32, %arg1: memref<1x32xi32, #tpu.memory_space<vmem>>, %arg2: memref<8x32xf32, #tpu.memory_space<vmem>>, %arg3: memref<8x32xf32, #tpu.memory_space<vmem>>, %arg4: memref<16x40xf32, #tpu.memory_space<vmem>>, %arg5: memref<16x1xf32, #tpu.memory_space<vmem>>, %arg6: memref<16x1xf32, #tpu.memory_space<vmem>>, %arg7: memref<16x80xf32, #tpu.memory_space<vmem>>, %arg8: memref<16x1xf32, #tpu.memory_space<vmem>>, %arg9: memref<16x1xf32, #tpu.memory_space<vmem>>, %arg10: memref<16x8xf32, #tpu.memory_space<vmem>>, %arg11: memref<16x32xf32, #tpu.memory_space<vmem>>, %arg12: memref<16x34xf32, #tpu.memory_space<vmem>>, %arg13: memref<16x36xf32, #tpu.memory_space<vmem>>) attributes {dimension_semantics = [#tpu.dimension_semantics<parallel>], iteration_bounds = array<i64: 1>, scalar_prefetch = 0 : i64, scratch_operands = 2 : i64, tpu.core_type = #tpu.core_type<tc>, window_params = [{transform_indices = @transform_0, window_bounds = array<i64: 1, 32>}, {transform_indices = @transform_1, window_bounds = array<i64: 8, 32>}, {transform_indices = @transform_2, window_bounds = array<i64: 8, 32>}, {pipeline_mode = #tpu.pipeline_mode<synchronous>, transform_indices = @transform_3, window_bounds = array<i64: 16, 40>}, {pipeline_mode = #tpu.pipeline_mode<synchronous>, transform_indices = @transform_4, window_bounds = array<i64: 16, 1>}, {pipeline_mode = #tpu.pipeline_mode<synchronous>, transform_indices = @transform_5, window_bounds = array<i64: 16, 1>}, {pipeline_mode = #tpu.pipeline_mode<synchronous>, transform_indices = @transform_6, window_bounds = array<i64: 16, 80>}, {pipeline_mode = #tpu.pipeline_mode<synchronous>, transform_indices = @transform_7, window_bounds = array<i64: 16, 1>}, {pipeline_mode = #tpu.pipeline_mode<synchronous>, transform_indices = @transform_8, window_bounds = array<i64: 16, 1>}, {pipeline_mode = #tpu.pipeline_mode<synchronous>, transform_indices = @transform_9, window_bounds = array<i64: 16, 8>}, {transform_indices = @transform_10, window_bounds = array<i64: 16, 32>}]} {
    %c0 = arith.constant 0 : index
    %c0_0 = arith.constant 0 : index
    %0 = vector.load %arg1[%c0, %c0_0] : memref<1x32xi32, #tpu.memory_space<vmem>>, vector<1x32xi32>
    %c0_1 = arith.constant 0 : index
    %c0_2 = arith.constant 0 : index
    %1 = vector.load %arg2[%c0_1, %c0_2] : memref<8x32xf32, #tpu.memory_space<vmem>>, vector<8x32xf32>
    %c0_3 = arith.constant 0 : index
    %c0_4 = arith.constant 0 : index
    %2 = vector.load %arg3[%c0_3, %c0_4] : memref<8x32xf32, #tpu.memory_space<vmem>>, vector<8x32xf32>
    %c0_5 = arith.constant 0 : index
    %c1 = arith.constant 1 : index
    %3 = vector.load %arg12[%c0_5, %c1] : memref<16x34xf32, #tpu.memory_space<vmem>>, vector<8x32xf32>
    tpu.vector_store %arg12[%c0_5, %c1], %1 {strides = array<i32>} : memref<16x34xf32, #tpu.memory_space<vmem>>, vector<8x32xf32>,
    %c8 = arith.constant 8 : index
    %c1_6 = arith.constant 1 : index
    %4 = vector.load %arg12[%c8, %c1_6] : memref<16x34xf32, #tpu.memory_space<vmem>>, vector<8x32xf32>
    tpu.vector_store %arg12[%c8, %c1_6], %2 {strides = array<i32>} : memref<16x34xf32, #tpu.memory_space<vmem>>, vector<8x32xf32>,
    %c1_i32 = arith.constant 1 : i32
    %5 = vector.broadcast %c1_i32 : i32 to vector<1x32xi32>
    %6 = arith.cmpi sge, %0, %5 : vector<1x32xi32>
    %c0_7 = arith.constant 0 : index
    %c0_8 = arith.constant 0 : index
    %7 = vector.load %arg12[%c0_7, %c0_8] : memref<16x34xf32, #tpu.memory_space<vmem>>, vector<8x32xf32>
    %cst = arith.constant 0.000000e+00 : f32
    %8 = vector.shape_cast %6 : vector<1x32xi1> to vector<1x32xi1>
    %9 = vector.broadcast %8 : vector<1x32xi1> to vector<8x32xi1>
    %10 = vector.broadcast %cst : f32 to vector<8x32xf32>
    %11 = arith.select %9, %7, %10 : vector<8x32xi1>, vector<8x32xf32>
    %c1_i32_9 = arith.constant 1 : i32
    %12 = vector.broadcast %c1_i32_9 : i32 to vector<1x32xi32>
    %13 = arith.cmpi sge, %0, %12 : vector<1x32xi32>
    %c8_10 = arith.constant 8 : index
    %c0_11 = arith.constant 0 : index
    %14 = vector.load %arg12[%c8_10, %c0_11] : memref<16x34xf32, #tpu.memory_space<vmem>>, vector<8x32xf32>
    %cst_12 = arith.constant 0.000000e+00 : f32
    %15 = vector.shape_cast %13 : vector<1x32xi1> to vector<1x32xi1>
    %16 = vector.broadcast %15 : vector<1x32xi1> to vector<8x32xi1>
    %17 = vector.broadcast %cst_12 : f32 to vector<8x32xf32>
    %18 = arith.select %16, %14, %17 : vector<8x32xi1>, vector<8x32xf32>
    %c15_i32 = arith.constant 15 : i32
    %19 = vector.broadcast %c15_i32 : i32 to vector<1x32xi32>
    %20 = arith.cmpi slt, %0, %19 : vector<1x32xi32>
    %c0_13 = arith.constant 0 : index
    %c2 = arith.constant 2 : index
    %21 = vector.load %arg12[%c0_13, %c2] : memref<16x34xf32, #tpu.memory_space<vmem>>, vector<8x32xf32>
    %cst_14 = arith.constant 0.000000e+00 : f32
    %22 = vector.shape_cast %20 : vector<1x32xi1> to vector<1x32xi1>
    %23 = vector.broadcast %22 : vector<1x32xi1> to vector<8x32xi1>
    %24 = vector.broadcast %cst_14 : f32 to vector<8x32xf32>
    %25 = arith.select %23, %21, %24 : vector<8x32xi1>, vector<8x32xf32>
    %26 = tpu.concatenate %11, %18, %1, %2, %25 in 0 : vector<8x32xf32>, vector<8x32xf32>, vector<8x32xf32>, vector<8x32xf32>, vector<8x32xf32> -> vector<40x32xf32>
    %c0_15 = arith.constant 0 : index
    %c0_16 = arith.constant 0 : index
    %27 = vector.load %arg4[%c0_15, %c0_16] : memref<16x40xf32, #tpu.memory_space<vmem>>, vector<16x40xf32>
    %cst_17 = arith.constant dense<0.000000e+00> : vector<16x32xf32>
    %28 = tpu.matmul %27, %26, %cst_17 {dimension_numbers = #tpu.dot_dimension_numbers<[1], [0], [0], [1], [0, 0, 1, 1], [], []>} : vector<16x40xf32>, vector<40x32xf32>, vector<16x32xf32> -> vector<16x32xf32>
    %c0_18 = arith.constant 0 : index
    %c0_19 = arith.constant 0 : index
    %29 = vector.load %arg5[%c0_18, %c0_19] : memref<16x1xf32, #tpu.memory_space<vmem>>, vector<16x1xf32>
    %30 = vector.broadcast %29 : vector<16x1xf32> to vector<16x32xf32>
    %31 = arith.mulf %28, %30 : vector<16x32xf32>
    %c0_20 = arith.constant 0 : index
    %c0_21 = arith.constant 0 : index
    %32 = vector.load %arg6[%c0_20, %c0_21] : memref<16x1xf32, #tpu.memory_space<vmem>>, vector<16x1xf32>
    %33 = vector.broadcast %32 : vector<16x1xf32> to vector<16x32xf32>
    %34 = arith.addf %31, %33 : vector<16x32xf32>
    %cst_22 = arith.constant 5.000000e-01 : f32
    %35 = vector.broadcast %cst_22 : f32 to vector<16x32xf32>
    %36 = arith.mulf %35, %34 : vector<16x32xf32>
    %37 = arith.mulf %34, %34 : vector<16x32xf32>
    %38 = arith.mulf %37, %34 : vector<16x32xf32>
    %cst_23 = arith.constant 4.471500e-02 : f32
    %39 = vector.broadcast %cst_23 : f32 to vector<16x32xf32>
    %40 = arith.mulf %39, %38 : vector<16x32xf32>
    %41 = arith.addf %34, %40 : vector<16x32xf32>
    %cst_24 = arith.constant 0.797884583 : f32
    %42 = vector.broadcast %cst_24 : f32 to vector<16x32xf32>
    %43 = arith.mulf %42, %41 : vector<16x32xf32>
    %44 = math.tanh %43 : vector<16x32xf32>
    %cst_25 = arith.constant 1.000000e+00 : f32
    %45 = vector.broadcast %cst_25 : f32 to vector<16x32xf32>
    %46 = arith.addf %45, %44 : vector<16x32xf32>
    %47 = arith.mulf %36, %46 : vector<16x32xf32>
    %c0_26 = arith.constant 0 : index
    %c2_27 = arith.constant 2 : index
    %48 = vector.load %arg13[%c0_26, %c2_27] : memref<16x36xf32, #tpu.memory_space<vmem>>, vector<16x32xf32>
    tpu.vector_store %arg13[%c0_26, %c2_27], %47 {strides = array<i32>} : memref<16x36xf32, #tpu.memory_space<vmem>>, vector<16x32xf32>,
    %c2_i32 = arith.constant 2 : i32
    %49 = vector.broadcast %c2_i32 : i32 to vector<1x32xi32>
    %50 = arith.cmpi sge, %0, %49 : vector<1x32xi32>
    %c0_28 = arith.constant 0 : index
    %c0_29 = arith.constant 0 : index
    %51 = vector.load %arg13[%c0_28, %c0_29] : memref<16x36xf32, #tpu.memory_space<vmem>>, vector<16x32xf32>
    %cst_30 = arith.constant 0.000000e+00 : f32
    %52 = vector.shape_cast %50 : vector<1x32xi1> to vector<1x32xi1>
    %53 = vector.broadcast %52 : vector<1x32xi1> to vector<16x32xi1>
    %54 = vector.broadcast %cst_30 : f32 to vector<16x32xf32>
    %55 = arith.select %53, %51, %54 : vector<16x32xi1>, vector<16x32xf32>
    %c1_i32_31 = arith.constant 1 : i32
    %56 = vector.broadcast %c1_i32_31 : i32 to vector<1x32xi32>
    %57 = arith.cmpi sge, %0, %56 : vector<1x32xi32>
    %c0_32 = arith.constant 0 : index
    %c1_33 = arith.constant 1 : index
    %58 = vector.load %arg13[%c0_32, %c1_33] : memref<16x36xf32, #tpu.memory_space<vmem>>, vector<16x32xf32>
    %cst_34 = arith.constant 0.000000e+00 : f32
    %59 = vector.shape_cast %57 : vector<1x32xi1> to vector<1x32xi1>
    %60 = vector.broadcast %59 : vector<1x32xi1> to vector<16x32xi1>
    %61 = vector.broadcast %cst_34 : f32 to vector<16x32xf32>
    %62 = arith.select %60, %58, %61 : vector<16x32xi1>, vector<16x32xf32>
    %c15_i32_35 = arith.constant 15 : i32
    %63 = vector.broadcast %c15_i32_35 : i32 to vector<1x32xi32>
    %64 = arith.cmpi slt, %0, %63 : vector<1x32xi32>
    %c0_36 = arith.constant 0 : index
    %c3 = arith.constant 3 : index
    %65 = vector.load %arg13[%c0_36, %c3] : memref<16x36xf32, #tpu.memory_space<vmem>>, vector<16x32xf32>
    %cst_37 = arith.constant 0.000000e+00 : f32
    %66 = vector.shape_cast %64 : vector<1x32xi1> to vector<1x32xi1>
    %67 = vector.broadcast %66 : vector<1x32xi1> to vector<16x32xi1>
    %68 = vector.broadcast %cst_37 : f32 to vector<16x32xf32>
    %69 = arith.select %67, %65, %68 : vector<16x32xi1>, vector<16x32xf32>
    %c14_i32 = arith.constant 14 : i32
    %70 = vector.broadcast %c14_i32 : i32 to vector<1x32xi32>
    %71 = arith.cmpi slt, %0, %70 : vector<1x32xi32>
    %c0_38 = arith.constant 0 : index
    %c4 = arith.constant 4 : index
    %72 = vector.load %arg13[%c0_38, %c4] : memref<16x36xf32, #tpu.memory_space<vmem>>, vector<16x32xf32>
    %cst_39 = arith.constant 0.000000e+00 : f32
    %73 = vector.shape_cast %71 : vector<1x32xi1> to vector<1x32xi1>
    %74 = vector.broadcast %73 : vector<1x32xi1> to vector<16x32xi1>
    %75 = vector.broadcast %cst_39 : f32 to vector<16x32xf32>
    %76 = arith.select %74, %72, %75 : vector<16x32xi1>, vector<16x32xf32>
    %77 = tpu.concatenate %55, %62, %47, %69, %76 in 0 : vector<16x32xf32>, vector<16x32xf32>, vector<16x32xf32>, vector<16x32xf32>, vector<16x32xf32> -> vector<80x32xf32>
    %c0_40 = arith.constant 0 : index
    %c0_41 = arith.constant 0 : index
    %78 = vector.load %arg7[%c0_40, %c0_41] : memref<16x80xf32, #tpu.memory_space<vmem>>, vector<16x80xf32>
    %cst_42 = arith.constant dense<0.000000e+00> : vector<16x32xf32>
    %79 = tpu.matmul %78, %77, %cst_42 {dimension_numbers = #tpu.dot_dimension_numbers<[1], [0], [0], [1], [0, 0, 1, 1], [], []>} : vector<16x80xf32>, vector<80x32xf32>, vector<16x32xf32> -> vector<16x32xf32>
    %c0_43 = arith.constant 0 : index
    %c0_44 = arith.constant 0 : index
    %80 = vector.load %arg8[%c0_43, %c0_44] : memref<16x1xf32, #tpu.memory_space<vmem>>, vector<16x1xf32>
    %81 = vector.broadcast %80 : vector<16x1xf32> to vector<16x32xf32>
    %82 = arith.mulf %79, %81 : vector<16x32xf32>
    %c0_45 = arith.constant 0 : index
    %c0_46 = arith.constant 0 : index
    %83 = vector.load %arg9[%c0_45, %c0_46] : memref<16x1xf32, #tpu.memory_space<vmem>>, vector<16x1xf32>
    %84 = vector.broadcast %83 : vector<16x1xf32> to vector<16x32xf32>
    %85 = arith.addf %82, %84 : vector<16x32xf32>
    %cst_47 = arith.constant 5.000000e-01 : f32
    %86 = vector.broadcast %cst_47 : f32 to vector<16x32xf32>
    %87 = arith.mulf %86, %85 : vector<16x32xf32>
    %88 = arith.mulf %85, %85 : vector<16x32xf32>
    %89 = arith.mulf %88, %85 : vector<16x32xf32>
    %cst_48 = arith.constant 4.471500e-02 : f32
    %90 = vector.broadcast %cst_48 : f32 to vector<16x32xf32>
    %91 = arith.mulf %90, %89 : vector<16x32xf32>
    %92 = arith.addf %85, %91 : vector<16x32xf32>
    %cst_49 = arith.constant 0.797884583 : f32
    %93 = vector.broadcast %cst_49 : f32 to vector<16x32xf32>
    %94 = arith.mulf %93, %92 : vector<16x32xf32>
    %95 = math.tanh %94 : vector<16x32xf32>
    %cst_50 = arith.constant 1.000000e+00 : f32
    %96 = vector.broadcast %cst_50 : f32 to vector<16x32xf32>
    %97 = arith.addf %96, %95 : vector<16x32xf32>
    %98 = arith.mulf %87, %97 : vector<16x32xf32>
    %c0_51 = arith.constant 0 : index
    %c0_52 = arith.constant 0 : index
    %99 = vector.load %arg10[%c0_51, %c0_52] : memref<16x8xf32, #tpu.memory_space<vmem>>, vector<16x8xf32>
    %100 = arith.addf %1, %2 : vector<8x32xf32>
    %cst_53 = arith.constant 5.000000e-01 : f32
    %101 = vector.broadcast %cst_53 : f32 to vector<8x32xf32>
    %102 = arith.mulf %101, %100 : vector<8x32xf32>
    %cst_54 = arith.constant dense<0.000000e+00> : vector<16x32xf32>
    %103 = tpu.matmul %99, %102, %cst_54 {dimension_numbers = #tpu.dot_dimension_numbers<[1], [0], [0], [1], [0, 0, 1, 1], [], []>} : vector<16x8xf32>, vector<8x32xf32>, vector<16x32xf32> -> vector<16x32xf32>
    %104 = arith.addf %98, %103 : vector<16x32xf32>
    %c0_55 = arith.constant 0 : index
    %c0_56 = arith.constant 0 : index
    %105 = vector.load %arg11[%c0_55, %c0_56] : memref<16x32xf32, #tpu.memory_space<vmem>>, vector<16x32xf32>
    tpu.vector_store %arg11[%c0_55, %c0_56], %104 {strides = array<i32>} : memref<16x32xf32, #tpu.memory_space<vmem>>, vector<16x32xf32>,
    return
  }
  func.func @transform_0(%arg0: i32) -> (i32, i32) {
    %c0_i32 = arith.constant 0 : i32
    %c0_i32_0 = arith.constant 0 : i32
    return %c0_i32, %arg0 : i32, i32
  }
  func.func @transform_1(%arg0: i32) -> (i32, i32) {
    %c0_i32 = arith.constant 0 : i32
    %c0_i32_0 = arith.constant 0 : i32
    return %c0_i32, %arg0 : i32, i32
  }
  func.func @transform_2(%arg0: i32) -> (i32, i32) {
    %c0_i32 = arith.constant 0 : i32
    %c0_i32_0 = arith.constant 0 : i32
    return %c0_i32, %arg0 : i32, i32
  }
  func.func @transform_3(%arg0: i32) -> (i32, i32) {
    %c0_i32 = arith.constant 0 : i32
    %c0_i32_0 = arith.constant 0 : i32
    %c0_i32_1 = arith.constant 0 : i32
    return %c0_i32, %c0_i32_0 : i32, i32
  }
  func.func @transform_4(%arg0: i32) -> (i32, i32) {
    %c0_i32 = arith.constant 0 : i32
    %c0_i32_0 = arith.constant 0 : i32
    %c0_i32_1 = arith.constant 0 : i32
    return %c0_i32, %c0_i32_0 : i32, i32
  }
  func.func @transform_5(%arg0: i32) -> (i32, i32) {
    %c0_i32 = arith.constant 0 : i32
    %c0_i32_0 = arith.constant 0 : i32
    %c0_i32_1 = arith.constant 0 : i32
    return %c0_i32, %c0_i32_0 : i32, i32
  }
  func.func @transform_6(%arg0: i32) -> (i32, i32) {
    %c0_i32 = arith.constant 0 : i32
    %c0_i32_0 = arith.constant 0 : i32
    %c0_i32_1 = arith.constant 0 : i32
    return %c0_i32, %c0_i32_0 : i32, i32
  }
  func.func @transform_7(%arg0: i32) -> (i32, i32) {
    %c0_i32 = arith.constant 0 : i32
    %c0_i32_0 = arith.constant 0 : i32
    %c0_i32_1 = arith.constant 0 : i32
    return %c0_i32, %c0_i32_0 : i32, i32
  }
  func.func @transform_8(%arg0: i32) -> (i32, i32) {
    %c0_i32 = arith.constant 0 : i32
    %c0_i32_0 = arith.constant 0 : i32
    %c0_i32_1 = arith.constant 0 : i32
    return %c0_i32, %c0_i32_0 : i32, i32
  }
  func.func @transform_9(%arg0: i32) -> (i32, i32) {
    %c0_i32 = arith.constant 0 : i32
    %c0_i32_0 = arith.constant 0 : i32
    %c0_i32_1 = arith.constant 0 : i32
    return %c0_i32, %c0_i32_0 : i32, i32
  }
  func.func @transform_10(%arg0: i32) -> (i32, i32) {
    %c0_i32 = arith.constant 0 : i32
    %c0_i32_0 = arith.constant 0 : i32
    return %c0_i32, %arg0 : i32, i32
  }
}

module attributes {stable_mosaic.version = 11 : i64} {
  func.func @_resblock_kernel(%arg0: i32, %arg1: memref<1x16xi32, #tpu.memory_space<vmem>>, %arg2: memref<16x16xf32, #tpu.memory_space<vmem>>, %arg3: memref<16x16xf32, #tpu.memory_space<vmem>>, %arg4: memref<32x80xf32, #tpu.memory_space<vmem>>, %arg5: memref<32x1xf32, #tpu.memory_space<vmem>>, %arg6: memref<32x1xf32, #tpu.memory_space<vmem>>, %arg7: memref<32x160xf32, #tpu.memory_space<vmem>>, %arg8: memref<32x1xf32, #tpu.memory_space<vmem>>, %arg9: memref<32x1xf32, #tpu.memory_space<vmem>>, %arg10: memref<32x16xf32, #tpu.memory_space<vmem>>, %arg11: memref<32x16xf32, #tpu.memory_space<vmem>>, %arg12: memref<32x18xf32, #tpu.memory_space<vmem>>, %arg13: memref<32x20xf32, #tpu.memory_space<vmem>>) attributes {dimension_semantics = [#tpu.dimension_semantics<parallel>], iteration_bounds = array<i64: 1>, scalar_prefetch = 0 : i64, scratch_operands = 2 : i64, tpu.core_type = #tpu.core_type<tc>, window_params = [{transform_indices = @transform_0, window_bounds = array<i64: 1, 16>}, {transform_indices = @transform_1, window_bounds = array<i64: 16, 16>}, {transform_indices = @transform_2, window_bounds = array<i64: 16, 16>}, {pipeline_mode = #tpu.pipeline_mode<synchronous>, transform_indices = @transform_3, window_bounds = array<i64: 32, 80>}, {pipeline_mode = #tpu.pipeline_mode<synchronous>, transform_indices = @transform_4, window_bounds = array<i64: 32, 1>}, {pipeline_mode = #tpu.pipeline_mode<synchronous>, transform_indices = @transform_5, window_bounds = array<i64: 32, 1>}, {pipeline_mode = #tpu.pipeline_mode<synchronous>, transform_indices = @transform_6, window_bounds = array<i64: 32, 160>}, {pipeline_mode = #tpu.pipeline_mode<synchronous>, transform_indices = @transform_7, window_bounds = array<i64: 32, 1>}, {pipeline_mode = #tpu.pipeline_mode<synchronous>, transform_indices = @transform_8, window_bounds = array<i64: 32, 1>}, {pipeline_mode = #tpu.pipeline_mode<synchronous>, transform_indices = @transform_9, window_bounds = array<i64: 32, 16>}, {transform_indices = @transform_10, window_bounds = array<i64: 32, 16>}]} {
    %c0 = arith.constant 0 : index
    %c0_0 = arith.constant 0 : index
    %0 = vector.load %arg1[%c0, %c0_0] : memref<1x16xi32, #tpu.memory_space<vmem>>, vector<1x16xi32>
    %c0_1 = arith.constant 0 : index
    %c0_2 = arith.constant 0 : index
    %1 = vector.load %arg2[%c0_1, %c0_2] : memref<16x16xf32, #tpu.memory_space<vmem>>, vector<16x16xf32>
    %c0_3 = arith.constant 0 : index
    %c0_4 = arith.constant 0 : index
    %2 = vector.load %arg3[%c0_3, %c0_4] : memref<16x16xf32, #tpu.memory_space<vmem>>, vector<16x16xf32>
    %c0_5 = arith.constant 0 : index
    %c1 = arith.constant 1 : index
    %3 = vector.load %arg12[%c0_5, %c1] : memref<32x18xf32, #tpu.memory_space<vmem>>, vector<16x16xf32>
    tpu.vector_store %arg12[%c0_5, %c1], %1 {strides = array<i32>} : memref<32x18xf32, #tpu.memory_space<vmem>>, vector<16x16xf32>,
    %c16 = arith.constant 16 : index
    %c1_6 = arith.constant 1 : index
    %4 = vector.load %arg12[%c16, %c1_6] : memref<32x18xf32, #tpu.memory_space<vmem>>, vector<16x16xf32>
    tpu.vector_store %arg12[%c16, %c1_6], %2 {strides = array<i32>} : memref<32x18xf32, #tpu.memory_space<vmem>>, vector<16x16xf32>,
    %c1_i32 = arith.constant 1 : i32
    %5 = vector.broadcast %c1_i32 : i32 to vector<1x16xi32>
    %6 = arith.cmpi sge, %0, %5 : vector<1x16xi32>
    %c0_7 = arith.constant 0 : index
    %c0_8 = arith.constant 0 : index
    %7 = vector.load %arg12[%c0_7, %c0_8] : memref<32x18xf32, #tpu.memory_space<vmem>>, vector<16x16xf32>
    %cst = arith.constant 0.000000e+00 : f32
    %8 = vector.shape_cast %6 : vector<1x16xi1> to vector<1x16xi1>
    %9 = vector.broadcast %8 : vector<1x16xi1> to vector<16x16xi1>
    %10 = vector.broadcast %cst : f32 to vector<16x16xf32>
    %11 = arith.select %9, %7, %10 : vector<16x16xi1>, vector<16x16xf32>
    %c1_i32_9 = arith.constant 1 : i32
    %12 = vector.broadcast %c1_i32_9 : i32 to vector<1x16xi32>
    %13 = arith.cmpi sge, %0, %12 : vector<1x16xi32>
    %c16_10 = arith.constant 16 : index
    %c0_11 = arith.constant 0 : index
    %14 = vector.load %arg12[%c16_10, %c0_11] : memref<32x18xf32, #tpu.memory_space<vmem>>, vector<16x16xf32>
    %cst_12 = arith.constant 0.000000e+00 : f32
    %15 = vector.shape_cast %13 : vector<1x16xi1> to vector<1x16xi1>
    %16 = vector.broadcast %15 : vector<1x16xi1> to vector<16x16xi1>
    %17 = vector.broadcast %cst_12 : f32 to vector<16x16xf32>
    %18 = arith.select %16, %14, %17 : vector<16x16xi1>, vector<16x16xf32>
    %c7_i32 = arith.constant 7 : i32
    %19 = vector.broadcast %c7_i32 : i32 to vector<1x16xi32>
    %20 = arith.cmpi slt, %0, %19 : vector<1x16xi32>
    %c0_13 = arith.constant 0 : index
    %c2 = arith.constant 2 : index
    %21 = vector.load %arg12[%c0_13, %c2] : memref<32x18xf32, #tpu.memory_space<vmem>>, vector<16x16xf32>
    %cst_14 = arith.constant 0.000000e+00 : f32
    %22 = vector.shape_cast %20 : vector<1x16xi1> to vector<1x16xi1>
    %23 = vector.broadcast %22 : vector<1x16xi1> to vector<16x16xi1>
    %24 = vector.broadcast %cst_14 : f32 to vector<16x16xf32>
    %25 = arith.select %23, %21, %24 : vector<16x16xi1>, vector<16x16xf32>
    %26 = tpu.concatenate %11, %18, %1, %2, %25 in 0 : vector<16x16xf32>, vector<16x16xf32>, vector<16x16xf32>, vector<16x16xf32>, vector<16x16xf32> -> vector<80x16xf32>
    %c0_15 = arith.constant 0 : index
    %c0_16 = arith.constant 0 : index
    %27 = vector.load %arg4[%c0_15, %c0_16] : memref<32x80xf32, #tpu.memory_space<vmem>>, vector<32x80xf32>
    %cst_17 = arith.constant dense<0.000000e+00> : vector<32x16xf32>
    %28 = tpu.matmul %27, %26, %cst_17 {dimension_numbers = #tpu.dot_dimension_numbers<[1], [0], [0], [1], [0, 0, 1, 1], [], []>} : vector<32x80xf32>, vector<80x16xf32>, vector<32x16xf32> -> vector<32x16xf32>
    %c0_18 = arith.constant 0 : index
    %c0_19 = arith.constant 0 : index
    %29 = vector.load %arg5[%c0_18, %c0_19] : memref<32x1xf32, #tpu.memory_space<vmem>>, vector<32x1xf32>
    %30 = vector.broadcast %29 : vector<32x1xf32> to vector<32x16xf32>
    %31 = arith.mulf %28, %30 : vector<32x16xf32>
    %c0_20 = arith.constant 0 : index
    %c0_21 = arith.constant 0 : index
    %32 = vector.load %arg6[%c0_20, %c0_21] : memref<32x1xf32, #tpu.memory_space<vmem>>, vector<32x1xf32>
    %33 = vector.broadcast %32 : vector<32x1xf32> to vector<32x16xf32>
    %34 = arith.addf %31, %33 : vector<32x16xf32>
    %cst_22 = arith.constant 5.000000e-01 : f32
    %35 = vector.broadcast %cst_22 : f32 to vector<32x16xf32>
    %36 = arith.mulf %35, %34 : vector<32x16xf32>
    %37 = arith.mulf %34, %34 : vector<32x16xf32>
    %38 = arith.mulf %37, %34 : vector<32x16xf32>
    %cst_23 = arith.constant 4.471500e-02 : f32
    %39 = vector.broadcast %cst_23 : f32 to vector<32x16xf32>
    %40 = arith.mulf %39, %38 : vector<32x16xf32>
    %41 = arith.addf %34, %40 : vector<32x16xf32>
    %cst_24 = arith.constant 0.797884583 : f32
    %42 = vector.broadcast %cst_24 : f32 to vector<32x16xf32>
    %43 = arith.mulf %42, %41 : vector<32x16xf32>
    %44 = math.tanh %43 : vector<32x16xf32>
    %cst_25 = arith.constant 1.000000e+00 : f32
    %45 = vector.broadcast %cst_25 : f32 to vector<32x16xf32>
    %46 = arith.addf %45, %44 : vector<32x16xf32>
    %47 = arith.mulf %36, %46 : vector<32x16xf32>
    %c0_26 = arith.constant 0 : index
    %c2_27 = arith.constant 2 : index
    %48 = vector.load %arg13[%c0_26, %c2_27] : memref<32x20xf32, #tpu.memory_space<vmem>>, vector<32x16xf32>
    tpu.vector_store %arg13[%c0_26, %c2_27], %47 {strides = array<i32>} : memref<32x20xf32, #tpu.memory_space<vmem>>, vector<32x16xf32>,
    %c2_i32 = arith.constant 2 : i32
    %49 = vector.broadcast %c2_i32 : i32 to vector<1x16xi32>
    %50 = arith.cmpi sge, %0, %49 : vector<1x16xi32>
    %c0_28 = arith.constant 0 : index
    %c0_29 = arith.constant 0 : index
    %51 = vector.load %arg13[%c0_28, %c0_29] : memref<32x20xf32, #tpu.memory_space<vmem>>, vector<32x16xf32>
    %cst_30 = arith.constant 0.000000e+00 : f32
    %52 = vector.shape_cast %50 : vector<1x16xi1> to vector<1x16xi1>
    %53 = vector.broadcast %52 : vector<1x16xi1> to vector<32x16xi1>
    %54 = vector.broadcast %cst_30 : f32 to vector<32x16xf32>
    %55 = arith.select %53, %51, %54 : vector<32x16xi1>, vector<32x16xf32>
    %c1_i32_31 = arith.constant 1 : i32
    %56 = vector.broadcast %c1_i32_31 : i32 to vector<1x16xi32>
    %57 = arith.cmpi sge, %0, %56 : vector<1x16xi32>
    %c0_32 = arith.constant 0 : index
    %c1_33 = arith.constant 1 : index
    %58 = vector.load %arg13[%c0_32, %c1_33] : memref<32x20xf32, #tpu.memory_space<vmem>>, vector<32x16xf32>
    %cst_34 = arith.constant 0.000000e+00 : f32
    %59 = vector.shape_cast %57 : vector<1x16xi1> to vector<1x16xi1>
    %60 = vector.broadcast %59 : vector<1x16xi1> to vector<32x16xi1>
    %61 = vector.broadcast %cst_34 : f32 to vector<32x16xf32>
    %62 = arith.select %60, %58, %61 : vector<32x16xi1>, vector<32x16xf32>
    %c7_i32_35 = arith.constant 7 : i32
    %63 = vector.broadcast %c7_i32_35 : i32 to vector<1x16xi32>
    %64 = arith.cmpi slt, %0, %63 : vector<1x16xi32>
    %c0_36 = arith.constant 0 : index
    %c3 = arith.constant 3 : index
    %65 = vector.load %arg13[%c0_36, %c3] : memref<32x20xf32, #tpu.memory_space<vmem>>, vector<32x16xf32>
    %cst_37 = arith.constant 0.000000e+00 : f32
    %66 = vector.shape_cast %64 : vector<1x16xi1> to vector<1x16xi1>
    %67 = vector.broadcast %66 : vector<1x16xi1> to vector<32x16xi1>
    %68 = vector.broadcast %cst_37 : f32 to vector<32x16xf32>
    %69 = arith.select %67, %65, %68 : vector<32x16xi1>, vector<32x16xf32>
    %c6_i32 = arith.constant 6 : i32
    %70 = vector.broadcast %c6_i32 : i32 to vector<1x16xi32>
    %71 = arith.cmpi slt, %0, %70 : vector<1x16xi32>
    %c0_38 = arith.constant 0 : index
    %c4 = arith.constant 4 : index
    %72 = vector.load %arg13[%c0_38, %c4] : memref<32x20xf32, #tpu.memory_space<vmem>>, vector<32x16xf32>
    %cst_39 = arith.constant 0.000000e+00 : f32
    %73 = vector.shape_cast %71 : vector<1x16xi1> to vector<1x16xi1>
    %74 = vector.broadcast %73 : vector<1x16xi1> to vector<32x16xi1>
    %75 = vector.broadcast %cst_39 : f32 to vector<32x16xf32>
    %76 = arith.select %74, %72, %75 : vector<32x16xi1>, vector<32x16xf32>
    %77 = tpu.concatenate %55, %62, %47, %69, %76 in 0 : vector<32x16xf32>, vector<32x16xf32>, vector<32x16xf32>, vector<32x16xf32>, vector<32x16xf32> -> vector<160x16xf32>
    %c0_40 = arith.constant 0 : index
    %c0_41 = arith.constant 0 : index
    %78 = vector.load %arg7[%c0_40, %c0_41] : memref<32x160xf32, #tpu.memory_space<vmem>>, vector<32x160xf32>
    %cst_42 = arith.constant dense<0.000000e+00> : vector<32x16xf32>
    %79 = tpu.matmul %78, %77, %cst_42 {dimension_numbers = #tpu.dot_dimension_numbers<[1], [0], [0], [1], [0, 0, 1, 1], [], []>} : vector<32x160xf32>, vector<160x16xf32>, vector<32x16xf32> -> vector<32x16xf32>
    %c0_43 = arith.constant 0 : index
    %c0_44 = arith.constant 0 : index
    %80 = vector.load %arg8[%c0_43, %c0_44] : memref<32x1xf32, #tpu.memory_space<vmem>>, vector<32x1xf32>
    %81 = vector.broadcast %80 : vector<32x1xf32> to vector<32x16xf32>
    %82 = arith.mulf %79, %81 : vector<32x16xf32>
    %c0_45 = arith.constant 0 : index
    %c0_46 = arith.constant 0 : index
    %83 = vector.load %arg9[%c0_45, %c0_46] : memref<32x1xf32, #tpu.memory_space<vmem>>, vector<32x1xf32>
    %84 = vector.broadcast %83 : vector<32x1xf32> to vector<32x16xf32>
    %85 = arith.addf %82, %84 : vector<32x16xf32>
    %cst_47 = arith.constant 5.000000e-01 : f32
    %86 = vector.broadcast %cst_47 : f32 to vector<32x16xf32>
    %87 = arith.mulf %86, %85 : vector<32x16xf32>
    %88 = arith.mulf %85, %85 : vector<32x16xf32>
    %89 = arith.mulf %88, %85 : vector<32x16xf32>
    %cst_48 = arith.constant 4.471500e-02 : f32
    %90 = vector.broadcast %cst_48 : f32 to vector<32x16xf32>
    %91 = arith.mulf %90, %89 : vector<32x16xf32>
    %92 = arith.addf %85, %91 : vector<32x16xf32>
    %cst_49 = arith.constant 0.797884583 : f32
    %93 = vector.broadcast %cst_49 : f32 to vector<32x16xf32>
    %94 = arith.mulf %93, %92 : vector<32x16xf32>
    %95 = math.tanh %94 : vector<32x16xf32>
    %cst_50 = arith.constant 1.000000e+00 : f32
    %96 = vector.broadcast %cst_50 : f32 to vector<32x16xf32>
    %97 = arith.addf %96, %95 : vector<32x16xf32>
    %98 = arith.mulf %87, %97 : vector<32x16xf32>
    %c0_51 = arith.constant 0 : index
    %c0_52 = arith.constant 0 : index
    %99 = vector.load %arg10[%c0_51, %c0_52] : memref<32x16xf32, #tpu.memory_space<vmem>>, vector<32x16xf32>
    %100 = arith.addf %1, %2 : vector<16x16xf32>
    %cst_53 = arith.constant 5.000000e-01 : f32
    %101 = vector.broadcast %cst_53 : f32 to vector<16x16xf32>
    %102 = arith.mulf %101, %100 : vector<16x16xf32>
    %cst_54 = arith.constant dense<0.000000e+00> : vector<32x16xf32>
    %103 = tpu.matmul %99, %102, %cst_54 {dimension_numbers = #tpu.dot_dimension_numbers<[1], [0], [0], [1], [0, 0, 1, 1], [], []>} : vector<32x16xf32>, vector<16x16xf32>, vector<32x16xf32> -> vector<32x16xf32>
    %104 = arith.addf %98, %103 : vector<32x16xf32>
    %c0_55 = arith.constant 0 : index
    %c0_56 = arith.constant 0 : index
    %105 = vector.load %arg11[%c0_55, %c0_56] : memref<32x16xf32, #tpu.memory_space<vmem>>, vector<32x16xf32>
    tpu.vector_store %arg11[%c0_55, %c0_56], %104 {strides = array<i32>} : memref<32x16xf32, #tpu.memory_space<vmem>>, vector<32x16xf32>,
    return
  }
  func.func @transform_0(%arg0: i32) -> (i32, i32) {
    %c0_i32 = arith.constant 0 : i32
    %c0_i32_0 = arith.constant 0 : i32
    return %c0_i32, %arg0 : i32, i32
  }
  func.func @transform_1(%arg0: i32) -> (i32, i32) {
    %c0_i32 = arith.constant 0 : i32
    %c0_i32_0 = arith.constant 0 : i32
    return %c0_i32, %arg0 : i32, i32
  }
  func.func @transform_2(%arg0: i32) -> (i32, i32) {
    %c0_i32 = arith.constant 0 : i32
    %c0_i32_0 = arith.constant 0 : i32
    return %c0_i32, %arg0 : i32, i32
  }
  func.func @transform_3(%arg0: i32) -> (i32, i32) {
    %c0_i32 = arith.constant 0 : i32
    %c0_i32_0 = arith.constant 0 : i32
    %c0_i32_1 = arith.constant 0 : i32
    return %c0_i32, %c0_i32_0 : i32, i32
  }
  func.func @transform_4(%arg0: i32) -> (i32, i32) {
    %c0_i32 = arith.constant 0 : i32
    %c0_i32_0 = arith.constant 0 : i32
    %c0_i32_1 = arith.constant 0 : i32
    return %c0_i32, %c0_i32_0 : i32, i32
  }
  func.func @transform_5(%arg0: i32) -> (i32, i32) {
    %c0_i32 = arith.constant 0 : i32
    %c0_i32_0 = arith.constant 0 : i32
    %c0_i32_1 = arith.constant 0 : i32
    return %c0_i32, %c0_i32_0 : i32, i32
  }
  func.func @transform_6(%arg0: i32) -> (i32, i32) {
    %c0_i32 = arith.constant 0 : i32
    %c0_i32_0 = arith.constant 0 : i32
    %c0_i32_1 = arith.constant 0 : i32
    return %c0_i32, %c0_i32_0 : i32, i32
  }
  func.func @transform_7(%arg0: i32) -> (i32, i32) {
    %c0_i32 = arith.constant 0 : i32
    %c0_i32_0 = arith.constant 0 : i32
    %c0_i32_1 = arith.constant 0 : i32
    return %c0_i32, %c0_i32_0 : i32, i32
  }
  func.func @transform_8(%arg0: i32) -> (i32, i32) {
    %c0_i32 = arith.constant 0 : i32
    %c0_i32_0 = arith.constant 0 : i32
    %c0_i32_1 = arith.constant 0 : i32
    return %c0_i32, %c0_i32_0 : i32, i32
  }
  func.func @transform_9(%arg0: i32) -> (i32, i32) {
    %c0_i32 = arith.constant 0 : i32
    %c0_i32_0 = arith.constant 0 : i32
    %c0_i32_1 = arith.constant 0 : i32
    return %c0_i32, %c0_i32_0 : i32, i32
  }
  func.func @transform_10(%arg0: i32) -> (i32, i32) {
    %c0_i32 = arith.constant 0 : i32
    %c0_i32_0 = arith.constant 0 : i32
    return %c0_i32, %arg0 : i32, i32
  }
}

module attributes {stable_mosaic.version = 11 : i64} {
  func.func @_attnpool_head_kernel(%arg0: i32, %arg1: memref<1x32x8xf32, #tpu.memory_space<vmem>>, %arg2: memref<32x1xf32, #tpu.memory_space<vmem>>, %arg3: memref<32x8xf32, #tpu.memory_space<vmem>>, %arg4: memref<32x32xf32, #tpu.memory_space<vmem>>, %arg5: memref<32x1xf32, #tpu.memory_space<vmem>>, %arg6: memref<32x32xf32, #tpu.memory_space<vmem>>, %arg7: memref<32x1xf32, #tpu.memory_space<vmem>>, %arg8: memref<32x32xf32, #tpu.memory_space<vmem>>, %arg9: memref<32x1xf32, #tpu.memory_space<vmem>>, %arg10: memref<8x32xf32, #tpu.memory_space<vmem>>, %arg11: memref<32x8xf32, #tpu.memory_space<vmem>>, %arg12: memref<32x32xf32, #tpu.memory_space<vmem>>, %arg13: memref<32x1xf32, #tpu.memory_space<vmem>>, %arg14: memref<32x32xf32, #tpu.memory_space<vmem>>, %arg15: memref<32x1xf32, #tpu.memory_space<vmem>>, %arg16: memref<32x32xf32, #tpu.memory_space<vmem>>, %arg17: memref<32x1xf32, #tpu.memory_space<vmem>>, %arg18: memref<1x32x1xf32, #tpu.memory_space<vmem>>) attributes {dimension_semantics = [#tpu.dimension_semantics<parallel>], iteration_bounds = array<i64: 2>, scalar_prefetch = 0 : i64, scratch_operands = 0 : i64, tpu.core_type = #tpu.core_type<tc>, window_params = [{transform_indices = @transform_0, window_bounds = array<i64: 1, 32, 8>}, {pipeline_mode = #tpu.pipeline_mode<synchronous>, transform_indices = @transform_1, window_bounds = array<i64: 32, 1>}, {pipeline_mode = #tpu.pipeline_mode<synchronous>, transform_indices = @transform_2, window_bounds = array<i64: 32, 8>}, {pipeline_mode = #tpu.pipeline_mode<synchronous>, transform_indices = @transform_3, window_bounds = array<i64: 32, 32>}, {pipeline_mode = #tpu.pipeline_mode<synchronous>, transform_indices = @transform_4, window_bounds = array<i64: 32, 1>}, {pipeline_mode = #tpu.pipeline_mode<synchronous>, transform_indices = @transform_5, window_bounds = array<i64: 32, 32>}, {pipeline_mode = #tpu.pipeline_mode<synchronous>, transform_indices = @transform_6, window_bounds = array<i64: 32, 1>}, {pipeline_mode = #tpu.pipeline_mode<synchronous>, transform_indices = @transform_7, window_bounds = array<i64: 32, 32>}, {pipeline_mode = #tpu.pipeline_mode<synchronous>, transform_indices = @transform_8, window_bounds = array<i64: 32, 1>}, {pipeline_mode = #tpu.pipeline_mode<synchronous>, transform_indices = @transform_9, window_bounds = array<i64: 8, 32>}, {pipeline_mode = #tpu.pipeline_mode<synchronous>, transform_indices = @transform_10, window_bounds = array<i64: 32, 8>}, {pipeline_mode = #tpu.pipeline_mode<synchronous>, transform_indices = @transform_11, window_bounds = array<i64: 32, 32>}, {pipeline_mode = #tpu.pipeline_mode<synchronous>, transform_indices = @transform_12, window_bounds = array<i64: 32, 1>}, {pipeline_mode = #tpu.pipeline_mode<synchronous>, transform_indices = @transform_13, window_bounds = array<i64: 32, 32>}, {pipeline_mode = #tpu.pipeline_mode<synchronous>, transform_indices = @transform_14, window_bounds = array<i64: 32, 1>}, {pipeline_mode = #tpu.pipeline_mode<synchronous>, transform_indices = @transform_15, window_bounds = array<i64: 32, 32>}, {pipeline_mode = #tpu.pipeline_mode<synchronous>, transform_indices = @transform_16, window_bounds = array<i64: 32, 1>}, {transform_indices = @transform_17, window_bounds = array<i64: 1, 32, 1>}]} {
    %c0 = arith.constant 0 : index
    %c0_0 = arith.constant 0 : index
    %c0_1 = arith.constant 0 : index
    %0 = vector.load %arg1[%c0, %c0_0, %c0_1] : memref<1x32x8xf32, #tpu.memory_space<vmem>>, vector<1x32x8xf32>
    %1 = vector.shape_cast %0 : vector<1x32x8xf32> to vector<32x8xf32>
    %cst = arith.constant dense<0.000000e+00> : vector<32xf32>
    %2 = vector.multi_reduction <add>, %1, %cst [1] : vector<32x8xf32> to vector<32xf32>
    %3 = vector.shape_cast %2 : vector<32xf32> to vector<32x1xf32>
    %cst_2 = arith.constant 8.000000e+00 : f32
    %4 = vector.broadcast %cst_2 : f32 to vector<32x1xf32>
    %5 = arith.divf %3, %4 : vector<32x1xf32>
    %c0_3 = arith.constant 0 : index
    %c0_4 = arith.constant 0 : index
    %6 = vector.load %arg2[%c0_3, %c0_4] : memref<32x1xf32, #tpu.memory_space<vmem>>, vector<32x1xf32>
    %7 = arith.addf %5, %6 : vector<32x1xf32>
    %c0_5 = arith.constant 0 : index
    %c0_6 = arith.constant 0 : index
    %8 = vector.load %arg3[%c0_5, %c0_6] : memref<32x8xf32, #tpu.memory_space<vmem>>, vector<32x8xf32>
    %9 = arith.addf %1, %8 : vector<32x8xf32>
    %c0_7 = arith.constant 0 : index
    %c0_8 = arith.constant 0 : index
    %10 = vector.load %arg4[%c0_7, %c0_8] : memref<32x32xf32, #tpu.memory_space<vmem>>, vector<32x32xf32>
    %cst_9 = arith.constant dense<0.000000e+00> : vector<32x1xf32>
    %11 = tpu.matmul %10, %7, %cst_9 {dimension_numbers = #tpu.dot_dimension_numbers<[1], [0], [0], [1], [0, 0, 1, 1], [], []>} : vector<32x32xf32>, vector<32x1xf32>, vector<32x1xf32> -> vector<32x1xf32>
    %c0_10 = arith.constant 0 : index
    %c0_11 = arith.constant 0 : index
    %12 = vector.load %arg5[%c0_10, %c0_11] : memref<32x1xf32, #tpu.memory_space<vmem>>, vector<32x1xf32>
    %13 = arith.addf %11, %12 : vector<32x1xf32>
    %c0_12 = arith.constant 0 : index
    %c0_13 = arith.constant 0 : index
    %14 = vector.load %arg6[%c0_12, %c0_13] : memref<32x32xf32, #tpu.memory_space<vmem>>, vector<32x32xf32>
    %cst_14 = arith.constant dense<0.000000e+00> : vector<32x1xf32>
    %15 = tpu.matmul %14, %7, %cst_14 {dimension_numbers = #tpu.dot_dimension_numbers<[1], [0], [0], [1], [0, 0, 1, 1], [], []>} : vector<32x32xf32>, vector<32x1xf32>, vector<32x1xf32> -> vector<32x1xf32>
    %c0_15 = arith.constant 0 : index
    %c0_16 = arith.constant 0 : index
    %16 = vector.load %arg7[%c0_15, %c0_16] : memref<32x1xf32, #tpu.memory_space<vmem>>, vector<32x1xf32>
    %17 = arith.addf %15, %16 : vector<32x1xf32>
    %c0_17 = arith.constant 0 : index
    %c0_18 = arith.constant 0 : index
    %18 = vector.load %arg6[%c0_17, %c0_18] : memref<32x32xf32, #tpu.memory_space<vmem>>, vector<32x32xf32>
    %cst_19 = arith.constant dense<0.000000e+00> : vector<32x8xf32>
    %19 = tpu.matmul %18, %9, %cst_19 {dimension_numbers = #tpu.dot_dimension_numbers<[1], [0], [0], [1], [0, 0, 1, 1], [], []>} : vector<32x32xf32>, vector<32x8xf32>, vector<32x8xf32> -> vector<32x8xf32>
    %c0_20 = arith.constant 0 : index
    %c0_21 = arith.constant 0 : index
    %20 = vector.load %arg7[%c0_20, %c0_21] : memref<32x1xf32, #tpu.memory_space<vmem>>, vector<32x1xf32>
    %21 = vector.broadcast %20 : vector<32x1xf32> to vector<32x8xf32>
    %22 = arith.addf %19, %21 : vector<32x8xf32>
    %c0_22 = arith.constant 0 : index
    %c0_23 = arith.constant 0 : index
    %23 = vector.load %arg8[%c0_22, %c0_23] : memref<32x32xf32, #tpu.memory_space<vmem>>, vector<32x32xf32>
    %cst_24 = arith.constant dense<0.000000e+00> : vector<32x1xf32>
    %24 = tpu.matmul %23, %7, %cst_24 {dimension_numbers = #tpu.dot_dimension_numbers<[1], [0], [0], [1], [0, 0, 1, 1], [], []>} : vector<32x32xf32>, vector<32x1xf32>, vector<32x1xf32> -> vector<32x1xf32>
    %c0_25 = arith.constant 0 : index
    %c0_26 = arith.constant 0 : index
    %25 = vector.load %arg9[%c0_25, %c0_26] : memref<32x1xf32, #tpu.memory_space<vmem>>, vector<32x1xf32>
    %26 = arith.addf %24, %25 : vector<32x1xf32>
    %c0_27 = arith.constant 0 : index
    %c0_28 = arith.constant 0 : index
    %27 = vector.load %arg8[%c0_27, %c0_28] : memref<32x32xf32, #tpu.memory_space<vmem>>, vector<32x32xf32>
    %cst_29 = arith.constant dense<0.000000e+00> : vector<32x8xf32>
    %28 = tpu.matmul %27, %9, %cst_29 {dimension_numbers = #tpu.dot_dimension_numbers<[1], [0], [0], [1], [0, 0, 1, 1], [], []>} : vector<32x32xf32>, vector<32x8xf32>, vector<32x8xf32> -> vector<32x8xf32>
    %c0_30 = arith.constant 0 : index
    %c0_31 = arith.constant 0 : index
    %29 = vector.load %arg9[%c0_30, %c0_31] : memref<32x1xf32, #tpu.memory_space<vmem>>, vector<32x1xf32>
    %30 = vector.broadcast %29 : vector<32x1xf32> to vector<32x8xf32>
    %31 = arith.addf %28, %30 : vector<32x8xf32>
    %c0_32 = arith.constant 0 : index
    %c0_33 = arith.constant 0 : index
    %32 = vector.load %arg10[%c0_32, %c0_33] : memref<8x32xf32, #tpu.memory_space<vmem>>, vector<8x32xf32>
    %33 = arith.mulf %13, %17 : vector<32x1xf32>
    %cst_34 = arith.constant dense<0.000000e+00> : vector<8x1xf32>
    %34 = tpu.matmul %32, %33, %cst_34 {dimension_numbers = #tpu.dot_dimension_numbers<[1], [0], [0], [1], [0, 0, 1, 1], [], []>} : vector<8x32xf32>, vector<32x1xf32>, vector<8x1xf32> -> vector<8x1xf32>
    %cst_35 = arith.constant 5.000000e-01 : f32
    %35 = vector.broadcast %cst_35 : f32 to vector<8x1xf32>
    %36 = arith.mulf %34, %35 : vector<8x1xf32>
    %c0_36 = arith.constant 0 : index
    %c0_37 = arith.constant 0 : index
    %37 = vector.load %arg10[%c0_36, %c0_37] : memref<8x32xf32, #tpu.memory_space<vmem>>, vector<8x32xf32>
    %38 = vector.broadcast %13 : vector<32x1xf32> to vector<32x8xf32>
    %39 = arith.mulf %38, %22 : vector<32x8xf32>
    %cst_38 = arith.constant dense<0.000000e+00> : vector<8x8xf32>
    %40 = tpu.matmul %37, %39, %cst_38 {dimension_numbers = #tpu.dot_dimension_numbers<[1], [0], [0], [1], [0, 0, 1, 1], [], []>} : vector<8x32xf32>, vector<32x8xf32>, vector<8x8xf32> -> vector<8x8xf32>
    %cst_39 = arith.constant 5.000000e-01 : f32
    %41 = vector.broadcast %cst_39 : f32 to vector<8x8xf32>
    %42 = arith.mulf %40, %41 : vector<8x8xf32>
    %cst_40 = arith.constant dense<0xFF800000> : vector<8xf32>
    %43 = vector.multi_reduction <maximumf>, %42, %cst_40 [1] : vector<8x8xf32> to vector<8xf32>
    %44 = vector.shape_cast %43 : vector<8xf32> to vector<8x1xf32>
    %45 = arith.maximumf %44, %36 : vector<8x1xf32>
    %46 = arith.subf %36, %45 : vector<8x1xf32>
    %47 = math.exp %46 : vector<8x1xf32>
    %48 = vector.broadcast %45 : vector<8x1xf32> to vector<8x8xf32>
    %49 = arith.subf %42, %48 : vector<8x8xf32>
    %50 = math.exp %49 : vector<8x8xf32>
    %cst_41 = arith.constant dense<0.000000e+00> : vector<8xf32>
    %51 = vector.multi_reduction <add>, %50, %cst_41 [1] : vector<8x8xf32> to vector<8xf32>
    %52 = vector.shape_cast %51 : vector<8xf32> to vector<8x1xf32>
    %53 = arith.addf %47, %52 : vector<8x1xf32>
    %54 = tpu.reciprocal %53 {approx = true} : vector<8x1xf32> -> vector<8x1xf32>
    %55 = arith.mulf %47, %54 : vector<8x1xf32>
    %56 = vector.broadcast %54 : vector<8x1xf32> to vector<8x8xf32>
    %57 = arith.mulf %50, %56 : vector<8x8xf32>
    %c0_42 = arith.constant 0 : index
    %c0_43 = arith.constant 0 : index
    %58 = vector.load %arg11[%c0_42, %c0_43] : memref<32x8xf32, #tpu.memory_space<vmem>>, vector<32x8xf32>
    %cst_44 = arith.constant dense<0.000000e+00> : vector<32x1xf32>
    %59 = tpu.matmul %58, %55, %cst_44 {dimension_numbers = #tpu.dot_dimension_numbers<[1], [0], [0], [1], [0, 0, 1, 1], [], []>} : vector<32x8xf32>, vector<8x1xf32>, vector<32x1xf32> -> vector<32x1xf32>
    %60 = arith.mulf %59, %26 : vector<32x1xf32>
    %c0_45 = arith.constant 0 : index
    %c0_46 = arith.constant 0 : index
    %61 = vector.load %arg11[%c0_45, %c0_46] : memref<32x8xf32, #tpu.memory_space<vmem>>, vector<32x8xf32>
    %cst_47 = arith.constant dense<0.000000e+00> : vector<32x8xf32>
    %62 = tpu.matmul %61, %57, %cst_47 {dimension_numbers = #tpu.dot_dimension_numbers<[1], [0], [0], [1], [0, 0, 1, 1], [], []>} : vector<32x8xf32>, vector<8x8xf32>, vector<32x8xf32> -> vector<32x8xf32>
    %63 = arith.mulf %62, %31 : vector<32x8xf32>
    %cst_48 = arith.constant dense<0.000000e+00> : vector<32xf32>
    %64 = vector.multi_reduction <add>, %63, %cst_48 [1] : vector<32x8xf32> to vector<32xf32>
    %65 = vector.shape_cast %64 : vector<32xf32> to vector<32x1xf32>
    %66 = arith.addf %60, %65 : vector<32x1xf32>
    %c0_49 = arith.constant 0 : index
    %c0_50 = arith.constant 0 : index
    %67 = vector.load %arg12[%c0_49, %c0_50] : memref<32x32xf32, #tpu.memory_space<vmem>>, vector<32x32xf32>
    %cst_51 = arith.constant dense<0.000000e+00> : vector<32x1xf32>
    %68 = tpu.matmul %67, %66, %cst_51 {dimension_numbers = #tpu.dot_dimension_numbers<[1], [0], [0], [1], [0, 0, 1, 1], [], []>} : vector<32x32xf32>, vector<32x1xf32>, vector<32x1xf32> -> vector<32x1xf32>
    %c0_52 = arith.constant 0 : index
    %c0_53 = arith.constant 0 : index
    %69 = vector.load %arg13[%c0_52, %c0_53] : memref<32x1xf32, #tpu.memory_space<vmem>>, vector<32x1xf32>
    %70 = arith.addf %68, %69 : vector<32x1xf32>
    %c0_54 = arith.constant 0 : index
    %c0_55 = arith.constant 0 : index
    %71 = vector.load %arg14[%c0_54, %c0_55] : memref<32x32xf32, #tpu.memory_space<vmem>>, vector<32x32xf32>
    %cst_56 = arith.constant dense<0.000000e+00> : vector<32x1xf32>
    %72 = tpu.matmul %71, %70, %cst_56 {dimension_numbers = #tpu.dot_dimension_numbers<[1], [0], [0], [1], [0, 0, 1, 1], [], []>} : vector<32x32xf32>, vector<32x1xf32>, vector<32x1xf32> -> vector<32x1xf32>
    %c0_57 = arith.constant 0 : index
    %c0_58 = arith.constant 0 : index
    %73 = vector.load %arg15[%c0_57, %c0_58] : memref<32x1xf32, #tpu.memory_space<vmem>>, vector<32x1xf32>
    %74 = arith.addf %72, %73 : vector<32x1xf32>
    %c0_59 = arith.constant 0 : index
    %c0_60 = arith.constant 0 : index
    %75 = vector.load %arg16[%c0_59, %c0_60] : memref<32x32xf32, #tpu.memory_space<vmem>>, vector<32x32xf32>
    %cst_61 = arith.constant dense<0.000000e+00> : vector<32x1xf32>
    %76 = tpu.matmul %75, %74, %cst_61 {dimension_numbers = #tpu.dot_dimension_numbers<[1], [0], [0], [1], [0, 0, 1, 1], [], []>} : vector<32x32xf32>, vector<32x1xf32>, vector<32x1xf32> -> vector<32x1xf32>
    %c0_62 = arith.constant 0 : index
    %c0_63 = arith.constant 0 : index
    %77 = vector.load %arg17[%c0_62, %c0_63] : memref<32x1xf32, #tpu.memory_space<vmem>>, vector<32x1xf32>
    %78 = arith.addf %76, %77 : vector<32x1xf32>
    %c0_64 = arith.constant 0 : index
    %c0_65 = arith.constant 0 : index
    %c0_66 = arith.constant 0 : index
    %79 = vector.load %arg18[%c0_64, %c0_65, %c0_66] : memref<1x32x1xf32, #tpu.memory_space<vmem>>, vector<1x32x1xf32>
    %80 = vector.shape_cast %79 : vector<1x32x1xf32> to vector<32x1xf32>
    %81 = vector.shape_cast %78 : vector<32x1xf32> to vector<1x32x1xf32>
    tpu.vector_store %arg18[%c0_64, %c0_65, %c0_66], %81 {strides = array<i32>} : memref<1x32x1xf32, #tpu.memory_space<vmem>>, vector<1x32x1xf32>,
    return
  }
  func.func @transform_0(%arg0: i32) -> (i32, i32, i32) {
    %c0_i32 = arith.constant 0 : i32
    %c0_i32_0 = arith.constant 0 : i32
    %c0_i32_1 = arith.constant 0 : i32
    return %arg0, %c0_i32, %c0_i32_0 : i32, i32, i32
  }
  func.func @transform_1(%arg0: i32) -> (i32, i32) {
    %c0_i32 = arith.constant 0 : i32
    %c0_i32_0 = arith.constant 0 : i32
    %c0_i32_1 = arith.constant 0 : i32
    return %c0_i32, %c0_i32_0 : i32, i32
  }
  func.func @transform_2(%arg0: i32) -> (i32, i32) {
    %c0_i32 = arith.constant 0 : i32
    %c0_i32_0 = arith.constant 0 : i32
    %c0_i32_1 = arith.constant 0 : i32
    return %c0_i32, %c0_i32_0 : i32, i32
  }
  func.func @transform_3(%arg0: i32) -> (i32, i32) {
    %c0_i32 = arith.constant 0 : i32
    %c0_i32_0 = arith.constant 0 : i32
    %c0_i32_1 = arith.constant 0 : i32
    return %c0_i32, %c0_i32_0 : i32, i32
  }
  func.func @transform_4(%arg0: i32) -> (i32, i32) {
    %c0_i32 = arith.constant 0 : i32
    %c0_i32_0 = arith.constant 0 : i32
    %c0_i32_1 = arith.constant 0 : i32
    return %c0_i32, %c0_i32_0 : i32, i32
  }
  func.func @transform_5(%arg0: i32) -> (i32, i32) {
    %c0_i32 = arith.constant 0 : i32
    %c0_i32_0 = arith.constant 0 : i32
    %c0_i32_1 = arith.constant 0 : i32
    return %c0_i32, %c0_i32_0 : i32, i32
  }
  func.func @transform_6(%arg0: i32) -> (i32, i32) {
    %c0_i32 = arith.constant 0 : i32
    %c0_i32_0 = arith.constant 0 : i32
    %c0_i32_1 = arith.constant 0 : i32
    return %c0_i32, %c0_i32_0 : i32, i32
  }
  func.func @transform_7(%arg0: i32) -> (i32, i32) {
    %c0_i32 = arith.constant 0 : i32
    %c0_i32_0 = arith.constant 0 : i32
    %c0_i32_1 = arith.constant 0 : i32
    return %c0_i32, %c0_i32_0 : i32, i32
  }
  func.func @transform_8(%arg0: i32) -> (i32, i32) {
    %c0_i32 = arith.constant 0 : i32
    %c0_i32_0 = arith.constant 0 : i32
    %c0_i32_1 = arith.constant 0 : i32
    return %c0_i32, %c0_i32_0 : i32, i32
  }
  func.func @transform_9(%arg0: i32) -> (i32, i32) {
    %c0_i32 = arith.constant 0 : i32
    %c0_i32_0 = arith.constant 0 : i32
    %c0_i32_1 = arith.constant 0 : i32
    return %c0_i32, %c0_i32_0 : i32, i32
  }
  func.func @transform_10(%arg0: i32) -> (i32, i32) {
    %c0_i32 = arith.constant 0 : i32
    %c0_i32_0 = arith.constant 0 : i32
    %c0_i32_1 = arith.constant 0 : i32
    return %c0_i32, %c0_i32_0 : i32, i32
  }
  func.func @transform_11(%arg0: i32) -> (i32, i32) {
    %c0_i32 = arith.constant 0 : i32
    %c0_i32_0 = arith.constant 0 : i32
    %c0_i32_1 = arith.constant 0 : i32
    return %c0_i32, %c0_i32_0 : i32, i32
  }
  func.func @transform_12(%arg0: i32) -> (i32, i32) {
    %c0_i32 = arith.constant 0 : i32
    %c0_i32_0 = arith.constant 0 : i32
    %c0_i32_1 = arith.constant 0 : i32
    return %c0_i32, %c0_i32_0 : i32, i32
  }
  func.func @transform_13(%arg0: i32) -> (i32, i32) {
    %c0_i32 = arith.constant 0 : i32
    %c0_i32_0 = arith.constant 0 : i32
    %c0_i32_1 = arith.constant 0 : i32
    return %c0_i32, %c0_i32_0 : i32, i32
  }
  func.func @transform_14(%arg0: i32) -> (i32, i32) {
    %c0_i32 = arith.constant 0 : i32
    %c0_i32_0 = arith.constant 0 : i32
    %c0_i32_1 = arith.constant 0 : i32
    return %c0_i32, %c0_i32_0 : i32, i32
  }
  func.func @transform_15(%arg0: i32) -> (i32, i32) {
    %c0_i32 = arith.constant 0 : i32
    %c0_i32_0 = arith.constant 0 : i32
    %c0_i32_1 = arith.constant 0 : i32
    return %c0_i32, %c0_i32_0 : i32, i32
  }
  func.func @transform_16(%arg0: i32) -> (i32, i32) {
    %c0_i32 = arith.constant 0 : i32
    %c0_i32_0 = arith.constant 0 : i32
    %c0_i32_1 = arith.constant 0 : i32
    return %c0_i32, %c0_i32_0 : i32, i32
  }
  func.func @transform_17(%arg0: i32) -> (i32, i32, i32) {
    %c0_i32 = arith.constant 0 : i32
    %c0_i32_0 = arith.constant 0 : i32
    %c0_i32_1 = arith.constant 0 : i32
    return %arg0, %c0_i32, %c0_i32_0 : i32, i32, i32
  }
}

</mosaic_0001>

<bundles_post_ra>
// kernel: tile.19
= control target key start
LH: loop header
LB: loop body
LE: loop exit
PB: predicated region body
PF: predicated region fallthrough
CT: control target
= control target key end

     0   :  { %vm7_vm0 = vcmask 261120   ;;  %vm13_vm1 = vcmask 523520   ;;  %s39_s0 = inlined_call_operand.vmem [shape: s32[2,32], index: 0, kind: input, shape index: {}]   ;;  %s40_s1 = inlined_call_operand.vmem [shape: s32[1,64], index: 1, kind: output, shape index: {}]  }
   0x1   :  { %v4_v0 = vld [vmem:[%s39_s0] sm:$0x3]  ;;  %s22_s0 = smov 32  }
   0x2   :  { %5 = vst [vmem:[#allocation1] sm:$0x3] %v4_v0 }
   0x9   :  { %v10_v1 = vld [vmem:[#allocation1 + $0x1] sm:$0x1]   ;;  %v6_v2 = vld [vmem:[#allocation1] sm:$0x1]  }
   0xa   :  { %11 = vrot.lane.b32.xlu0 %v10_v1, %s22_s0  ;;  %8 = vst.msk [vmem:[#allocation0] sm:$0x1] %vm7_vm0, %v6_v2  }
  0x7c   :  { %v12_v3 = vpop.permute.xlu0 %11  }
  0x7d   :  { %14 = vst.msk [vmem:[#allocation0] sm:$0x1] %vm13_vm1, %v12_v3  }
  0x84   :  { %v18_v4 = vld [vmem:[#allocation0] sm:$0x1] }
  0x85   :  { %20 = vst [vmem:[%s40_s1] sm:$0x1] %v18_v4 }

// kernel: tile.24
= control target key start
LH: loop header
LB: loop body
LE: loop exit
PB: predicated region body
PF: predicated region fallthrough
CT: control target
= control target key end

     0   :  { %vm7_vm0 = vcmask 130048   ;;  %vm13_vm1 = vcmask 261248   ;;  %s39_s0 = inlined_call_operand.vmem [shape: s32[2,16], index: 0, kind: input, shape index: {}]   ;;  %s40_s1 = inlined_call_operand.vmem [shape: s32[1,32], index: 1, kind: output, shape index: {}]  }
   0x1   :  { %v4_v0 = vld [vmem:[%s39_s0] sm:$0x3]  ;;  %s22_s0 = smov 16  }
   0x2   :  { %5 = vst [vmem:[#allocation1] sm:$0x3] %v4_v0 }
   0x9   :  { %v10_v1 = vld [vmem:[#allocation1 + $0x1] sm:$0x1]   ;;  %v6_v2 = vld [vmem:[#allocation1] sm:$0x1]  }
   0xa   :  { %11 = vrot.lane.b32.xlu0 %v10_v1, %s22_s0  ;;  %8 = vst.msk [vmem:[#allocation0] sm:$0x1] %vm7_vm0, %v6_v2  }
  0x7c   :  { %v12_v3 = vpop.permute.xlu0 %11  }
  0x7d   :  { %14 = vst.msk [vmem:[#allocation0] sm:$0x1] %vm13_vm1, %v12_v3  }
  0x84   :  { %v18_v4 = vld [vmem:[#allocation0] sm:$0x1] }
  0x85   :  { %20 = vst [vmem:[%s40_s1] sm:$0x1] %v18_v4 }

// kernel: tile.29
= control target key start
LH: loop header
LB: loop body
LE: loop exit
PB: predicated region body
PF: predicated region fallthrough
CT: control target
= control target key end

     0   :  { %vm7_vm0 = vcmask 64512   ;;  %vm13_vm1 = vcmask 130112   ;;  %s39_s0 = inlined_call_operand.vmem [shape: s32[2,8], index: 0, kind: input, shape index: {}]   ;;  %s40_s1 = inlined_call_operand.vmem [shape: s32[1,16], index: 1, kind: output, shape index: {}]  }
   0x1   :  { %v4_v0 = vld [vmem:[%s39_s0] sm:$0x3]  ;;  %s22_s0 = smov 8  }
   0x2   :  { %5 = vst [vmem:[#allocation1] sm:$0x3] %v4_v0 }
   0x9   :  { %v10_v1 = vld [vmem:[#allocation1 + $0x1] sm:$0x1]   ;;  %v6_v2 = vld [vmem:[#allocation1] sm:$0x1]  }
   0xa   :  { %11 = vrot.lane.b32.xlu0 %v10_v1, %s22_s0  ;;  %8 = vst.msk [vmem:[#allocation0] sm:$0x1] %vm7_vm0, %v6_v2  }
  0x7c   :  { %v12_v3 = vpop.permute.xlu0 %11  }
  0x7d   :  { %14 = vst.msk [vmem:[#allocation0] sm:$0x1] %vm13_vm1, %v12_v3  }
  0x84   :  { %v18_v4 = vld [vmem:[#allocation0] sm:$0x1] }
  0x85   :  { %20 = vst [vmem:[%s40_s1] sm:$0x1] %v18_v4 }

// kernel: ecg_encoder_forward.5
= control target key start
LH: loop header
LB: loop body
LE: loop exit
PB: predicated region body
PF: predicated region fallthrough
CT: control target
= control target key end

     0   :  { %v632_v2 = vmov 0   ;;  %s633_s17 = smov 1   ;;  %v52_v5 = vlaneseq  ;;  %vm74_vm0 = vcmask 326656   ;;  %vm42_vm1 = vcmask 269320   ;;  %s637_s29 = smov 127   ;;  %s803_s1 = inlined_call_operand.vmem [shape: f32[8,32], index: 1, kind: input, shape index: {}]   ;;  %s804_s2 = inlined_call_operand.vmem [shape: f32[8,32], index: 2, kind: input, shape index: {}]   ;;  %s805_s0 = inlined_call_operand.vmem [shape: s32[1,32], index: 0, kind: input, shape index: {}]   ;;  %s806_s3 = inlined_call_operand.vmem [shape: f32[16,40], index: 3, kind: input, shape index: {}]   ;;  %s807_s4 = inlined_call_operand.vmem [shape: f32[16,1], index: 4, kind: input, shape index: {}]   ;;  %s808_s5 = inlined_call_operand.vmem [shape: f32[16,1], index: 5, kind: input, shape index: {}]   ;;  %s809_s7 = inlined_call_operand.vmem [shape: f32[16,1], index: 7, kind: input, shape index: {}]   ;;  %s810_s8 = inlined_call_operand.vmem [shape: f32[16,1], index: 8, kind: input, shape index: {}]   ;;  %s811_s6 = inlined_call_operand.vmem [shape: f32[16,80], index: 6, kind: input, shape index: {}]   ;;  %s812_s9 = inlined_call_operand.vmem [shape: f32[16,8], index: 9, kind: input, shape index: {}]   ;;  %s813_s10 = inlined_call_operand.vmem [shape: f32[16,32], index: 10, kind: output, shape index: {}]  }
   0x1   :  { %v36_v0 = vld [vmem:[%s803_s1] sm:$0xff]  ;;  %607 = vset.pattern.permute.xlu1 %v632_v2  ;;  %608 = vset.pattern.permute.xlu0 %v632_v2  ;;  %v157_v10 = vld [vmem:[%s807_s4 + $0x8] sm:$0xff]  ;;  %vm210_vm8 = vcmask 277520   ;;  %s638_s12 = smov 124   ;;  %vm259_vm11 = vcmask 654336   ;;  %vm391_vm12 = vcmask 64512  }
   0x2   :  { %v37_v1 = vld [vmem:[%s804_s2] sm:$0xff]  ;;  %39 = vrot.lane.b32.xlu0 %v36_v0, %s633_s17  ;;  %v53_v8 = vshrl.u32 %v52_v5, 7  ;;  %v171_v21 = vld [vmem:[%s808_s5 + $0x8] sm:$0xff] }
   0x3   :  { %v702_v3 = vadd.f32 %v37_v1, %v36_v0  ;;  %v568_v4 = vpack.c.bf16 %v37_v1, %v36_v0  ;;  %v707_v6 = vld [vmem:[%s805_s0] sm:$0x1]  ;;  %s634_s0 = smov 126   ;;  %v73_v26 = vld [vmem:[%s806_s3 + $0x8] sm:$0xff] }
   0x4   :  { %v72_v7 = vld [vmem:[%s806_s3] sm:$0xff]  ;;  %vm49_vm2 = vcmp.ge.s32.totalorder %v707_v6, 1  ;;  %v717_v11 = vsub.s32 0, %v53_v8  ;;  %vm60_vm5 = vcmp.lt.s32.totalorder %v707_v6, 15  ;;  %s635_s3 = smov 2   ;;  %vm213_vm7 = vcmp.ge.s32.totalorder %v707_v6, 2 }
   0x5   :  { %531 = vmatprep.mubr.msk.f32.mxu0 %vm74_vm0, %v72_v7  ;;  %v51_v12 = vsel %vm49_vm2, 1, %v632_v2  ;;  %v156_v16 = vld [vmem:[%s807_s4] sm:$0xff]  ;;  %v61_v22 = vsel %vm60_vm5, 1, %v632_v2  ;;  %v216_v57 = vsel %vm213_vm7, 1, %v632_v2  ;;  %v356_v7 = vld [vmem:[%s810_s8 + $0x8] sm:$0xff]  ;;  %v390_v8 = vmul.f32 0.5, %v702_v3 }
   0x6   :  { %45 = vrot.lane.b32.xlu0 %v37_v1, %s633_s17  ;;  %v55_v14 = vrot.slane %v51_v12, %v717_v11  ;;  %v170_v20 = vld [vmem:[%s808_s5] sm:$0xff]  ;;  %v65_v23 = vrot.slane %v61_v22, %v717_v11  ;;  %v220_v59 = vrot.slane %v216_v57, %v717_v11  ;;  %s636_s5 = smov 125   ;;  %vm242_vm13 = vcmp.lt.s32.totalorder %v707_v6, 14 }
   0x7   :  { %v341_v0 = vld [vmem:[%s809_s7] sm:$0xff] }
   0x8   :  { %vm56_vm3 = vcmp.eq.s32.totalorder %v55_v14, 1  ;;  %vm741_vm6 = vcmp.eq.s32.totalorder %v65_v23, 1  ;;  %vm221_vm9 = vcmp.eq.s32.totalorder %v220_v59, 1  ;;  %v355_v1 = vld [vmem:[%s810_s8] sm:$0xff] }
   0x9   :  { %vm724_vm4 = vmpackc.low %vm56_vm3, %vm56_vm3  ;;  %v257_v5 = vld [vmem:[%s811_s6] sm:$0xff] }
   0xa   :  { %165 = vperm.xlu0 %608, %v157_v10   ;;  %vm573_vm10 = vmpackc.low %vm221_vm9, %vm221_vm9  ;;  %554 = vmatprep.mubr.msk.f32.mxu1 %vm259_vm11, %v257_v5  ;;  %v388_v10 = vld [vmem:[%s812_s9 + $0x8] sm:$0xff] }
   0xb   :  { %vm589_vm14 = vmpackc.low %vm741_vm6, %vm741_vm6 }
  0x74   :  { %v40_v9 = vpop.permute.xlu0 %39 }
  0x75   :  { %43 = vst.msk [vmem:[#allocation2] sm:$0xff] %vm42_vm1, %v40_v9  ;;  %v387_v9 = vld [vmem:[%s812_s9] sm:$0xff] }
  0x78   :  { %v46_v13 = vpop.permute.xlu0 %45 }
  0x79   :  { %48 = vst.msk [vmem:[#allocation2 + $0x8] sm:$0xff] %vm42_vm1, %v46_v13  ;;  %vm475_vm1 = vcmask 261120  }
  0x7c   :  { %v50_v15 = vld [vmem:[#allocation2] sm:$0xff] }
  0x7d   :  { %68 = vrot.lane.b32.xlu1 %v50_v15, %s634_s0 }
  0x80   :  { %v58_v17 = vld [vmem:[#allocation2 + $0x8] sm:$0xff] }
  0x81   :  { %v562_v19 = vpack.c.bf16 %v58_v17, %v50_v15  ;;  %160 = vperm.xlu1 %607, %v156_v16   ;;  %v243_v15 = vsel %vm242_vm13, 1, %v632_v2 }
  0x83   :  { %564 = vmatprep.subr.msk.bf16.mxu0 %vm724_vm4, %v562_v19 }
  0x84   :  { %567 = vmatpush3.bf16.msk.msra.mxu0 %vm724_vm4, %v562_v19 }
  0x85   :  { %569 = vmatprep.subr.bf16.mxu0 %v568_v4  ;;  %174 = vperm.xlu1 %607, %v170_v20   ;;  %v247_v20 = vrot.slane %v243_v15, %v717_v11  ;;  %v258_v11 = vld [vmem:[%s811_s6 + $0x8] sm:$0xff] }
  0x87   :  { %vm248_vm15 = vcmp.eq.s32.totalorder %v247_v20, 1 }
  0x88   :  { %571 = vmatpush3.bf16.msra.mxu0 %v568_v4  ;;  %v342_v4 = vld [vmem:[%s809_s7 + $0x8] sm:$0xff] }
  0x89   :  { %179 = vperm.xlu1 %607, %v171_v21   ;;  %v166_v29 = vpop.permute.xlu0 %165 }
  0xef   :  { %v69_v25 = vpop.permute.xlu1 %68 }
  0xf0   :  { %529 = vmatprep.subr.msk.mxu0 %vm741_vm6, %v69_v25 }
  0xf1   :  { %530 = vmatpush3.msk.msra.mxu0 %vm741_vm6, %v69_v25 }
  0xf2   :  { %532 = vmatmul.mubr.msk.f32.vlgmr.msra.gmra.mrb[0].mxu0 %vm74_vm0, %v73_v26  ;;  %557 = vmatprep.subr.mxu0 %v390_v8  ;;  %vm595_vm0 = vmpackc.low %vm248_vm15, %vm248_vm15 }
  0xf3   :  { %559 = vmatprep.mubr.msk.f32.mxu0 %vm391_vm12, %v387_v9  ;;  %558 = vmatpush3.msra.mxu0 %v390_v8 }
  0xf6   :  { %560 = vmatmul.mubr.msk.f32.vlgmr.msra.gmra.mrb[2].mxu0 %vm391_vm12, %v388_v10 }
 0x100   :  { %v161_v27 = vpop.permute.xlu1 %160 }
 0x104   :  { %v175_v28 = vpop.permute.xlu1 %174 }
 0x108   :  { %v180_v33 = vpop.permute.xlu1 %179 }
 0x1c5   :  { %v533_v30 = vpop.f32.mrb[0].mxu0 }
 0x1c6   :  { %v169_v31 = vmul.f32 %v533_v30, %v166_v29  ;;  %v147_v32 = vpop.f32.mrb[1].mxu0 }
 0x1c7   :  { %v168_v34 = vmul.f32 %v161_v27, %v147_v32 }
 0x1c8   :  { %v183_v35 = vadd.f32 %v180_v33, %v169_v31 }
 0x1c9   :  { %v182_v36 = vadd.f32 %v175_v28, %v168_v34  ;;  %v561_v18 = vpop.f32.mrb[2].mxu0 }
 0x1ca   :  { %v187_v37 = vmul.f32 %v183_v35, %v183_v35  ;;  %v185_v49 = vmul.f32 0.5, %v183_v35  ;;  %v464_v24 = vpop.f32.mrb[3].mxu0 }
 0x1cb   :  { %v186_v38 = vmul.f32 %v182_v36, %v182_v36  ;;  %v184_v51 = vmul.f32 0.5, %v182_v36 }
 0x1cc   :  { %v189_v39 = vmul.f32 %v187_v37, %v183_v35 }
 0x1cd   :  { %v188_v40 = vmul.f32 %v186_v38, %v182_v36 }
 0x1ce   :  { %v191_v41 = vmul.f32 0.044715, %v189_v39 }
 0x1cf   :  { %v190_v42 = vmul.f32 0.044715, %v188_v40 }
 0x1d0   :  { %v193_v43 = vadd.f32 %v191_v41, %v183_v35 }
 0x1d1   :  { %v192_v44 = vadd.f32 %v190_v42, %v182_v36 }
 0x1d2   :  { %v195_v45 = vmul.f32 0.7978846, %v193_v43 }
 0x1d3   :  { %v194_v46 = vmul.f32 0.7978846, %v192_v44 }
 0x1d4   :  { %624 = vtanh.f32 %v195_v45 }
 0x1d5   :  { %626 = vtanh.f32 %v194_v46 }
 0x1de   :  { %v625_v47 = vpop.eup %624 }
 0x1df   :  { %v627_v48 = vpop.eup %626  ;;  %v199_v50 = vadd.f32 1.0, %v625_v47 }
 0x1e0   :  { %v198_v52 = vadd.f32 1.0, %v627_v48 }
 0x1e1   :  { %v201_v53 = vmul.f32 %v199_v50, %v185_v49 }
 0x1e2   :  { %v200_v54 = vmul.f32 %v198_v52, %v184_v51 }
 0x1e3   :  { %206 = vrot.lane.b32.xlu1 %v201_v53, %s635_s3 }
 0x1e4   :  { %204 = vrot.lane.b32.xlu0 %v200_v54, %s635_s3  ;;  %v753_v55 = vpack.c.bf16 %v201_v53, %v200_v54 }
 0x255   :  { %v207_v56 = vpop.permute.xlu1 %206 }
 0x256   :  { %212 = vst.msk [vmem:[#allocation3 + $0x8] sm:$0xff] %vm210_vm8, %v207_v56  ;;  %v205_v58 = vpop.permute.xlu0 %204 }
 0x257   :  { %211 = vst.msk [vmem:[#allocation3] sm:$0xff] %vm210_vm8, %v205_v58 }
 0x25d   :  { %v215_v60 = vld [vmem:[#allocation3 + $0x8] sm:$0xff] }
 0x25e   :  { %v214_v61 = vld [vmem:[#allocation3] sm:$0xff] }
 0x25f   :  { %v614_v62 = vpack.i.bf16 %v215_v60, %v214_v61  ;;  %v572_v63 = vpack.c.bf16 %v215_v60, %v214_v61 }
 0x261   :  { %615 = vrot.lane.b32.xlu1 %v614_v62, %s636_s5  ;;  %610 = vrot.lane.b32.xlu0 %v614_v62, %s637_s29 }
 0x262   :  { %574 = vmatprep.subr.msk.bf16.mxu1 %vm573_vm10, %v572_v63 }
 0x263   :  { %577 = vmatpush3.bf16.msk.msra.mxu1 %vm573_vm10, %v572_v63 }
 0x265   :  { %345 = vperm.xlu1 %607, %v341_v0   ;;  %620 = vrot.lane.b32.xlu0 %v614_v62, %s638_s12 }
 0x269   :  { %359 = vperm.xlu1 %607, %v355_v1   ;;  %350 = vperm.xlu0 %608, %v342_v4  }
 0x26d   :  { %364 = vperm.xlu0 %608, %v356_v7  }
 0x2d3   :  { %v611_v12 = vpop.permute.xlu0 %610  ;;  %v616_v3 = vpop.permute.xlu1 %615 }
 0x2d4   :  { %v613_v13 = vunpack.i.h.bf16 %v611_v12  ;;  %v612_v14 = vunpack.i.l.bf16 %v611_v12  ;;  %v618_v17 = vunpack.i.h.bf16 %v616_v3  ;;  %v617_v19 = vunpack.i.l.bf16 %v616_v3 }
 0x2d6   :  { %v578_v16 = vpack.c.bf16 %v613_v13, %v612_v14  ;;  %v588_v6 = vpack.c.bf16 %v618_v17, %v617_v19 }
 0x2d7   :  { %v621_v21 = vpop.permute.xlu0 %620 }
 0x2d8   :  { %580 = vmatprep.subr.msk.bf16.mxu1 %vm724_vm4, %v578_v16  ;;  %v623_v2 = vunpack.i.h.bf16 %v621_v21  ;;  %v622_v22 = vunpack.i.l.bf16 %v621_v21 }
 0x2d9   :  { %583 = vmatpush3.bf16.msk.msra.mxu1 %vm724_vm4, %v578_v16 }
 0x2da   :  { %585 = vmatprep.subr.bf16.mxu1 %v753_v55  ;;  %v594_v23 = vpack.c.bf16 %v623_v2, %v622_v22 }
 0x2dd   :  { %587 = vmatpush3.bf16.msra.mxu1 %v753_v55 }
 0x2de   :  { %590 = vmatprep.subr.msk.bf16.mxu1 %vm589_vm14, %v588_v6 }
 0x2e1   :  { %593 = vmatpush3.bf16.msk.msra.mxu1 %vm589_vm14, %v588_v6 }
 0x2e2   :  { %596 = vmatprep.subr.msk.bf16.mxu1 %vm595_vm0, %v594_v23 }
 0x2e4   :  { %v346_v26 = vpop.permute.xlu1 %345 }
 0x2e5   :  { %599 = vmatpush3.bf16.msk.msra.mxu1 %vm595_vm0, %v594_v23 }
 0x2e8   :  { %555 = vmatmul.mubr.msk.f32.vlgmr.msra.gmra.mrb[0].mxu1 %vm259_vm11, %v258_v11  ;;  %v351_v25 = vpop.permute.xlu0 %350  ;;  %v360_v32 = vpop.permute.xlu1 %359 }
 0x2ec   :  { %v365_v30 = vpop.permute.xlu0 %364 }
 0x3bb   :  { %v556_v27 = vpop.f32.mrb[0].mxu1 }
 0x3bc   :  { %v354_v28 = vmul.f32 %v556_v27, %v351_v25  ;;  %v332_v29 = vpop.f32.mrb[1].mxu1 }
 0x3bd   :  { %v353_v31 = vmul.f32 %v346_v26, %v332_v29 }
 0x3be   :  { %v368_v33 = vadd.f32 %v365_v30, %v354_v28 }
 0x3bf   :  { %v367_v34 = vadd.f32 %v360_v32, %v353_v31 }
 0x3c0   :  { %v372_v35 = vmul.f32 %v368_v33, %v368_v33  ;;  %v370_v47 = vmul.f32 0.5, %v368_v33 }
 0x3c1   :  { %v371_v36 = vmul.f32 %v367_v34, %v367_v34  ;;  %v369_v49 = vmul.f32 0.5, %v367_v34 }
 0x3c2   :  { %v374_v37 = vmul.f32 %v372_v35, %v368_v33 }
 0x3c3   :  { %v373_v38 = vmul.f32 %v371_v36, %v367_v34 }
 0x3c4   :  { %v376_v39 = vmul.f32 0.044715, %v374_v37 }
 0x3c5   :  { %v375_v40 = vmul.f32 0.044715, %v373_v38 }
 0x3c6   :  { %v378_v41 = vadd.f32 %v376_v39, %v368_v33 }
 0x3c7   :  { %v377_v42 = vadd.f32 %v375_v40, %v367_v34 }
 0x3c8   :  { %v380_v43 = vmul.f32 0.7978846, %v378_v41 }
 0x3c9   :  { %v379_v44 = vmul.f32 0.7978846, %v377_v42 }
 0x3ca   :  { %628 = vtanh.f32 %v380_v43 }
 0x3cb   :  { %630 = vtanh.f32 %v379_v44 }
 0x3d4   :  { %v629_v45 = vpop.eup %628 }
 0x3d5   :  { %v631_v46 = vpop.eup %630  ;;  %v384_v48 = vadd.f32 1.0, %v629_v45 }
 0x3d6   :  { %v383_v50 = vadd.f32 1.0, %v631_v46 }
 0x3d7   :  { %v386_v51 = vmul.f32 %v384_v48, %v370_v47 }
 0x3d8   :  { %v385_v52 = vmul.f32 %v383_v50, %v369_v49 }
 0x3d9   :  { %v474_v53 = vadd.f32 %v561_v18, %v386_v51 }
 0x3da   :  { %v473_v54 = vadd.f32 %v464_v24, %v385_v52 }
 0x3db   :  { %477 = vst.msk [vmem:[%s813_s10 + $0x8] sm:$0xff] %vm475_vm1, %v474_v53 }
 0x3dc   :  { %476 = vst.msk [vmem:[%s813_s10] sm:$0xff] %vm475_vm1, %v473_v54 }

// kernel: ecg_encoder_forward.4
= control target key start
LH: loop header
LB: loop body
LE: loop exit
PB: predicated region body
PF: predicated region fallthrough
CT: control target
= control target key end

     0   :  { %v473_v2 = vmov 0   ;;  %s474_s17 = smov 1   ;;  %v475_v4 = vmov 0.0|0.0   ;;  %v52_v6 = vlaneseq  ;;  %vm476_vm0 = vmmov 0   ;;  %s480_s22 = smov 125   ;;  %s622_s1 = inlined_call_operand.vmem [shape: f32[8,64], index: 1, kind: input, shape index: {}]   ;;  %s623_s2 = inlined_call_operand.vmem [shape: f32[8,64], index: 2, kind: input, shape index: {}]   ;;  %s624_s0 = inlined_call_operand.vmem [shape: s32[1,64], index: 0, kind: input, shape index: {}]   ;;  %s625_s5 = inlined_call_operand.vmem [shape: f32[8,1], index: 5, kind: input, shape index: {}]   ;;  %s626_s4 = inlined_call_operand.vmem [shape: f32[8,1], index: 4, kind: input, shape index: {}]   ;;  %s627_s3 = inlined_call_operand.vmem [shape: f32[8,40], index: 3, kind: input, shape index: {}]   ;;  %s628_s7 = inlined_call_operand.vmem [shape: f32[8,1], index: 7, kind: input, shape index: {}]   ;;  %s629_s8 = inlined_call_operand.vmem [shape: f32[8,1], index: 8, kind: input, shape index: {}]   ;;  %s630_s9 = inlined_call_operand.vmem [shape: f32[8,8], index: 9, kind: input, shape index: {}]   ;;  %s631_s6 = inlined_call_operand.vmem [shape: f32[8,40], index: 6, kind: input, shape index: {}]   ;;  %s632_s10 = inlined_call_operand.vmem [shape: f32[8,64], index: 10, kind: output, shape index: {}]  }
   0x1   :  { %v36_v0 = vld [vmem:[%s622_s1] sm:$0xff]  ;;  %467 = vset.pattern.permute.xlu1 %v473_v2  ;;  %468 = vset.pattern.permute.xlu0 %v473_v2  ;;  %v477_v8 = vmov 0.0   ;;  %vm42_vm1 = vcmask 531464   ;;  %vm73_vm7 = vcmask 326656   ;;  %vm174_vm8 = vcmask 539664   ;;  %s481_s23 = smov 127  }
   0x2   :  { %v37_v1 = vld [vmem:[%s623_s2] sm:$0xff]  ;;  %39 = vrot.lane.b32.xlu0 %v36_v0, %s474_s17  ;;  %441 = vmatprep.subr.bf16.mxu0 %v475_v4  ;;  %v53_v9 = vshrl.u32 %v52_v6, 7  ;;  %s482_s26 = smov 124   ;;  %vm305_vm9 = vcmask 64512   ;;  %vm483_vm14 = vmmov 1  }
   0x3   :  { %v303_v3 = vadd.f32 %v37_v1, %v36_v0  ;;  %448 = vmatprep.subr.bf16.mxu1 %v475_v4  ;;  %v446_v5 = vpack.c.bf16 %v37_v1, %v36_v0  ;;  %v552_v7 = vld [vmem:[%s624_s0] sm:$0x1]  ;;  %420 = vmatprep.mubr.msk.f32.mxu0 %vm476_vm0, %v477_v8  ;;  %s478_s0 = smov 126  }
   0x4   :  { %433 = vmatprep.mubr.msk.f32.mxu1 %vm476_vm0, %v477_v8  ;;  %v154_v10 = vld [vmem:[%s625_s5] sm:$0xff]  ;;  %vm49_vm2 = vcmp.ge.s32.totalorder %v552_v7, 1  ;;  %v562_v12 = vsub.s32 0, %v53_v9  ;;  %vm60_vm5 = vcmp.lt.s32.totalorder %v552_v7, 31  ;;  %vm176_vm10 = vcmp.ge.s32.totalorder %v552_v7, 2 }
   0x5   :  { %v51_v13 = vsel %vm49_vm2, 1, %v473_v2  ;;  %v147_v18 = vld [vmem:[%s626_s4] sm:$0xff]  ;;  %v61_v21 = vsel %vm60_vm5, 1, %v473_v2  ;;  %v304_v24 = vmul.f32 0.5, %v303_v3  ;;  %v178_v47 = vsel %vm176_vm10, 1, %v473_v2 }
   0x6   :  { %45 = vrot.lane.b32.xlu0 %v37_v1, %s474_s17  ;;  %v55_v15 = vrot.slane %v51_v13, %v562_v12  ;;  %v65_v22 = vrot.slane %v61_v21, %v562_v12  ;;  %v72_v25 = vld [vmem:[%s627_s3] sm:$0xff]  ;;  %s479_s3 = smov 2   ;;  %v182_v48 = vrot.slane %v178_v47, %v562_v12  ;;  %vm194_vm12 = vcmp.lt.s32.totalorder %v552_v7, 30 }
   0x7   :  { %v279_v44 = vld [vmem:[%s628_s7] sm:$0xff]  ;;  %v195_v51 = vsel %vm194_vm12, 1, %v473_v2 }
   0x8   :  { %vm566_vm3 = vcmp.eq.s32.totalorder %v55_v15, 1  ;;  %vm581_vm6 = vcmp.eq.s32.totalorder %v65_v22, 1  ;;  %v286_v45 = vld [vmem:[%s629_s8] sm:$0xff]  ;;  %vm183_vm11 = vcmp.eq.s32.totalorder %v182_v48, 1  ;;  %v199_v53 = vrot.slane %v195_v51, %v562_v12 }
   0x9   :  { %vm443_vm4 = vmpackc.low %vm566_vm3, %vm566_vm3  ;;  %v302_v46 = vld [vmem:[%s630_s9] sm:$0xff] }
   0xa   :  { %157 = vperm.xlu0 %468, %v154_v10   ;;  %vm450_vm13 = vmpackc.low %vm566_vm3, %vm183_vm11  ;;  %v205_v55 = vld [vmem:[%s631_s6] sm:$0xff] }
   0xb   :  { %vm454_vm15 = vmpackc.low %vm581_vm6, %vm483_vm14 }
  0x74   :  { %v40_v11 = vpop.permute.xlu0 %39 }
  0x75   :  { %43 = vst.msk [vmem:[#allocation2] sm:$0xff] %vm42_vm1, %v40_v11 }
  0x78   :  { %v46_v14 = vpop.permute.xlu0 %45 }
  0x79   :  { %48 = vst.msk [vmem:[#allocation2 + $0x8] sm:$0xff] %vm42_vm1, %v46_v14  ;;  %vm380_vm1 = vcmask 523264  }
  0x7c   :  { %v50_v16 = vld [vmem:[#allocation2] sm:$0xff] }
  0x7d   :  { %68 = vrot.lane.b32.xlu1 %v50_v16, %s478_s0 }
  0x80   :  { %v58_v19 = vld [vmem:[#allocation2 + $0x8] sm:$0xff] }
  0x81   :  { %v442_v20 = vpack.c.bf16 %v58_v19, %v50_v16  ;;  %150 = vperm.xlu1 %467, %v147_v18  }
  0x83   :  { %444 = vmatpush3.bf16.msk.msra.mxu0 %vm443_vm4, %v442_v20 }
  0x84   :  { %445 = vmatprep.subr.bf16.mxu0 %v475_v4 }
  0x87   :  { %447 = vmatpush3.bf16.msra.mxu0 %v446_v5 }
  0x88   :  { %418 = vmatprep.subr.mxu0 %v477_v8 }
  0x89   :  { %v158_v29 = vpop.permute.xlu0 %157 }
  0xef   :  { %v69_v26 = vpop.permute.xlu1 %68 }
  0xf0   :  { %419 = vmatpush3.msk.msra.mxu0 %vm581_vm6, %v69_v26 }
  0xf1   :  { %421 = vmatmul.mubr.msk.f32.vlgmr.msra.gmra.mrb[0].mxu0 %vm73_vm7, %v72_v25  ;;  %436 = vmatprep.subr.mxu0 %v477_v8 }
  0xf2   :  { %437 = vmatpush3.msra.mxu0 %v304_v24  ;;  %438 = vmatprep.mubr.msk.f32.mxu0 %vm476_vm0, %v477_v8  ;;  %vm200_vm0 = vcmp.eq.s32.totalorder %v199_v53, 1 }
  0xf5   :  { %439 = vmatmul.mubr.msk.f32.vlgmr.msra.gmra.mrb[2].mxu0 %vm305_vm9, %v302_v46 }
 0x100   :  { %v151_v27 = vpop.permute.xlu1 %150 }
 0x1c4   :  { %v143_v28 = vpop.f32.mrb[0].mxu0 }
 0x1c5   :  { %v153_v30 = vmul.f32 %v151_v27, %v143_v28  ;;  %v422_v31 = vpop.f32.mrb[1].mxu0 }
 0x1c7   :  { %v160_v32 = vadd.f32 %v158_v29, %v153_v30 }
 0x1c8   :  { %v375_v57 = vpop.f32.mrb[2].mxu0 }
 0x1c9   :  { %v162_v33 = vmul.f32 %v160_v32, %v160_v32  ;;  %v161_v39 = vmul.f32 0.5, %v160_v32  ;;  %v440_v58 = vpop.f32.mrb[3].mxu0 }
 0x1cb   :  { %v163_v34 = vmul.f32 %v162_v33, %v160_v32 }
 0x1cd   :  { %v164_v35 = vmul.f32 0.044715, %v163_v34 }
 0x1cf   :  { %v165_v36 = vadd.f32 %v164_v35, %v160_v32 }
 0x1d1   :  { %v166_v37 = vmul.f32 0.7978846, %v165_v36 }
 0x1d3   :  { %469 = vtanh.f32 %v166_v37 }
 0x1dd   :  { %v470_v38 = vpop.eup %469 }
 0x1de   :  { %v168_v40 = vadd.f32 1.0, %v470_v38 }
 0x1e0   :  { %v169_v41 = vmul.f32 %v168_v40, %v161_v39 }
 0x1e2   :  { %171 = vrot.lane.b32.xlu1 %v169_v41, %s479_s3 }
 0x254   :  { %v172_v42 = vpop.permute.xlu1 %171 }
 0x255   :  { %175 = vst.msk [vmem:[#allocation3] sm:$0xff] %vm174_vm8, %v172_v42 }
 0x25c   :  { %v177_v43 = vld [vmem:[#allocation3] sm:$0xff] }
 0x25d   :  { %190 = vrot.lane.b32.xlu0 %v177_v43, %s480_s22  ;;  %186 = vrot.lane.b32.xlu1 %v177_v43, %s481_s23 }
 0x261   :  { %282 = vperm.xlu0 %468, %v279_v44   ;;  %201 = vrot.lane.b32.xlu1 %v177_v43, %s482_s26 }
 0x265   :  { %289 = vperm.xlu1 %467, %v286_v45  }
 0x2cf   :  { %v187_v49 = vpop.permute.xlu1 %186  ;;  %v191_v52 = vpop.permute.xlu0 %190 }
 0x2d0   :  { %v449_v50 = vpack.c.bf16 %v187_v49, %v177_v43  ;;  %v453_v54 = vpack.c.bf16 %v191_v52, %v169_v41 }
 0x2d2   :  { %451 = vmatpush3.bf16.msk.msra.mxu1 %vm450_vm13, %v449_v50 }
 0x2d3   :  { %452 = vmatprep.subr.bf16.mxu1 %v475_v4  ;;  %v202_v56 = vpop.permute.xlu1 %201 }
 0x2d6   :  { %455 = vmatpush3.bf16.msk.msra.mxu1 %vm454_vm15, %v453_v54 }
 0x2d7   :  { %431 = vmatprep.subr.mxu1 %v477_v8 }
 0x2da   :  { %432 = vmatpush3.msk.msra.mxu1 %vm200_vm0, %v202_v56 }
 0x2db   :  { %434 = vmatmul.mubr.msk.f32.vlgmr.msra.gmra.mrb[0].mxu1 %vm73_vm7, %v205_v55 }
 0x2e0   :  { %v283_v59 = vpop.permute.xlu0 %282 }
 0x2e4   :  { %v290_v63 = vpop.permute.xlu1 %289 }
 0x3ae   :  { %v275_v60 = vpop.f32.mrb[0].mxu1 }
 0x3af   :  { %v285_v61 = vmul.f32 %v283_v59, %v275_v60  ;;  %v435_v62 = vpop.f32.mrb[1].mxu1 }
 0x3b1   :  { %v292_v0 = vadd.f32 %v290_v63, %v285_v61 }
 0x3b3   :  { %v294_v1 = vmul.f32 %v292_v0, %v292_v0  ;;  %v293_v7 = vmul.f32 0.5, %v292_v0 }
 0x3b5   :  { %v295_v2 = vmul.f32 %v294_v1, %v292_v0 }
 0x3b7   :  { %v296_v3 = vmul.f32 0.044715, %v295_v2 }
 0x3b9   :  { %v297_v4 = vadd.f32 %v296_v3, %v292_v0 }
 0x3bb   :  { %v298_v5 = vmul.f32 0.7978846, %v297_v4 }
 0x3bd   :  { %471 = vtanh.f32 %v298_v5 }
 0x3c7   :  { %v472_v6 = vpop.eup %471 }
 0x3c8   :  { %v300_v8 = vadd.f32 1.0, %v472_v6 }
 0x3ca   :  { %v301_v9 = vmul.f32 %v300_v8, %v293_v7 }
 0x3cc   :  { %v379_v10 = vadd.f32 %v375_v57, %v301_v9 }
 0x3ce   :  { %381 = vst.msk [vmem:[%s632_s10] sm:$0xff] %vm380_vm1, %v379_v10 }

// kernel: ecg_encoder_forward.6
= control target key start
LH: loop header
LB: loop body
LE: loop exit
PB: predicated region body
PF: predicated region fallthrough
CT: control target
= control target key end

     0   :  { %v917_v2 = vmov 0   ;;  %s918_s17 = smov 1   ;;  %v65_v6 = vlaneseq  ;;  %vm48_vm0 = vcmask 138248   ;;  %vm97_vm2 = vcmask 654336   ;;  %s1233_s1 = inlined_call_operand.vmem [shape: f32[16,16], index: 1, kind: input, shape index: {}]   ;;  %s1234_s2 = inlined_call_operand.vmem [shape: f32[16,16], index: 2, kind: input, shape index: {}]   ;;  %s1235_s0 = inlined_call_operand.vmem [shape: s32[1,16], index: 0, kind: input, shape index: {}]   ;;  %s1236_s3 = inlined_call_operand.vmem [shape: f32[32,80], index: 3, kind: input, shape index: {}]   ;;  %s1237_s4 = inlined_call_operand.vmem [shape: f32[32,1], index: 4, kind: input, shape index: {}]   ;;  %s1238_s5 = inlined_call_operand.vmem [shape: f32[32,1], index: 5, kind: input, shape index: {}]   ;;  %s1239_s7 = inlined_call_operand.vmem [shape: f32[32,1], index: 7, kind: input, shape index: {}]   ;;  %s1240_s8 = inlined_call_operand.vmem [shape: f32[32,1], index: 8, kind: input, shape index: {}]   ;;  %s1241_s6 = inlined_call_operand.vmem [shape: f32[32,160], index: 6, kind: input, shape index: {}]   ;;  %s1242_s9 = inlined_call_operand.vmem [shape: f32[32,16], index: 9, kind: input, shape index: {}]   ;;  %s1243_s10 = inlined_call_operand.vmem [shape: f32[32,16], index: 10, kind: output, shape index: {}]  }
   0x1   :  { %v983_v0 = vld [vmem:[%s1233_s1] sm:$0xff]  ;;  %869 = vset.pattern.permute.xlu1 %v917_v2  ;;  %870 = vset.pattern.permute.xlu0 %v917_v2  ;;  %v997_v3 = vld [vmem:[%s1233_s1 + $0x8] sm:$0xff]  ;;  %v197_v28 = vld [vmem:[%s1237_s4 + $0x10] sm:$0xff]  ;;  %vm303_vm9 = vcmask 146448   ;;  %s923_s1 = smov 125   ;;  %vm390_vm12 = vcmask 261120  }
   0x2   :  { %v988_v1 = vld [vmem:[%s1234_s2] sm:$0xff]  ;;  %42 = vrot.lane.b32.xlu0 %v983_v0, %s918_s17  ;;  %v1002_v4 = vld [vmem:[%s1234_s2 + $0x8] sm:$0xff]  ;;  %v800_v5 = vpack.c.bf16 %v997_v3, %v983_v0  ;;  %v66_v8 = vshrl.u32 %v65_v6, 7  ;;  %s919_s2 = smov 126   ;;  %v225_v31 = vld [vmem:[%s1238_s5 + $0x10] sm:$0xff]  ;;  %vm588_vm13 = vcmask 130048  }
   0x3   :  { %53 = vrot.lane.b32.xlu1 %v988_v1, %s918_s17  ;;  %v1011_v7 = vld [vmem:[%s1235_s0] sm:$0x1]  ;;  %v196_v26 = vld [vmem:[%s1237_s4 + $0x8] sm:$0xff]  ;;  %v804_v29 = vpack.c.bf16 %v1002_v4, %v988_v1  ;;  %v198_v32 = vld [vmem:[%s1237_s4 + $0x18] sm:$0xff]  ;;  %s922_s0 = smov 127  }
   0x4   :  { %vm61_vm1 = vcmp.ge.s32.totalorder %v1011_v7, 1  ;;  %v1014_v10 = vsub.s32 0, %v66_v8  ;;  %v93_v16 = vld [vmem:[%s1236_s3] sm:$0xff]  ;;  %v224_v30 = vld [vmem:[%s1238_s5 + $0x8] sm:$0xff]  ;;  %v226_v33 = vld [vmem:[%s1238_s5 + $0x18] sm:$0xff]  ;;  %vm76_vm5 = vcmp.lt.s32.totalorder %v1011_v7, 7 }
   0x5   :  { %v64_v12 = vsel %vm61_vm1, 1, %v917_v2  ;;  %772 = vmatprep.mubr.msk.f32.mxu0 %vm97_vm2, %v93_v16  ;;  %v195_v25 = vld [vmem:[%s1237_s4] sm:$0xff]  ;;  %v77_v34 = vsel %vm76_vm5, 1, %v917_v2  ;;  %v94_v41 = vld [vmem:[%s1236_s3 + $0x8] sm:$0xff]  ;;  %v95_v42 = vld [vmem:[%s1236_s3 + $0x10] sm:$0xff]  ;;  %vm308_vm8 = vcmp.ge.s32.totalorder %v1011_v7, 2 }
   0x6   :  { %44 = vrot.lane.b32.xlu0 %v997_v3, %s918_s17  ;;  %v68_v14 = vrot.slane %v64_v12, %v1014_v10  ;;  %v223_v27 = vld [vmem:[%s1238_s5] sm:$0xff]  ;;  %v81_v35 = vrot.slane %v77_v34, %v1014_v10  ;;  %v96_v43 = vld [vmem:[%s1236_s3 + $0x18] sm:$0xff]  ;;  %s921_s3 = smov 2   ;;  %vm359_vm14 = vcmp.lt.s32.totalorder %v1011_v7, 6 }
   0x7   :  { %55 = vrot.lane.b32.xlu1 %v1002_v4, %s918_s17  ;;  %v385_v39 = vld [vmem:[%s1241_s6 + $0x18] sm:$0xff] }
   0x8   :  { %vm69_vm3 = vcmp.eq.s32.totalorder %v68_v14, 1  ;;  %vm82_vm6 = vcmp.eq.s32.totalorder %v81_v35, 1 }
   0x9   :  { %vm1022_vm4 = vmpackc.low %vm69_vm3, %vm69_vm3 }
   0xa   :  { %vm1063_vm7 = vmpackc.low %vm82_vm6, %vm82_vm6 }
   0xb   :  { %201 = vperm.xlu1 %869, %v195_v25  }
   0xf   :  { %229 = vperm.xlu1 %869, %v223_v27  }
  0x13   :  { %234 = vperm.xlu1 %869, %v224_v30  }
  0x17   :  { %216 = vperm.xlu1 %869, %v198_v32  }
  0x1b   :  { %244 = vperm.xlu1 %869, %v226_v33  }
  0x74   :  { %v43_v9 = vpop.permute.xlu0 %42 }
  0x75   :  { %v54_v11 = vpop.permute.xlu1 %53  ;;  %49 = vst.msk [vmem:[#allocation2] sm:$0xff] %vm48_vm0, %v43_v9 }
  0x76   :  { %59 = vst.msk [vmem:[#allocation2 + $0x10] sm:$0xff] %vm48_vm0, %v54_v11 }
  0x78   :  { %v45_v13 = vpop.permute.xlu0 %44 }
  0x79   :  { %v56_v15 = vpop.permute.xlu1 %55  ;;  %50 = vst.msk [vmem:[#allocation2 + $0x8] sm:$0xff] %vm48_vm0, %v45_v13 }
  0x7a   :  { %60 = vst.msk [vmem:[#allocation2 + $0x18] sm:$0xff] %vm48_vm0, %v56_v15 }
  0x7c   :  { %v62_v19 = vld [vmem:[#allocation2] sm:$0xff] }
  0x7d   :  { %v72_v17 = vld [vmem:[#allocation2 + $0x10] sm:$0xff] }
  0x80   :  { %v63_v20 = vld [vmem:[#allocation2 + $0x8] sm:$0xff] }
  0x81   :  { %v73_v21 = vld [vmem:[#allocation2 + $0x18] sm:$0xff]  ;;  %v864_v22 = vpack.i.bf16 %v63_v20, %v62_v19  ;;  %v788_v23 = vpack.c.bf16 %v63_v20, %v62_v19 }
  0x82   :  { %v794_v24 = vpack.c.bf16 %v73_v21, %v72_v17 }
  0x83   :  { %865 = vrot.lane.b32.xlu0 %v864_v22, %s919_s2  ;;  %790 = vmatprep.subr.msk.bf16.mxu0 %vm1022_vm4, %v788_v23  ;;  %s924_s2 = smov 124  }
  0x84   :  { %793 = vmatpush3.bf16.msk.msra.mxu0 %vm1022_vm4, %v788_v23 }
  0x85   :  { %796 = vmatprep.subr.msk.bf16.mxu0 %vm1022_vm4, %v794_v24 }
  0x87   :  { %206 = vperm.xlu0 %870, %v196_v26  }
  0x88   :  { %799 = vmatpush3.bf16.msk.msra.mxu0 %vm1022_vm4, %v794_v24 }
  0x89   :  { %801 = vmatprep.subr.bf16.mxu0 %v800_v5 }
  0x8a   :  { %v202_v44 = vpop.permute.xlu1 %201 }
  0x8b   :  { %211 = vperm.xlu0 %870, %v197_v28   ;;  %v920_v28 = vmov 0.0|0.0  }
  0x8c   :  { %803 = vmatpush3.bf16.msra.mxu0 %v800_v5  ;;  %814 = vmatprep.subr.bf16.mxu1 %v920_v28 }
  0x8d   :  { %805 = vmatprep.subr.bf16.mxu0 %v804_v29 }
  0x8e   :  { %v230_v45 = vpop.permute.xlu1 %229 }
  0x8f   :  { %239 = vperm.xlu0 %870, %v225_v31  }
  0x90   :  { %807 = vmatpush3.bf16.msra.mxu0 %v804_v29 }
  0x92   :  { %v235_v46 = vpop.permute.xlu1 %234 }
  0x96   :  { %v217_v48 = vpop.permute.xlu1 %216 }
  0x9a   :  { %v245_v60 = vpop.permute.xlu1 %244 }
  0xf5   :  { %v866_v36 = vpop.permute.xlu0 %865 }
  0xf6   :  { %v868_v37 = vunpack.i.h.bf16 %v866_v36  ;;  %v867_v38 = vunpack.i.l.bf16 %v866_v36 }
  0xf8   :  { %v808_v40 = vpack.c.bf16 %v868_v37, %v867_v38 }
  0xfa   :  { %810 = vmatprep.subr.msk.bf16.mxu0 %vm1063_vm7, %v808_v40 }
  0xfb   :  { %813 = vmatpush3.bf16.msk.msra.mxu0 %vm1063_vm7, %v808_v40 }
  0xfe   :  { %773 = vmatmul.mubr.msk.f32.vlgmr.msra.gmra.mrb[0].mxu0 %vm97_vm2, %v94_v41 }
  0xff   :  { %775 = vmatprep.mubr.msk.f32.mxu0 %vm97_vm2, %v95_v42 }
 0x102   :  { %776 = vmatmul.mubr.msk.f32.gmra.mrb[2].mxu0 %vm97_vm2, %v96_v43 }
 0x106   :  { %v207_v47 = vpop.permute.xlu0 %206 }
 0x10a   :  { %v212_v50 = vpop.permute.xlu0 %211 }
 0x10e   :  { %v240_v63 = vpop.permute.xlu0 %239 }
 0x1d1   :  { %v774_v49 = vpop.f32.mrb[0].mxu0 }
 0x1d2   :  { %v220_v51 = vmul.f32 %v774_v49, %v207_v47  ;;  %v176_v52 = vpop.f32.mrb[1].mxu0 }
 0x1d3   :  { %v219_v53 = vmul.f32 %v202_v44, %v176_v52 }
 0x1d4   :  { %v248_v54 = vadd.f32 %v235_v46, %v220_v51 }
 0x1d5   :  { %v247_v55 = vadd.f32 %v230_v45, %v219_v53  ;;  %v777_v56 = vpop.f32.mrb[2].mxu0 }
 0x1d6   :  { %v256_v57 = vmul.f32 %v248_v54, %v248_v54  ;;  %v222_v58 = vmul.f32 %v777_v56, %v217_v48  ;;  %v186_v59 = vpop.f32.mrb[3].mxu0  ;;  %v252_v31 = vmul.f32 0.5, %v248_v54  ;;  %v313_v48 = vsel %vm308_vm8, 1, %v917_v2 }
 0x1d7   :  { %v255_v61 = vmul.f32 %v247_v55, %v247_v55  ;;  %v221_v62 = vmul.f32 %v212_v50, %v186_v59  ;;  %v251_v33 = vmul.f32 0.5, %v247_v55  ;;  %v317_v51 = vrot.slane %v313_v48, %v1014_v10  ;;  %v389_v48 = vld [vmem:[%s1241_s6 + $0x38] sm:$0xff] }
 0x1d8   :  { %v260_v5 = vmul.f32 %v256_v57, %v248_v54  ;;  %v250_v6 = vadd.f32 %v245_v60, %v222_v58 }
 0x1d9   :  { %v259_v8 = vmul.f32 %v255_v61, %v247_v55  ;;  %v249_v9 = vadd.f32 %v240_v63, %v221_v62  ;;  %vm1103_vm10 = vcmp.eq.s32.totalorder %v317_v51, 1  ;;  %v488_v63 = vld [vmem:[%s1239_s7] sm:$0xff] }
 0x1da   :  { %v264_v11 = vmul.f32 0.044715, %v260_v5  ;;  %v258_v12 = vmul.f32 %v250_v6, %v250_v6  ;;  %v254_v40 = vmul.f32 0.5, %v250_v6  ;;  %vm816_vm11 = vmpackc.low %vm1103_vm10, %vm1103_vm10  ;;  %v490_v5 = vld [vmem:[%s1239_s7 + $0x10] sm:$0xff] }
 0x1db   :  { %v263_v13 = vmul.f32 0.044715, %v259_v8  ;;  %v257_v14 = vmul.f32 %v249_v9, %v249_v9  ;;  %v253_v42 = vmul.f32 0.5, %v249_v9  ;;  %v516_v8 = vld [vmem:[%s1240_s8] sm:$0xff] }
 0x1dc   :  { %v262_v15 = vmul.f32 %v258_v12, %v250_v6  ;;  %v268_v16 = vadd.f32 %v264_v11, %v248_v54  ;;  %v383_v11 = vld [vmem:[%s1241_s6 + $0x8] sm:$0xff]  ;;  %v518_v12 = vld [vmem:[%s1240_s8 + $0x10] sm:$0xff] }
 0x1dd   :  { %v261_v17 = vmul.f32 %v257_v14, %v249_v9  ;;  %v267_v19 = vadd.f32 %v263_v13, %v247_v55  ;;  %v517_v13 = vld [vmem:[%s1240_s8 + $0x8] sm:$0xff]  ;;  %724 = vmatprep.mubr.msk.f32.mxu1 %vm390_vm12, %v383_v11  ;;  %v519_v14 = vld [vmem:[%s1240_s8 + $0x18] sm:$0xff] }
 0x1de   :  { %v266_v20 = vmul.f32 0.044715, %v262_v15  ;;  %v272_v21 = vmul.f32 0.7978846, %v268_v16  ;;  %v584_v15 = vadd.f32 %v988_v1, %v983_v0  ;;  %v585_v16 = vadd.f32 %v1002_v4, %v997_v3  ;;  %v581_v0 = vld [vmem:[%s1242_s9 + $0x8] sm:$0xff]  ;;  %v582_v1 = vld [vmem:[%s1242_s9 + $0x10] sm:$0xff] }
 0x1df   :  { %v265_v22 = vmul.f32 0.044715, %v261_v17  ;;  %v271_v23 = vmul.f32 0.7978846, %v267_v19  ;;  %v583_v3 = vld [vmem:[%s1242_s9 + $0x18] sm:$0xff] }
 0x1e0   :  { %901 = vtanh.f32 %v272_v21  ;;  %v270_v24 = vadd.f32 %v266_v20, %v250_v6  ;;  %v489_v6 = vld [vmem:[%s1239_s7 + $0x8] sm:$0xff]  ;;  %v586_v17 = vmul.f32 0.5, %v584_v15  ;;  %v587_v19 = vmul.f32 0.5, %v585_v16  ;;  %v580_v21 = vld [vmem:[%s1242_s9] sm:$0xff] }
 0x1e1   :  { %903 = vtanh.f32 %v271_v23  ;;  %v269_v25 = vadd.f32 %v265_v22, %v249_v9  ;;  %v491_v9 = vld [vmem:[%s1239_s7 + $0x18] sm:$0xff]  ;;  %782 = vmatprep.mubr.msk.f32.mxu0 %vm588_vm13, %v580_v21 }
 0x1e2   :  { %v274_v26 = vmul.f32 0.7978846, %v270_v24  ;;  %v852_v20 = vpack.c.bf16 %v587_v19, %v586_v17 }
 0x1e3   :  { %v273_v27 = vmul.f32 0.7978846, %v269_v25 }
 0x1e4   :  { %905 = vtanh.f32 %v274_v26  ;;  %853 = vmatprep.subr.bf16.mxu0 %v852_v20 }
 0x1e5   :  { %907 = vtanh.f32 %v273_v27  ;;  %855 = vmatpush3.bf16.msra.mxu0 %v852_v20 }
 0x1e8   :  { %783 = vmatmul.mubr.msk.f32.vlgmr.msra.gmra.mrb[4].mxu0 %vm588_vm13, %v581_v0 }
 0x1e9   :  { %785 = vmatprep.mubr.msk.f32.mxu0 %vm588_vm13, %v582_v1 }
 0x1ea   :  { %v902_v29 = vpop.eup %901 }
 0x1eb   :  { %v904_v30 = vpop.eup %903  ;;  %v280_v32 = vadd.f32 1.0, %v902_v29 }
 0x1ec   :  { %v279_v34 = vadd.f32 1.0, %v904_v30  ;;  %786 = vmatmul.mubr.msk.f32.gmra.mrb[6].mxu0 %vm588_vm13, %v583_v3 }
 0x1ed   :  { %v1084_v35 = vmul.f32 %v280_v32, %v252_v31 }
 0x1ee   :  { %v906_v36 = vpop.eup %905  ;;  %v1086_v37 = vmul.f32 %v279_v34, %v251_v33  ;;  %v360_v34 = vsel %vm359_vm14, 1, %v917_v2 }
 0x1ef   :  { %v908_v38 = vpop.eup %907  ;;  %293 = vrot.lane.b32.xlu1 %v1084_v35, %s921_s3  ;;  %v282_v41 = vadd.f32 1.0, %v906_v36 }
 0x1f0   :  { %291 = vrot.lane.b32.xlu0 %v1086_v37, %s921_s3  ;;  %v281_v43 = vadd.f32 1.0, %v908_v38  ;;  %v831_v44 = vpack.c.bf16 %v1084_v35, %v1086_v37  ;;  %v364_v35 = vrot.slane %v360_v34, %v1014_v10 }
 0x1f1   :  { %v1092_v45 = vmul.f32 %v282_v41, %v254_v40 }
 0x1f2   :  { %v1094_v46 = vmul.f32 %v281_v43, %v253_v42  ;;  %vm365_vm15 = vcmp.eq.s32.totalorder %v364_v35, 1 }
 0x1f3   :  { %297 = vrot.lane.b32.xlu1 %v1092_v45, %s921_s3  ;;  %vm846_vm0 = vmpackc.low %vm365_vm15, %vm365_vm15 }
 0x1f4   :  { %295 = vrot.lane.b32.xlu0 %v1094_v46, %s921_s3  ;;  %v834_v47 = vpack.c.bf16 %v1092_v45, %v1094_v46  ;;  %v382_v45 = vld [vmem:[%s1241_s6] sm:$0xff]  ;;  %v384_v46 = vld [vmem:[%s1241_s6 + $0x10] sm:$0xff] }
 0x261   :  { %v294_v49 = vpop.permute.xlu1 %293 }
 0x262   :  { %305 = vst.msk [vmem:[#allocation3 + $0x8] sm:$0xff] %vm303_vm9, %v294_v49  ;;  %v292_v50 = vpop.permute.xlu0 %291  ;;  %v388_v49 = vld [vmem:[%s1241_s6 + $0x30] sm:$0xff] }
 0x263   :  { %304 = vst.msk [vmem:[#allocation3] sm:$0xff] %vm303_vm9, %v292_v50 }
 0x265   :  { %v298_v52 = vpop.permute.xlu1 %297 }
 0x266   :  { %307 = vst.msk [vmem:[#allocation3 + $0x18] sm:$0xff] %vm303_vm9, %v298_v52  ;;  %v296_v53 = vpop.permute.xlu0 %295 }
 0x267   :  { %306 = vst.msk [vmem:[#allocation3 + $0x10] sm:$0xff] %vm303_vm9, %v296_v53 }
 0x269   :  { %v310_v55 = vld [vmem:[#allocation3 + $0x8] sm:$0xff] }
 0x26a   :  { %v309_v56 = vld [vmem:[#allocation3] sm:$0xff] }
 0x26b   :  { %v815_v57 = vpack.c.bf16 %v310_v55, %v309_v56  ;;  %v871_v58 = vpack.i.bf16 %v310_v55, %v309_v56 }
 0x26d   :  { %817 = vmatpush1.bf16.msk.msra.mxu1 %vm816_vm11, %v815_v57  ;;  %872 = vrot.lane.b32.xlu0 %v871_v58, %s922_s0  ;;  %v312_v59 = vld [vmem:[#allocation3 + $0x18] sm:$0xff] }
 0x26e   :  { %818 = vmatprep.subr.bf16.mxu1 %v920_v28  ;;  %v311_v60 = vld [vmem:[#allocation3 + $0x10] sm:$0xff] }
 0x26f   :  { %v876_v61 = vpack.i.bf16 %v312_v59, %v311_v60  ;;  %v819_v62 = vpack.c.bf16 %v312_v59, %v311_v60 }
 0x271   :  { %882 = vrot.lane.b32.xlu0 %v871_v58, %s923_s1  ;;  %877 = vrot.lane.b32.xlu1 %v876_v61, %s922_s0 }
 0x272   :  { %821 = vmatpush1.bf16.msk.msra.mxu1 %vm816_vm11, %v819_v62 }
 0x273   :  { %822 = vmatprep.subr.bf16.mxu1 %v920_v28 }
 0x275   :  { %892 = vrot.lane.b32.xlu0 %v871_v58, %s924_s2  ;;  %887 = vrot.lane.b32.xlu1 %v876_v61, %s923_s1 }
 0x279   :  { %494 = vperm.xlu0 %870, %v488_v63   ;;  %897 = vrot.lane.b32.xlu1 %v876_v61, %s924_s2 }
 0x27d   :  { %504 = vperm.xlu0 %870, %v490_v5   ;;  %499 = vperm.xlu1 %869, %v489_v6  }
 0x281   :  { %522 = vperm.xlu0 %870, %v516_v8   ;;  %509 = vperm.xlu1 %869, %v491_v9  }
 0x285   :  { %532 = vperm.xlu0 %870, %v518_v12   ;;  %527 = vperm.xlu1 %869, %v517_v13  }
 0x289   :  { %537 = vperm.xlu1 %869, %v519_v14  }
 0x2bb   :  { %v1208_v50 = vpop.f32.mrb[4].mxu0 }
 0x2bc   :  { %v667_v51 = vpop.f32.mrb[5].mxu0 }
 0x2bf   :  { %v1210_v52 = vpop.f32.mrb[6].mxu0 }
 0x2c0   :  { %v1212_v53 = vpop.f32.mrb[7].mxu0 }
 0x2df   :  { %v873_v4 = vpop.permute.xlu0 %872 }
 0x2e0   :  { %v875_v22 = vunpack.i.h.bf16 %v873_v4  ;;  %v874_v23 = vunpack.i.l.bf16 %v873_v4 }
 0x2e2   :  { %v823_v24 = vpack.c.bf16 %v875_v22, %v874_v23 }
 0x2e3   :  { %v878_v25 = vpop.permute.xlu1 %877  ;;  %v883_v30 = vpop.permute.xlu0 %882 }
 0x2e4   :  { %v880_v26 = vunpack.i.h.bf16 %v878_v25  ;;  %v879_v27 = vunpack.i.l.bf16 %v878_v25  ;;  %825 = vmatpush1.bf16.msk.msra.mxu1 %vm1022_vm4, %v823_v24  ;;  %v885_v31 = vunpack.i.h.bf16 %v883_v30  ;;  %v884_v32 = vunpack.i.l.bf16 %v883_v30 }
 0x2e5   :  { %826 = vmatprep.subr.bf16.mxu1 %v920_v28 }
 0x2e6   :  { %v827_v29 = vpack.c.bf16 %v880_v26, %v879_v27  ;;  %v837_v18 = vpack.c.bf16 %v885_v31, %v884_v32 }
 0x2e7   :  { %v888_v33 = vpop.permute.xlu1 %887  ;;  %v893_v37 = vpop.permute.xlu0 %892 }
 0x2e8   :  { %829 = vmatpush1.bf16.msk.msra.mxu1 %vm1022_vm4, %v827_v29  ;;  %v890_v36 = vunpack.i.h.bf16 %v888_v33  ;;  %v889_v38 = vunpack.i.l.bf16 %v888_v33  ;;  %v895_v40 = vunpack.i.h.bf16 %v893_v37  ;;  %v894_v2 = vunpack.i.l.bf16 %v893_v37 }
 0x2e9   :  { %830 = vmatprep.subr.bf16.mxu1 %v920_v28 }
 0x2ea   :  { %v841_v7 = vpack.c.bf16 %v890_v36, %v889_v38  ;;  %v845_v42 = vpack.c.bf16 %v895_v40, %v894_v2 }
 0x2eb   :  { %v898_v41 = vpop.permute.xlu1 %897 }
 0x2ec   :  { %832 = vmatpush1.bf16.msra.mxu1 %v831_v44  ;;  %v900_v43 = vunpack.i.h.bf16 %v898_v41  ;;  %v899_v10 = vunpack.i.l.bf16 %v898_v41 }
 0x2ed   :  { %833 = vmatprep.subr.bf16.mxu1 %v920_v28 }
 0x2ee   :  { %v849_v44 = vpack.c.bf16 %v900_v43, %v899_v10 }
 0x2f0   :  { %835 = vmatpush1.bf16.msra.mxu1 %v834_v47  ;;  %v386_v47 = vld [vmem:[%s1241_s6 + $0x20] sm:$0xff] }
 0x2f1   :  { %836 = vmatprep.subr.bf16.mxu1 %v920_v28 }
 0x2f4   :  { %839 = vmatpush1.bf16.msk.msra.mxu1 %vm1063_vm7, %v837_v18 }
 0x2f5   :  { %840 = vmatprep.subr.bf16.mxu1 %v920_v28 }
 0x2f8   :  { %843 = vmatpush1.bf16.msk.msra.mxu1 %vm1063_vm7, %v841_v7  ;;  %v495_v54 = vpop.permute.xlu0 %494 }
 0x2f9   :  { %844 = vmatprep.subr.bf16.mxu1 %v920_v28 }
 0x2fc   :  { %847 = vmatpush1.bf16.msk.msra.mxu1 %vm846_vm0, %v845_v42  ;;  %v500_v55 = vpop.permute.xlu1 %499  ;;  %v505_v56 = vpop.permute.xlu0 %504 }
 0x2fd   :  { %848 = vmatprep.subr.bf16.mxu1 %v920_v28  ;;  %v387_v28 = vld [vmem:[%s1241_s6 + $0x28] sm:$0xff] }
 0x300   :  { %851 = vmatpush1.bf16.msk.msra.mxu1 %vm846_vm0, %v849_v44  ;;  %v510_v57 = vpop.permute.xlu1 %509  ;;  %v523_v61 = vpop.permute.xlu0 %522 }
 0x303   :  { %468 = vmatmul.mubr.f32.vlgmr.msra.gmra.mrb[0].mxu1 %v382_v45 }
 0x304   :  { %725 = vmatprep.mubr.msk.f32.mxu1 %vm390_vm12, %v385_v39  ;;  %v528_v9 = vpop.permute.xlu1 %527  ;;  %v533_v19 = vpop.permute.xlu0 %532 }
 0x307   :  { %473 = vmatmul.mubr.f32.gmra.mrb[2].mxu1 %v384_v46 }
 0x308   :  { %726 = vmatprep.mubr.msk.f32.mxu1 %vm390_vm12, %v387_v28  ;;  %v538_v25 = vpop.permute.xlu1 %537 }
 0x30b   :  { %478 = vmatmul.mubr.f32.gmra.mrb[4].mxu1 %v386_v47 }
 0x30c   :  { %727 = vmatprep.mubr.msk.f32.mxu1 %vm390_vm12, %v389_v48 }
 0x30f   :  { %483 = vmatmul.mubr.f32.gmra.mrb[6].mxu1 %v388_v49 }
 0x3d6   :  { %v469_v58 = vpop.f32.mrb[0].mxu1 }
 0x3d7   :  { %v512_v59 = vmul.f32 %v495_v54, %v469_v58  ;;  %v471_v60 = vpop.f32.mrb[1].mxu1 }
 0x3d9   :  { %v540_v62 = vadd.f32 %v523_v61, %v512_v59 }
 0x3da   :  { %v474_v63 = vpop.f32.mrb[2].mxu1 }
 0x3db   :  { %v548_v5 = vmul.f32 %v540_v62, %v540_v62  ;;  %v513_v6 = vmul.f32 %v500_v55, %v474_v63  ;;  %v476_v8 = vpop.f32.mrb[3].mxu1  ;;  %v544_v7 = vmul.f32 0.5, %v540_v62 }
 0x3dd   :  { %v552_v11 = vmul.f32 %v548_v5, %v540_v62  ;;  %v541_v12 = vadd.f32 %v528_v9, %v513_v6 }
 0x3de   :  { %v479_v13 = vpop.f32.mrb[4].mxu1 }
 0x3df   :  { %v549_v14 = vmul.f32 %v541_v12, %v541_v12  ;;  %v514_v15 = vmul.f32 %v505_v56, %v479_v13  ;;  %v481_v16 = vpop.f32.mrb[5].mxu1  ;;  %v556_v17 = vmul.f32 0.044715, %v552_v11  ;;  %v545_v42 = vmul.f32 0.5, %v541_v12 }
 0x3e1   :  { %v553_v20 = vmul.f32 %v549_v14, %v541_v12  ;;  %v542_v21 = vadd.f32 %v533_v19, %v514_v15  ;;  %v560_v0 = vadd.f32 %v556_v17, %v540_v62 }
 0x3e2   :  { %v484_v1 = vpop.f32.mrb[6].mxu1 }
 0x3e3   :  { %v550_v3 = vmul.f32 %v542_v21, %v542_v21  ;;  %v515_v4 = vmul.f32 %v510_v57, %v484_v1  ;;  %v486_v22 = vpop.f32.mrb[7].mxu1  ;;  %v557_v23 = vmul.f32 0.044715, %v553_v20  ;;  %v564_v24 = vmul.f32 0.7978846, %v560_v0 }
 0x3e4   :  { %v546_v46 = vmul.f32 0.5, %v542_v21 }
 0x3e5   :  { %v554_v26 = vmul.f32 %v550_v3, %v542_v21  ;;  %v543_v27 = vadd.f32 %v538_v25, %v515_v4  ;;  %v561_v29 = vadd.f32 %v557_v23, %v541_v12  ;;  %909 = vtanh.f32 %v564_v24 }
 0x3e7   :  { %v551_v30 = vmul.f32 %v543_v27, %v543_v27  ;;  %v565_v31 = vmul.f32 0.7978846, %v561_v29  ;;  %v558_v32 = vmul.f32 0.044715, %v554_v26  ;;  %v547_v49 = vmul.f32 0.5, %v543_v27 }
 0x3e9   :  { %v555_v33 = vmul.f32 %v551_v30, %v543_v27  ;;  %911 = vtanh.f32 %v565_v31  ;;  %v562_v34 = vadd.f32 %v558_v32, %v542_v21 }
 0x3eb   :  { %v559_v18 = vmul.f32 0.044715, %v555_v33  ;;  %v566_v36 = vmul.f32 0.7978846, %v562_v34 }
 0x3ed   :  { %v563_v38 = vadd.f32 %v559_v18, %v543_v27  ;;  %913 = vtanh.f32 %v566_v36 }
 0x3ef   :  { %v910_v35 = vpop.eup %909  ;;  %v567_v37 = vmul.f32 0.7978846, %v563_v38 }
 0x3f0   :  { %v572_v40 = vadd.f32 1.0, %v910_v35 }
 0x3f1   :  { %915 = vtanh.f32 %v567_v37 }
 0x3f2   :  { %v576_v2 = vmul.f32 %v572_v40, %v544_v7 }
 0x3f3   :  { %v912_v41 = vpop.eup %911 }
 0x3f4   :  { %v573_v43 = vadd.f32 1.0, %v912_v41  ;;  %v686_v10 = vadd.f32 %v667_v51, %v576_v2 }
 0x3f6   :  { %v577_v44 = vmul.f32 %v573_v43, %v545_v42  ;;  %690 = vst.msk [vmem:[%s1243_s10] sm:$0xff] %vm588_vm13, %v686_v10 }
 0x3f7   :  { %v914_v45 = vpop.eup %913 }
 0x3f8   :  { %v687_v39 = vadd.f32 %v1208_v50, %v577_v44  ;;  %v574_v28 = vadd.f32 1.0, %v914_v45 }
 0x3fa   :  { %691 = vst.msk [vmem:[%s1243_s10 + $0x8] sm:$0xff] %vm588_vm13, %v687_v39  ;;  %v578_v47 = vmul.f32 %v574_v28, %v546_v46 }
 0x3fb   :  { %v916_v48 = vpop.eup %915 }
 0x3fc   :  { %v575_v51 = vadd.f32 1.0, %v916_v48  ;;  %v688_v54 = vadd.f32 %v1212_v53, %v578_v47 }
 0x3fe   :  { %v579_v55 = vmul.f32 %v575_v51, %v547_v49  ;;  %692 = vst.msk [vmem:[%s1243_s10 + $0x10] sm:$0xff] %vm588_vm13, %v688_v54 }
 0x400   :  { %v689_v50 = vadd.f32 %v1210_v52, %v579_v55 }
 0x402   :  { %693 = vst.msk [vmem:[%s1243_s10 + $0x18] sm:$0xff] %vm588_vm13, %v689_v50 }

// kernel: ecg_encoder_forward.7
= control target key start
LH: loop header
LB: loop body
LE: loop exit
PB: predicated region body
PF: predicated region fallthrough
CT: control target
= control target key end

     0   :  { %s2386_s24 = smov 0   ;;  %s2685_s0 = inlined_call_operand.vmem [shape: f32[2,32,8], index: 0, kind: input, shape index: {}]   ;;  %s2686_s1 = inlined_call_operand.vmem [shape: f32[32,1], index: 1, kind: input, shape index: {}]   ;;  %s2687_s2 = inlined_call_operand.vmem [shape: f32[32,8], index: 2, kind: input, shape index: {}]   ;;  %s2688_s3 = inlined_call_operand.vmem [shape: f32[32,32], index: 3, kind: input, shape index: {}]   ;;  %s2689_s4 = inlined_call_operand.vmem [shape: f32[32,1], index: 4, kind: input, shape index: {}]   ;;  %s2690_s5 = inlined_call_operand.vmem [shape: f32[32,32], index: 5, kind: input, shape index: {}]   ;;  %s2691_s6 = inlined_call_operand.vmem [shape: f32[32,1], index: 6, kind: input, shape index: {}]   ;;  %s2692_s7 = inlined_call_operand.vmem [shape: f32[32,32], index: 7, kind: input, shape index: {}]   ;;  %s2693_s8 = inlined_call_operand.vmem [shape: f32[32,1], index: 8, kind: input, shape index: {}]   ;;  %s2694_s9 = inlined_call_operand.vmem [shape: f32[8,32], index: 9, kind: input, shape index: {}]   ;;  %s2695_s10 = inlined_call_operand.vmem [shape: f32[32,8], index: 10, kind: input, shape index: {}]   ;;  %s2696_s11 = inlined_call_operand.vmem [shape: f32[32,32], index: 11, kind: input, shape index: {}]   ;;  %s2697_s12 = inlined_call_operand.vmem [shape: f32[32,1], index: 12, kind: input, shape index: {}]   ;;  %s2698_s13 = inlined_call_operand.vmem [shape: f32[32,32], index: 13, kind: input, shape index: {}]   ;;  %s2699_s14 = inlined_call_operand.vmem [shape: f32[32,1], index: 14, kind: input, shape index: {}]   ;;  %s2700_s15 = inlined_call_operand.vmem [shape: f32[32,32], index: 15, kind: input, shape index: {}]   ;;  %s2701_s16 = inlined_call_operand.vmem [shape: f32[32,1], index: 16, kind: input, shape index: {}]   ;;  %s2702_s17 = inlined_call_operand.vmem [shape: f32[2,32,1], index: 17, kind: output, shape index: {}]  }
   0x1   :  { %2704 = sst [smem:[#allocation2_spill]] %s2685_s0 }
   0x2   :  { %2705 = sst [smem:[#allocation3_spill]] %s2686_s1 }
   0x3 LB: > { %s1899_s25 = sadd.s32 4294967295, %s2290_s24   ;;  %p1903_p0 = scmp.ge.s32.totalorder %s2290_s24, 1  ;;  %s2290_s24 = sphi %s2386_s24, %s27_s24  }
   0x4   : > { %p487_p1 = scmp.lt.s32.totalorder %s2290_s24, 3 }
   0x6   : > { %p488_p2 = pnand %p1903_p0, %p487_p1 }
   0x7   : > { %p539_p3 = scmp.lt.s32.totalorder (!%p488_p2), %s1899_s25, 1  ;;  %vm553_vm0 = vcmask (!%p488_p2), 64512   ;;  %v581_v0 = vld [vmem:[%s2687_s2 + $0x10] sm:$0xff] (!%p488_p2)  ;;  %v579_v1 = vld [vmem:[%s2687_s2] sm:$0xff] (!%p488_p2)  ;;  %s2706_s19 = sld [smem:[#allocation2_spill]] (!%p488_p2)  ;;  %v582_v2 = vld [vmem:[%s2687_s2 + $0x18] sm:$0xff] (!%p488_p2) }
   0x8   : > { %491 = sbr.rel (%p488_p2) target bundleno = 2371 (0x943), region = 88  ;;  %v580_v3 = vld [vmem:[%s2687_s2 + $0x8] sm:$0xff] (!%p488_p2)  ;;  %v587_v18 = vld [vmem:[%s2688_s3] sm:$0xff] (!%p488_p2)  ;;  %vm595_vm1 = vcmask (!%p488_p2), 261120   ;;  %v2292_v21 = vmov (!%p488_p2), 0   ;;  %v2439_v22 = vld [vmem:[%s2691_s6 + $0x10] sm:$0xff] (!%p488_p2) }
   0x9   : > { %v693_v19 = vld [vmem:[%s2690_s5] sm:$0xff] (!%p488_p2)  ;;  %2046 = vmatprep.mubr.msk.f32.mxu0 (!%p488_p2), %vm595_vm1, %v587_v18  ;;  %v2433_v20 = vld [vmem:[%s2691_s6 + $0x8] sm:$0xff] (!%p488_p2)  ;;  %2277 = vset.pattern.permute.xlu1 (!%p488_p2), %v2292_v21  ;;  %v2445_v23 = vld [vmem:[%s2691_s6 + $0x18] sm:$0xff] (!%p488_p2)  ;;  %s2707_s27 = sld [smem:[#allocation3_spill]] (!%p488_p2)  ;;  %v2293_v50 = vmov (!%p488_p2), 0.0|0.0   ;;  %vm2294_vm2 = vmmov (!%p488_p2), 0  }
   0xa   : > { %2060 = vmatprep.mubr.msk.f32.mxu1 (!%p488_p2), %vm595_vm1, %v693_v19  ;;  %2276 = vset.pattern.permute.xlu0 (!%p488_p2), %v2292_v21  ;;  %v588_v42 = vld [vmem:[%s2688_s3 + $0x8] sm:$0xff] (!%p488_p2)  ;;  %v589_v44 = vld [vmem:[%s2688_s3 + $0x10] sm:$0xff] (!%p488_p2)  ;;  %v590_v46 = vld [vmem:[%s2688_s3 + $0x18] sm:$0xff] (!%p488_p2)  ;;  %vm1839_vm3 = vcmask (!%p488_p2), 7168  }
   0xb   : > { %v694_v43 = vld [vmem:[%s2690_s5 + $0x8] sm:$0xff] (!%p488_p2)  ;;  %v695_v45 = vld [vmem:[%s2690_s5 + $0x10] sm:$0xff] (!%p488_p2)  ;;  %v696_v47 = vld [vmem:[%s2690_s5 + $0x18] sm:$0xff] (!%p488_p2) }
   0xc   : > { %v697_v48 = vld [vmem:[%s2691_s6] sm:$0xff] (!%p488_p2)  ;;  %v904_v51 = vld [vmem:[%s2692_s7 + $0x8] sm:$0xff] (!%p488_p2)  ;;  %v594_v62 = vld [vmem:[%s2689_s4 + $0x18] sm:$0xff] (!%p488_p2) }
   0xd   : > { %v903_v49 = vld [vmem:[%s2692_s7] sm:$0xff] (!%p488_p2)  ;;  %v592_v52 = vld [vmem:[%s2689_s4 + $0x8] sm:$0xff] (!%p488_p2)  ;;  %v905_v18 = vld [vmem:[%s2692_s7 + $0x10] sm:$0xff] (!%p488_p2) }
   0xe   : > { %v591_v53 = vld [vmem:[%s2689_s4] sm:$0xff] (!%p488_p2) }
   0xf   : > { %s2709_s25 = smov (!%p539_p3, %s1899_s25), 1  ;;  %v573_v26 = vld [vmem:[%s2707_s27 + $0x10] sm:$0xff]  ;;  %v571_v29 = vld [vmem:[%s2707_s27] sm:$0xff]  ;;  %v574_v30 = vld [vmem:[%s2707_s27 + $0x18] sm:$0xff] }
  0x10   : > { %s1952_s26 = sshll.u32 %s2709_s25, 5  ;;  %v572_v32 = vld [vmem:[%s2707_s27 + $0x8] sm:$0xff]  ;;  %v1113_v21 = vld [vmem:[%s2694_s9] sm:$0xff] }
  0x11   : > { %s543_s1 = scalar_lea.vmem %s2706_s19, %s1952_s26  ;;  %s548_s29 = scalar_lea.vmem %s2702_s17, %s1952_s26 }
  0x12   : > { %v551_v4 = vld [vmem:[%s543_s1 + $0x10] sm:$0xff]  ;;  %v549_v5 = vld [vmem:[%s543_s1] sm:$0xff]  ;;  %v552_v6 = vld [vmem:[%s543_s1 + $0x18] sm:$0xff] }
  0x13   : > { %v560_v7 = vsel %vm553_vm0, %v551_v4, 0.0  ;;  %v585_v8 = vadd.f32 %v581_v0, %v551_v4  ;;  %v554_v9 = vsel %vm553_vm0, %v549_v5, 0.0  ;;  %v583_v10 = vadd.f32 %v579_v1, %v549_v5  ;;  %v550_v11 = vld [vmem:[%s543_s1 + $0x8] sm:$0xff]  ;;  %v593_v0 = vld [vmem:[%s2689_s4 + $0x10] sm:$0xff] }
  0x14   : > { %561 = vadd.xlane.f32.xlu1 %v560_v7  ;;  %555 = vadd.xlane.f32.xlu0 %v554_v9  ;;  %v586_v12 = vadd.f32 %v582_v2, %v552_v6  ;;  %v584_v13 = vadd.f32 %v580_v3, %v550_v11  ;;  %v563_v14 = vsel %vm553_vm0, %v552_v6, 0.0  ;;  %v557_v15 = vsel %vm553_vm0, %v550_v11, 0.0 }
  0x16   : > { %v2418_v16 = vpack.c.bf16 %v586_v12, %v585_v8  ;;  %v2420_v17 = vpack.c.bf16 %v584_v13, %v583_v10 }
  0x18   : > { %564 = vadd.xlane.f32.xlu1 %v563_v14  ;;  %558 = vadd.xlane.f32.xlu0 %v557_v15 }
  0x29   : > { %805 = vperm.xlu1 %2277, %v2433_v20  }
  0x2d   : > { %810 = vperm.xlu1 %2277, %v2439_v22  }
  0x2e   : > { %800 = vperm.xlu0 %2276, %v697_v48  }
  0x31   : > { %815 = vperm.xlu1 %2277, %v2445_v23  }
  0xa1   : > { %v562_v24 = vpop.xlane.xlu1 %561  ;;  %v556_v25 = vpop.xlane.xlu0 %555 }
  0xa2   : > { %v569_v27 = vmul.f32 0.125, %v562_v24  ;;  %v567_v28 = vmul.f32 0.125, %v556_v25 }
  0xa4   : > { %v577_v36 = vadd.f32 %v573_v26, %v569_v27  ;;  %v575_v37 = vadd.f32 %v571_v29, %v567_v28 }
  0xa5   : > { %v565_v31 = vpop.xlane.xlu1 %564  ;;  %v559_v33 = vpop.xlane.xlu0 %558 }
  0xa6   : > { %v570_v34 = vmul.f32 0.125, %v565_v31  ;;  %v568_v35 = vmul.f32 0.125, %v559_v33 }
  0xa8   : > { %v578_v38 = vadd.f32 %v574_v30, %v570_v34  ;;  %v576_v39 = vadd.f32 %v572_v32, %v568_v35 }
  0xa9   : > { %v806_v24 = vpop.permute.xlu1 %805 }
  0xaa   : > { %v2188_v40 = vpack.c.bf16 %v576_v39, %v575_v37  ;;  %v2192_v41 = vpack.c.bf16 %v578_v38, %v577_v36 }
  0xac   : > { %2189 = vmatprep.subr.bf16.mxu0 %v2188_v40  ;;  %2197 = vmatprep.subr.bf16.mxu1 %v2188_v40 }
  0xad   : > { %2191 = vmatpush3.bf16.msra.mxu0 %v2188_v40  ;;  %2199 = vmatpush3.bf16.msra.mxu1 %v2188_v40  ;;  %v811_v25 = vpop.permute.xlu1 %810  ;;  %v801_v27 = vpop.permute.xlu0 %800 }
  0xae   : > { %2193 = vmatprep.subr.bf16.mxu0 %v2192_v41  ;;  %2201 = vmatprep.subr.bf16.mxu1 %v2192_v41 }
  0xb1   : > { %2195 = vmatpush3.bf16.msra.mxu0 %v2192_v41  ;;  %2203 = vmatpush3.bf16.msra.mxu1 %v2192_v41  ;;  %v816_v26 = vpop.permute.xlu1 %815 }
  0xb2   : > { %2213 = vmatprep.subr.bf16.mxu1 %v2188_v40  ;;  %2205 = vmatprep.subr.bf16.mxu0 %v2420_v17 }
  0xb4   : > { %2047 = vmatmul.mubr.msk.f32.vlgmr.msra.gmra.mrb[0].mxu0 %vm595_vm1, %v588_v42  ;;  %2061 = vmatmul.mubr.msk.f32.vlgmr.msra.gmra.mrb[0].mxu1 %vm595_vm1, %v694_v43 }
  0xb5   : > { %2215 = vmatpush3.bf16.msra.mxu1 %v2188_v40  ;;  %2049 = vmatprep.mubr.msk.f32.mxu0 %vm595_vm1, %v589_v44 }
  0xb6   : > { %2217 = vmatprep.subr.bf16.mxu1 %v2192_v41  ;;  %2063 = vmatprep.mubr.msk.f32.mxu1 %vm595_vm1, %v695_v45 }
  0xb7   : > { %2207 = vmatpush3.bf16.msra.mxu0 %v2420_v17 }
  0xb8   : > { %2050 = vmatmul.mubr.msk.f32.gmra.mrb[2].mxu0 %vm595_vm1, %v590_v46  ;;  %2064 = vmatmul.mubr.msk.f32.gmra.mrb[2].mxu1 %vm595_vm1, %v696_v47 }
  0xb9   : > { %2219 = vmatpush3.bf16.msra.mxu1 %v2192_v41  ;;  %2209 = vmatprep.subr.bf16.mxu0 %v2418_v16 }
  0xba   : > { %2074 = vmatprep.mubr.msk.f32.mxu0 %vm595_vm1, %v693_v19  ;;  %2088 = vmatprep.mubr.msk.f32.mxu1 %vm595_vm1, %v903_v49  ;;  %v906_v19 = vld [vmem:[%s2692_s7 + $0x18] sm:$0xff] }
  0xbb   : > { %2211 = vmatpush3.bf16.msra.mxu0 %v2418_v16  ;;  %2228 = vmatprep.subr.bf16.mxu1 %v2293_v50 }
  0xbc   : > { %2221 = vmatprep.subr.bf16.mxu0 %v2420_v17  ;;  %2089 = vmatmul.mubr.msk.f32.vlgmr.msra.gmra.mrb[4].mxu1 %vm595_vm1, %v904_v51 }
  0xbd   : > { %2091 = vmatprep.mubr.msk.f32.mxu1 %vm595_vm1, %v905_v18 }
  0xbe   : > { %2075 = vmatmul.mubr.msk.f32.vlgmr.msra.gmra.mrb[4].mxu0 %vm595_vm1, %v694_v43 }
  0xbf   : > { %2077 = vmatprep.mubr.msk.f32.mxu0 %vm595_vm1, %v695_v45  ;;  %2223 = vmatpush3.bf16.msra.mxu0 %v2420_v17 }
  0xc0   : > { %2225 = vmatprep.subr.bf16.mxu0 %v2418_v16  ;;  %2092 = vmatmul.mubr.msk.f32.gmra.mrb[6].mxu1 %vm595_vm1, %v906_v19 }
  0xc2   : > { %2078 = vmatmul.mubr.msk.f32.gmra.mrb[6].mxu0 %vm595_vm1, %v696_v47 }
  0xc3   : > { %2227 = vmatpush3.bf16.msra.mxu0 %v2418_v16  ;;  %2102 = vmatprep.mubr.msk.f32.mxu0 %vm595_vm1, %v903_v49 }
  0xc4   : > { %2234 = vmatprep.subr.bf16.mxu0 %v2293_v50 }
  0xc6   : > { %2103 = vmatmul.mubr.msk.f32.vlgmr.msra.gmra.mrb[8].mxu0 %vm595_vm1, %v904_v51 }
  0xc7   : > { %2105 = vmatprep.mubr.msk.f32.mxu0 %vm595_vm1, %v905_v18 }
  0xca   : > { %2106 = vmatmul.mubr.msk.f32.gmra.mrb[10].mxu0 %vm595_vm1, %v906_v19 }
 0x187   : > { %v2048_v54 = vpop.f32.mrb[0].mxu0  ;;  %v2062_v55 = vpop.f32.mrb[0].mxu1 }
 0x188   : > { %v680_v56 = vadd.f32 %v2048_v54, %v592_v52  ;;  %v785_v57 = vadd.f32 %v2062_v55, %v2433_v20  ;;  %v674_v58 = vpop.f32.mrb[1].mxu0  ;;  %v779_v59 = vpop.f32.mrb[1].mxu1  ;;  %v2295_v20 = vmov 0.0  }
 0x189   : > { %v675_v60 = vadd.f32 %v674_v58, %v591_v53  ;;  %v780_v61 = vadd.f32 %v779_v59, %v697_v48  ;;  %2127 = vmatprep.mubr.msk.f32.mxu0 %vm2294_vm2, %v2295_v20  ;;  %2116 = vmatprep.mubr.msk.f32.mxu1 %vm2294_vm2, %v2295_v20 }
 0x18a   : > { %v1115_v63 = vmul.f32 %v785_v57, %v680_v56  ;;  %1199 = vperm.xlu1 %2277, %v680_v56  }
 0x18b   : > { %v1114_v1 = vmul.f32 %v780_v61, %v675_v60  ;;  %v2051_v2 = vpop.f32.mrb[2].mxu0  ;;  %v2065_v3 = vpop.f32.mrb[2].mxu1 }
 0x18c   : > { %v690_v4 = vadd.f32 %v2051_v2, %v594_v62  ;;  %v795_v5 = vadd.f32 %v2065_v3, %v2445_v23  ;;  %v684_v6 = vpop.f32.mrb[3].mxu0  ;;  %v789_v7 = vpop.f32.mrb[3].mxu1 }
 0x18d   : > { %v2229_v8 = vpack.c.bf16 %v1115_v63, %v1114_v1  ;;  %v685_v9 = vadd.f32 %v684_v6, %v593_v0  ;;  %v790_v10 = vadd.f32 %v789_v7, %v2439_v22  ;;  %v907_v63 = vld [vmem:[%s2693_s8] sm:$0xff]  ;;  %v910_v0 = vld [vmem:[%s2693_s8 + $0x18] sm:$0xff] }
 0x18e   : > { %v1117_v11 = vmul.f32 %v795_v5, %v690_v4  ;;  %1194 = vperm.xlu1 %2277, %v675_v60   ;;  %v1314_v1 = vld [vmem:[%s2695_s10] sm:$0xff] }
 0x18f   : > { %v1116_v12 = vmul.f32 %v790_v10, %v685_v9  ;;  %2230 = vmatpush3.bf16.msra.mxu1 %v2229_v8  ;;  %v2090_v44 = vpop.f32.mrb[4].mxu1  ;;  %v1315_v8 = vld [vmem:[%s2695_s10 + $0x8] sm:$0xff] }
 0x190   : > { %2231 = vmatprep.subr.bf16.mxu1 %v2293_v50  ;;  %v989_v45 = vpop.f32.mrb[5].mxu1  ;;  %v908_v10 = vld [vmem:[%s2693_s8 + $0x8] sm:$0xff] }
 0x191   : > { %v2232_v13 = vpack.c.bf16 %v1117_v11, %v1116_v12  ;;  %v2076_v14 = vpop.f32.mrb[4].mxu0  ;;  %v1317_v11 = vld [vmem:[%s2695_s10 + $0x18] sm:$0xff]  ;;  %v909_v12 = vld [vmem:[%s2693_s8 + $0x10] sm:$0xff] }
 0x192   : > { %1204 = vperm.xlu1 %2277, %v685_v9   ;;  %v884_v15 = vpop.f32.mrb[5].mxu0  ;;  %v890_v30 = vadd.f32 %v2076_v14, %v806_v24  ;;  %v1316_v9 = vld [vmem:[%s2695_s10 + $0x10] sm:$0xff] }
 0x193   : > { %2233 = vmatpush3.bf16.msra.mxu1 %v2232_v13  ;;  %v885_v29 = vadd.f32 %v884_v15, %v801_v27  ;;  %v2093_v46 = vpop.f32.mrb[6].mxu1  ;;  %v995_v15 = vadd.f32 %v2090_v44, %v908_v10 }
 0x194   : > { %v999_v47 = vpop.f32.mrb[7].mxu1 }
 0x195   : > { %v2079_v16 = vpop.f32.mrb[6].mxu0  ;;  %v1000_v24 = vadd.f32 %v999_v47, %v909_v12 }
 0x196   : > { %1209 = vperm.xlu1 %2277, %v690_v4   ;;  %v894_v17 = vpop.f32.mrb[7].mxu0  ;;  %2117 = vmatmul.mubr.msk.f32.vlgmr.msra.gmra.mrb[8].mxu1 %vm595_vm1, %v1113_v21  ;;  %v900_v36 = vadd.f32 %v2079_v16, %v816_v26  ;;  %v990_v16 = vadd.f32 %v989_v45, %v907_v63 }
 0x197   : > { %v895_v37 = vadd.f32 %v894_v17, %v811_v25  ;;  %2132 = vmatprep.mubr.msk.f32.mxu1 %vm553_vm0, %v1314_v1 }
 0x199   : > { %v2541_v22 = vpop.f32.mrb[8].mxu0 }
 0x19a   : > { %v2543_v23 = vpop.f32.mrb[9].mxu0 }
 0x19d   : > { %v2547_v42 = vpop.f32.mrb[10].mxu0 }
 0x19e   : > { %v2549_v43 = vpop.f32.mrb[11].mxu0 }
 0x209   : > { %v1200_v28 = vpop.permute.xlu1 %1199 }
 0x20a   : > { %v1213_v32 = vmul.f32 %v1200_v28, %v890_v30 }
 0x20d   : > { %v1195_v31 = vpop.permute.xlu1 %1194 }
 0x20e   : > { %v1212_v33 = vmul.f32 %v1195_v31, %v885_v29 }
 0x210   : > { %v2235_v34 = vpack.c.bf16 %v1213_v32, %v1212_v33 }
 0x211   : > { %v1205_v35 = vpop.permute.xlu1 %1204 }
 0x212   : > { %2236 = vmatpush3.bf16.msra.mxu0 %v2235_v34  ;;  %v1214_v39 = vmul.f32 %v1205_v35, %v895_v37 }
 0x213   : > { %2237 = vmatprep.subr.bf16.mxu0 %v2293_v50 }
 0x215   : > { %v1210_v38 = vpop.permute.xlu1 %1209 }
 0x216   : > { %v1215_v40 = vmul.f32 %v1210_v38, %v900_v36 }
 0x218   : > { %v2238_v41 = vpack.c.bf16 %v1215_v40, %v1214_v39 }
 0x21a   : > { %2239 = vmatpush3.bf16.msra.mxu0 %v2238_v41 }
 0x21d   : > { %2128 = vmatmul.mubr.msk.f32.vlgmr.msra.gmra.mrb[12].mxu0 %vm595_vm1, %v1113_v21  ;;  %v1005_v21 = vadd.f32 %v2093_v46, %v910_v0 }
 0x21e   : > { %2140 = vmatprep.mubr.msk.f32.mxu0 %vm553_vm0, %v1314_v1 }
 0x269   : > { %v1187_v48 = vpop.f32.mrb[8].mxu1 }
 0x26a   : > { %v2118_v49 = vpop.f32.mrb[9].mxu1  ;;  %v1191_v54 = vmul.f32 0.5, %v1187_v48 }
 0x2f0   : > { %v1282_v50 = vpop.f32.mrb[12].mxu0 }
 0x2f1   : > { %v1286_v51 = vmul.f32 0.5, %v1282_v50  ;;  %v2129_v52 = vpop.f32.mrb[13].mxu0 }
 0x2f3   : > { %v1287_v53 = vsel %vm553_vm0, %v1286_v51, -inf }
 0x2f4   : > { %1288 = vmax.xlane.f32.xlu1 %v1287_v53 }
 0x381   : > { %v1289_v55 = vpop.xlane.xlu1 %1288 }
 0x382   : > { %v1290_v56 = vmax.f32 %v1289_v55, %v1191_v54 }
 0x384   : > { %v1291_v57 = vsub.f32 %v1191_v54, %v1290_v56  ;;  %1296 = vperm.xlu0 %2276, %v1290_v56  }
 0x386   : > { %v1292_v2 = vmul.f32 1.442695, %v1291_v57 }
 0x403   : > { %v1297_v58 = vpop.permute.xlu0 %1296 }
 0x404   : > { %v1299_v59 = vsub.f32 %v1286_v51, %v1297_v58  ;;  %v1525_v58 = vld [vmem:[%s2696_s11 + $0x8] sm:$0xff] }
 0x406   : > { %v1300_v60 = vmul.f32 1.442695, %v1299_v59  ;;  %v1526_v59 = vld [vmem:[%s2696_s11 + $0x10] sm:$0xff] }
 0x408   : > { %2278 = vpow2.f32 %v1300_v60  ;;  %v1527_v60 = vld [vmem:[%s2696_s11 + $0x18] sm:$0xff] }
 0x409   : > { %2280 = vpow2.f32 %v1292_v2 }
 0x412   : > { %v2279_v61 = vpop.eup %2278 }
 0x413   : > { %v1302_v62 = vsel %vm553_vm0, %v2279_v61, 0.0  ;;  %v2281_v3 = vpop.eup %2280 }
 0x414   : > { %1303 = vadd.xlane.f32.xlu0 %v1302_v62  ;;  %v1529_v62 = vld [vmem:[%s2697_s12 + $0x8] sm:$0xff] }
 0x42a   : > { %1010 = vperm.xlu0 %2276, %v907_v63   ;;  %v1528_v63 = vld [vmem:[%s2697_s12] sm:$0xff] }
 0x42e   : > { %1025 = vperm.xlu0 %2276, %v910_v0  }
 0x4a1   : > { %v1304_v4 = vpop.xlane.xlu0 %1303 }
 0x4a2   : > { %v1305_v5 = vadd.f32 %v2281_v3, %v1304_v4  ;;  %v1531_v4 = vld [vmem:[%s2697_s12 + $0x18] sm:$0xff] }
 0x4a4   : > { %2282 = vrcp.f32 %v1305_v5  ;;  %v1530_v5 = vld [vmem:[%s2697_s12 + $0x10] sm:$0xff] }
 0x4a9   : > { %v1011_v29 = vpop.permute.xlu0 %1010 }
 0x4aa   : > { %v1095_v32 = vadd.f32 %v2543_v23, %v1011_v29 }
 0x4ad   : > { %v1026_v33 = vpop.permute.xlu0 %1025 }
 0x4ae   : > { %v2283_v6 = vpop.eup %2282  ;;  %v1110_v39 = vadd.f32 %v2547_v42, %v1026_v33  ;;  %v1524_v42 = vld [vmem:[%s2696_s11] sm:$0xff]  ;;  %v1736_v33 = vld [vmem:[%s2700_s15 + $0x10] sm:$0xff] }
 0x4af   : > { %1310 = vperm.xlu1 %2277, %v2283_v6   ;;  %v1307_v7 = vmul.f32 %v2283_v6, %v2281_v3 }
 0x4b1   : > { %2130 = vmatprep.subr.mxu1 %v1307_v7 }
 0x4b2   : > { %2131 = vmatpush3.msra.mxu1 %v1307_v7 }
 0x4b3   : > { %1015 = vperm.xlu1 %2277, %v908_v10   ;;  %2133 = vmatmul.mubr.msk.f32.vlgmr.msra.gmra.mrb[10].mxu1 %vm553_vm0, %v1315_v8 }
 0x4b4   : > { %2135 = vmatprep.mubr.msk.f32.mxu1 %vm553_vm0, %v1316_v9 }
 0x4b7   : > { %1020 = vperm.xlu1 %2277, %v909_v12   ;;  %2136 = vmatmul.mubr.msk.f32.gmra.mrb[12].mxu1 %vm553_vm0, %v1317_v11  ;;  %v1630_v12 = vld [vmem:[%s2698_s13 + $0x8] sm:$0xff] }
 0x4b8   : > { %2154 = vmatprep.mubr.msk.f32.mxu1 %vm595_vm1, %v1524_v42 }
 0x52e   : > { %v1311_v13 = vpop.permute.xlu1 %1310 }
 0x52f   : > { %v1313_v14 = vmul.f32 %v2279_v61, %v1311_v13  ;;  %v1629_v61 = vld [vmem:[%s2698_s13] sm:$0xff]  ;;  %v1631_v13 = vld [vmem:[%s2698_s13 + $0x10] sm:$0xff] }
 0x531   : > { %2138 = vmatprep.subr.mxu0 %v1313_v14 }
 0x532   : > { %2139 = vmatpush3.msra.mxu0 %v1313_v14  ;;  %v1016_v30 = vpop.permute.xlu1 %1015  ;;  %v1632_v14 = vld [vmem:[%s2698_s13 + $0x18] sm:$0xff] }
 0x533   : > { %2141 = vmatmul.mubr.msk.f32.vlgmr.msra.gmra.mrb[14].mxu0 %vm553_vm0, %v1315_v8  ;;  %v1100_v31 = vadd.f32 %v2541_v22, %v1016_v30 }
 0x534   : > { %2143 = vmatprep.mubr.msk.f32.mxu0 %vm553_vm0, %v1316_v9 }
 0x536   : > { %v1021_v35 = vpop.permute.xlu1 %1020 }
 0x537   : > { %2144 = vmatmul.mubr.msk.f32.gmra.mrb[16].mxu0 %vm553_vm0, %v1317_v11  ;;  %v1105_v41 = vadd.f32 %v2549_v43, %v1021_v35  ;;  %v1739_v35 = vld [vmem:[%s2701_s16 + $0x8] sm:$0xff] }
 0x538   : > { %2168 = vmatprep.mubr.msk.f32.mxu0 %vm595_vm1, %v1629_v61 }
 0x586   : > { %v2134_v17 = vpop.f32.mrb[10].mxu1 }
 0x587   : > { %v1416_v18 = vmul.f32 %v2134_v17, %v995_v15  ;;  %v1396_v19 = vpop.f32.mrb[11].mxu1  ;;  %v1734_v15 = vld [vmem:[%s2700_s15] sm:$0xff] }
 0x588   : > { %v1415_v20 = vmul.f32 %v1396_v19, %v990_v16  ;;  %v1634_v16 = vld [vmem:[%s2699_s14 + $0x8] sm:$0xff]  ;;  %v1633_v17 = vld [vmem:[%s2699_s14] sm:$0xff] }
 0x58a   : > { %v2137_v25 = vpop.f32.mrb[12].mxu1 }
 0x58b   : > { %v1418_v26 = vmul.f32 %v2137_v25, %v1005_v21  ;;  %v1406_v27 = vpop.f32.mrb[13].mxu1  ;;  %v1635_v25 = vld [vmem:[%s2699_s14 + $0x10] sm:$0xff] }
 0x58c   : > { %v1417_v28 = vmul.f32 %v1406_v27, %v1000_v24  ;;  %v1636_v24 = vld [vmem:[%s2699_s14 + $0x18] sm:$0xff] }
 0x606   : > { %v2142_v34 = vpop.f32.mrb[14].mxu0 }
 0x607   : > { %v1505_v36 = vmul.f32 %v2142_v34, %v1100_v31  ;;  %v1485_v37 = vpop.f32.mrb[15].mxu0  ;;  %v1737_v34 = vld [vmem:[%s2700_s15 + $0x18] sm:$0xff] }
 0x608   : > { %v1504_v38 = vmul.f32 %v1485_v37, %v1095_v32  ;;  %v1735_v32 = vld [vmem:[%s2700_s15 + $0x8] sm:$0xff] }
 0x609   : > { %v1511_v40 = vsel %vm553_vm0, %v1505_v36, 0.0  ;;  %v1738_v36 = vld [vmem:[%s2701_s16] sm:$0xff] }
 0x60a   : > { %1512 = vadd.xlane.f32.xlu0 %v1511_v40  ;;  %v2145_v44 = vpop.f32.mrb[16].mxu0  ;;  %v1508_v45 = vsel %vm553_vm0, %v1504_v38, 0.0 }
 0x60b   : > { %v1507_v46 = vmul.f32 %v2145_v44, %v1110_v39  ;;  %1509 = vadd.xlane.f32.xlu1 %v1508_v45  ;;  %v1495_v22 = vpop.f32.mrb[17].mxu0  ;;  %v1740_v44 = vld [vmem:[%s2701_s16 + $0x10] sm:$0xff] }
 0x60c   : > { %v1506_v23 = vmul.f32 %v1495_v22, %v1105_v41  ;;  %v1741_v41 = vld [vmem:[%s2701_s16 + $0x18] sm:$0xff] }
 0x60d   : > { %v1517_v47 = vsel %vm553_vm0, %v1507_v46, 0.0 }
 0x60e   : > { %v1514_v48 = vsel %vm553_vm0, %v1506_v23, 0.0 }
 0x60f   : > { %1518 = vadd.xlane.f32.xlu1 %v1517_v47  ;;  %1515 = vadd.xlane.f32.xlu0 %v1514_v48 }
 0x697   : > { %v1513_v43 = vpop.xlane.xlu0 %1512 }
 0x698   : > { %v1521_v49 = vadd.f32 %v1513_v43, %v1416_v18  ;;  %v1510_v50 = vpop.xlane.xlu1 %1509 }
 0x699   : > { %v1520_v51 = vadd.f32 %v1510_v50, %v1415_v20 }
 0x69b   : > { %v2240_v52 = vpack.c.bf16 %v1521_v49, %v1520_v51 }
 0x69c   : > { %v1519_v53 = vpop.xlane.xlu1 %1518  ;;  %v1516_v54 = vpop.xlane.xlu0 %1515 }
 0x69d   : > { %v1523_v55 = vadd.f32 %v1519_v53, %v1418_v26  ;;  %v1522_v56 = vadd.f32 %v1516_v54, %v1417_v28  ;;  %2241 = vmatprep.subr.bf16.mxu1 %v2240_v52 }
 0x69e   : > { %2243 = vmatpush3.bf16.msra.mxu1 %v2240_v52 }
 0x69f   : > { %v2244_v57 = vpack.c.bf16 %v1523_v55, %v1522_v56 }
 0x6a1   : > { %2245 = vmatprep.subr.bf16.mxu1 %v2244_v57 }
 0x6a2   : > { %2247 = vmatpush3.bf16.msra.mxu1 %v2244_v57 }
 0x6a5   : > { %2155 = vmatmul.mubr.msk.f32.vlgmr.msra.gmra.mrb[14].mxu1 %vm595_vm1, %v1525_v58 }
 0x6a6   : > { %2157 = vmatprep.mubr.msk.f32.mxu1 %vm595_vm1, %v1526_v59 }
 0x6a9   : > { %2158 = vmatmul.mubr.msk.f32.gmra.mrb[16].mxu1 %vm595_vm1, %v1527_v60 }
 0x6aa   : > { %2182 = vmatprep.mubr.msk.f32.mxu1 %vm595_vm1, %v1734_v15 }
 0x778   : > { %v2156_v0 = vpop.f32.mrb[14].mxu1 }
 0x779   : > { %v1616_v1 = vadd.f32 %v2156_v0, %v1529_v62  ;;  %v1610_v2 = vpop.f32.mrb[15].mxu1 }
 0x77a   : > { %v1611_v3 = vadd.f32 %v1610_v2, %v1528_v63 }
 0x77c   : > { %v2248_v6 = vpack.c.bf16 %v1616_v1, %v1611_v3  ;;  %v2159_v7 = vpop.f32.mrb[16].mxu1 }
 0x77d   : > { %v1626_v8 = vadd.f32 %v2159_v7, %v1531_v4  ;;  %v1620_v9 = vpop.f32.mrb[17].mxu1 }
 0x77e   : > { %v1621_v10 = vadd.f32 %v1620_v9, %v1530_v5  ;;  %2249 = vmatprep.subr.bf16.mxu0 %v2248_v6 }
 0x77f   : > { %2251 = vmatpush3.bf16.msra.mxu0 %v2248_v6 }
 0x780   : > { %v2252_v11 = vpack.c.bf16 %v1626_v8, %v1621_v10 }
 0x782   : > { %2253 = vmatprep.subr.bf16.mxu0 %v2252_v11 }
 0x783   : > { %2255 = vmatpush3.bf16.msra.mxu0 %v2252_v11 }
 0x786   : > { %2169 = vmatmul.mubr.msk.f32.vlgmr.msra.gmra.mrb[18].mxu0 %vm595_vm1, %v1630_v12 }
 0x787   : > { %2171 = vmatprep.mubr.msk.f32.mxu0 %vm595_vm1, %v1631_v13 }
 0x78a   : > { %2172 = vmatmul.mubr.msk.f32.gmra.mrb[20].mxu0 %vm595_vm1, %v1632_v14 }
 0x859   : > { %v2170_v18 = vpop.f32.mrb[18].mxu0 }
 0x85a   : > { %v1721_v19 = vadd.f32 %v2170_v18, %v1634_v16  ;;  %v1715_v20 = vpop.f32.mrb[19].mxu0 }
 0x85b   : > { %v1716_v21 = vadd.f32 %v1715_v20, %v1633_v17 }
 0x85d   : > { %v2256_v26 = vpack.c.bf16 %v1721_v19, %v1716_v21  ;;  %v2173_v27 = vpop.f32.mrb[20].mxu0 }
 0x85e   : > { %v1731_v28 = vadd.f32 %v2173_v27, %v1636_v24  ;;  %v1725_v29 = vpop.f32.mrb[21].mxu0 }
 0x85f   : > { %v1726_v30 = vadd.f32 %v1725_v29, %v1635_v25  ;;  %2257 = vmatprep.subr.bf16.mxu1 %v2256_v26 }
 0x860   : > { %2259 = vmatpush3.bf16.msra.mxu1 %v2256_v26 }
 0x861   : > { %v2260_v31 = vpack.c.bf16 %v1731_v28, %v1726_v30 }
 0x863   : > { %2261 = vmatprep.subr.bf16.mxu1 %v2260_v31 }
 0x864   : > { %2263 = vmatpush3.bf16.msra.mxu1 %v2260_v31 }
 0x867   : > { %2183 = vmatmul.mubr.msk.f32.vlgmr.msra.gmra.mrb[18].mxu1 %vm595_vm1, %v1735_v32 }
 0x868   : > { %2185 = vmatprep.mubr.msk.f32.mxu1 %vm595_vm1, %v1736_v33 }
 0x86b   : > { %2186 = vmatmul.mubr.msk.f32.gmra.mrb[20].mxu1 %vm595_vm1, %v1737_v34 }
 0x93a   : > { %v2184_v37 = vpop.f32.mrb[18].mxu1 }
 0x93b   : > { %v1826_v38 = vadd.f32 %v2184_v37, %v1739_v35  ;;  %v1820_v39 = vpop.f32.mrb[19].mxu1 }
 0x93c   : > { %v1821_v40 = vadd.f32 %v1820_v39, %v1738_v36 }
 0x93d   : > { %1841 = vst.msk [vmem:[%s548_s29 + $0x8] sm:$0xff] %vm1839_vm3, %v1826_v38 }
 0x93e   : > { %1840 = vst.msk [vmem:[%s548_s29] sm:$0xff] %vm1839_vm3, %v1821_v40  ;;  %v2187_v45 = vpop.f32.mrb[20].mxu1 }
 0x93f   : > { %v1836_v46 = vadd.f32 %v2187_v45, %v1741_v41  ;;  %v1830_v22 = vpop.f32.mrb[21].mxu1 }
 0x940   : > { %v1831_v23 = vadd.f32 %v1830_v22, %v1740_v44 }
 0x941   : > { %1843 = vst.msk [vmem:[%s548_s29 + $0x18] sm:$0xff] %vm1839_vm3, %v1836_v46 }
 0x942   : > { %1842 = vst.msk [vmem:[%s548_s29 + $0x10] sm:$0xff] %vm1839_vm3, %v1831_v23 }
 0x943 PF: > { %s27_s24 = sadd.s32 1, %s2290_s24  }
 0x944   : > { %p24_p4 = scmp.ge.s32.totalorder %s27_s24, 4  }
 0x946   :  { %26 = sbr.rel (!%p24_p4) target bundleno = 3 (0x3), region = 118 }

</bundles_post_ra>
